<compile_context>
chip_gen: v7x
topology: tpu7x:2x2x1
jax: 0.10.0
libtpu: 0.0.40
codegen_flags: <defaults>
</compile_context>

<pallas_src>
import jax
import jax.numpy as jnp
from jax.experimental import pallas as pl
from jax.experimental.pallas import tpu as pltpu

EPS = 1e-5
NEG_SLOPE = 0.1

_VMEM_LIMIT = 32 * 1024 * 1024  # explicit scoped-VMEM cap (safe on v5e/v6e/v7x)


# --------------------------------------------------------------------------
# Pass 1: 1x1 conv (channel matmul) + fused BN1 partial statistics.
# --------------------------------------------------------------------------
def _conv1x1_stats_kernel(x_ref, w1_ref, h_ref, s_ref, ss_ref):
    # x_ref: (TM, C) f32 tile, w1_ref: (C, Cmid) bf16.
    h = jnp.dot(x_ref[...].astype(jnp.bfloat16), w1_ref[...],
                preferred_element_type=jnp.float32)
    h_ref[...] = h
    # Per-tile partial sums (single pass over the f32 accumulator).
    s_ref[...] = jnp.sum(h, axis=0, keepdims=True)
    ss_ref[...] = jnp.sum(h * h, axis=0, keepdims=True)


# --------------------------------------------------------------------------
# Pass 2: BN1 (folded scale/shift) + LeakyReLU + 3x3 conv + BN2 partial stats.
# --------------------------------------------------------------------------
def _shift_rows(a, s):
    """result[r] = a[r + s] if 0 <= r + s < rows else 0  (static shift s)."""
    if s == 0:
        return a
    pad = jnp.zeros((abs(s), a.shape[1]), a.dtype)
    if s > 0:
        return jnp.concatenate([a[s:], pad], axis=0)
    return jnp.concatenate([pad, a[:s]], axis=0)


def _make_conv3x3_stats_kernel(H, W):
    HW = H * W

    def kernel(h1_ref, sc1_ref, sh1_ref, w2_ref, h2_ref, s_ref, ss_ref):
        # h1_ref: (HW, Cmid) f32 (one image), w2_ref: (9, Cmid, C) bf16.
        # BN1 affine was pre-folded into scale/shift on the host (hoisted
        # broadcast, applied once per tile).
        a = h1_ref[...] * sc1_ref[...] + sh1_ref[...]
        a = jnp.where(a > 0, a, NEG_SLOPE * a).astype(jnp.bfloat16)

        # Output-pixel x coordinate, for masking the horizontal padding.
        xo = jax.lax.broadcasted_iota(jnp.int32, (HW, 1), 0) % W
        not_left = xo > 0            # tap ox == -1 invalid at xo == 0
        not_right = xo < (W - 1)     # tap ox == +1 invalid at xo == W-1

        # 3x3 conv (padding=1) as 9 shifted bf16 matmuls chained into one f32
        # accumulator.  The zero-filled row shift realises the vertical
        # padding; the two column masks realise the horizontal padding (and
        # also zero the rows that wrapped across image rows).  No padded
        # tensor / im2col patches are materialized.
        acc = None
        for ky in range(3):
            for kx in range(3):
                oy, ox = ky - 1, kx - 1
                src = _shift_rows(a, oy * W + ox)
                if ox == -1:
                    src = jnp.where(not_left, src, jnp.zeros_like(src))
                elif ox == 1:
                    src = jnp.where(not_right, src, jnp.zeros_like(src))
                d = jnp.dot(src, w2_ref[ky * 3 + kx],
                            preferred_element_type=jnp.float32)
                acc = d if acc is None else acc + d   # first tap inits acc

        h2_ref[...] = acc
        # Fused BN2 partial statistics.
        s_ref[...] = jnp.sum(acc, axis=0, keepdims=True)
        ss_ref[...] = jnp.sum(acc * acc, axis=0, keepdims=True)

    return kernel


# --------------------------------------------------------------------------
# Pass 3: BN2 (folded scale/shift) + LeakyReLU + residual add.
# --------------------------------------------------------------------------
def _bn_act_residual_kernel(x_ref, h2_ref, sc2_ref, sh2_ref, o_ref):
    h = h2_ref[...] * sc2_ref[...] + sh2_ref[...]
    h = jnp.where(h > 0, h, NEG_SLOPE * h)
    o_ref[...] = (x_ref[...] + h).astype(o_ref.dtype)


# --------------------------------------------------------------------------
# Host-side glue.
# --------------------------------------------------------------------------
def _pick_row_tile(m, target=256):
    """Largest multiple-of-8 divisor of m that is <= target (else m)."""
    best = None
    t = 8
    while t <= min(m, target):
        if m % t == 0:
            best = t
        t += 8
    return best if best is not None else m


def _bn_scale_shift(psum, psumsq, gamma, beta, count):
    """Fold training-mode BN (biased batch var) + affine into scale/shift."""
    s = jnp.sum(psum, axis=0)                 # (1, Cch) f32
    ss = jnp.sum(psumsq, axis=0)
    mean = s / count
    var = jnp.maximum(ss / count - mean * mean, 0.0)
    scale = gamma.reshape(1, -1).astype(jnp.float32) * jax.lax.rsqrt(var + EPS)
    shift = beta.reshape(1, -1).astype(jnp.float32) - mean * scale
    return scale, shift


def residual_unit_nhwc(x, w1_oihw, g1, b1, w2_oihw, g2, b2,
                       *, row_tile_target=256):
    """x: (N, H, W, C) float32 NHWC.  Weights in PyTorch OIHW layout."""
    N, H, W, C = x.shape
    Cmid = C // 2
    HW = H * W
    M = N * HW
    TM = _pick_row_tile(M, row_tile_target)
    Gm = M // TM

    x2 = x.reshape(M, C)                                           # free view
    w1 = jnp.transpose(w1_oihw[:, :, 0, 0], (1, 0)).astype(jnp.bfloat16)
    w2 = jnp.transpose(w2_oihw, (2, 3, 1, 0)).reshape(9, Cmid, C)  # [ky*3+kx]
    w2 = w2.astype(jnp.bfloat16)

    cparams = pltpu.CompilerParams(dimension_semantics=("parallel",),
                                   vmem_limit_bytes=_VMEM_LIMIT)

    # ---- pass 1: 1x1 conv + BN1 partial stats (row-tiled, pipelined) ----
    h1, ps1, pss1 = pl.pallas_call(
        _conv1x1_stats_kernel,
        grid=(Gm,),
        in_specs=[pl.BlockSpec((TM, C), lambda i: (i, 0)),
                  pl.BlockSpec((C, Cmid), lambda i: (0, 0))],
        out_specs=(pl.BlockSpec((TM, Cmid), lambda i: (i, 0)),
                   pl.BlockSpec((None, 1, Cmid), lambda i: (i, 0, 0)),
                   pl.BlockSpec((None, 1, Cmid), lambda i: (i, 0, 0))),
        out_shape=(jax.ShapeDtypeStruct((M, Cmid), jnp.float32),
                   jax.ShapeDtypeStruct((Gm, 1, Cmid), jnp.float32),
                   jax.ShapeDtypeStruct((Gm, 1, Cmid), jnp.float32)),
        compiler_params=cparams,
    )(x2, w1)

    sc1, sh1 = _bn_scale_shift(ps1, pss1, g1, b1, M)

    # ---- pass 2: BN1 + LeakyReLU + 3x3 conv + BN2 partial stats (per image) ----
    conv2_kernel = _make_conv3x3_stats_kernel(H, W)
    h2, ps2, pss2 = pl.pallas_call(
        conv2_kernel,
        grid=(N,),
        in_specs=[pl.BlockSpec((None, HW, Cmid), lambda n: (n, 0, 0)),
                  pl.BlockSpec((1, Cmid), lambda n: (0, 0)),
                  pl.BlockSpec((1, Cmid), lambda n: (0, 0)),
                  pl.BlockSpec((9, Cmid, C), lambda n: (0, 0, 0))],
        out_specs=(pl.BlockSpec((None, HW, C), lambda n: (n, 0, 0)),
                   pl.BlockSpec((None, 1, C), lambda n: (n, 0, 0)),
                   pl.BlockSpec((None, 1, C), lambda n: (n, 0, 0))),
        out_shape=(jax.ShapeDtypeStruct((N, HW, C), jnp.float32),
                   jax.ShapeDtypeStruct((N, 1, C), jnp.float32),
                   jax.ShapeDtypeStruct((N, 1, C), jnp.float32)),
        compiler_params=cparams,
    )(h1.reshape(N, HW, Cmid), sc1, sh1, w2)

    sc2, sh2 = _bn_scale_shift(ps2, pss2, g2, b2, M)

    # ---- pass 3: BN2 + LeakyReLU + residual add (row-tiled, pipelined) ----
    y2 = pl.pallas_call(
        _bn_act_residual_kernel,
        grid=(Gm,),
        in_specs=[pl.BlockSpec((TM, C), lambda i: (i, 0)),
                  pl.BlockSpec((TM, C), lambda i: (i, 0)),
                  pl.BlockSpec((1, C), lambda i: (0, 0)),
                  pl.BlockSpec((1, C), lambda i: (0, 0))],
        out_specs=pl.BlockSpec((TM, C), lambda i: (i, 0)),
        out_shape=jax.ShapeDtypeStruct((M, C), x.dtype),
        compiler_params=cparams,
    )(x2, h2.reshape(M, C), sc2, sh2)

    return y2.reshape(N, H, W, C)


# --------------------------------------------------------------------------
# Pure-JAX reference (lax.conv + training-mode BN), NHWC.
# --------------------------------------------------------------------------
def _reference_nhwc(x, w1_oihw, g1, b1, w2_oihw, g2, b2):
    dn = ("NHWC", "HWIO", "NHWC")
    w1 = jnp.transpose(w1_oihw, (2, 3, 1, 0))      # (1,1,C,Cmid)
    w2 = jnp.transpose(w2_oihw, (2, 3, 1, 0))      # (3,3,Cmid,C)

    def bn_act(h, g, b):
        mean = jnp.mean(h, axis=(0, 1, 2), keepdims=True)
        var = jnp.mean(jnp.square(h - mean), axis=(0, 1, 2), keepdims=True)
        h = (h - mean) / jnp.sqrt(var + EPS)
        h = h * g.reshape(1, 1, 1, -1) + b.reshape(1, 1, 1, -1)
        return jnp.where(h > 0, h, NEG_SLOPE * h)

    h = jax.lax.conv_general_dilated(x, w1, (1, 1), "VALID",
                                     dimension_numbers=dn)
    h = bn_act(h, g1, b1)
    h = jax.lax.conv_general_dilated(h, w2, (1, 1), ((1, 1), (1, 1)),
                                     dimension_numbers=dn)
    h = bn_act(h, g2, b2)
    return x + h


if __name__ == "__main__":
    key = jax.random.PRNGKey(0)
    N, H, W, C = 2, 16, 16, 64           # NHWC end-to-end
    Cmid = C // 2

    kx_, kw1, kw2 = jax.random.split(key, 3)
    x = jax.random.normal(kx_, (N, H, W, C), jnp.float32)
    # PyTorch-shaped (OIHW) synthetic conv weights.
    w1 = 0.1 * jax.random.normal(kw1, (Cmid, C, 1, 1), jnp.float32)
    w2 = 0.1 * jax.random.normal(kw2, (C, Cmid, 3, 3), jnp.float32)
    # BatchNorm affine params at PyTorch init (weight=1, bias=0).
    g1 = jnp.ones((Cmid,), jnp.float32)
    b1 = jnp.zeros((Cmid,), jnp.float32)
    g2 = jnp.ones((C,), jnp.float32)
    b2 = jnp.zeros((C,), jnp.float32)

    fn = jax.jit(residual_unit_nhwc)
    out = jax.block_until_ready(fn(x, w1, g1, b1, w2, g2, b2))

    ref = _reference_nhwc(x, w1, g1, b1, w2, g2, b2)
    assert out.shape == (N, H, W, C) and out.dtype == jnp.float32
    # Tolerance loosened vs f32-only: matmul operands run in bf16 on the MXU
    # (accumulation, BN statistics and the residual path stay in f32).
    max_err = float(jnp.max(jnp.abs(out - ref)))
    assert jnp.allclose(out, ref, atol=5e-2, rtol=5e-2), max_err
    print("KERNEL_OK")
</pallas_src>

<mosaic_0001>
module attributes {stable_mosaic.version = 11 : i64} {
  func.func @_conv1x1_stats_kernel(%arg0: i32, %arg1: memref<256x64xf32, #tpu.memory_space<vmem>>, %arg2: memref<64x32xbf16, #tpu.memory_space<vmem>>, %arg3: memref<256x32xf32, #tpu.memory_space<vmem>>, %arg4: memref<1x1x32xf32, #tpu.memory_space<vmem>>, %arg5: memref<1x1x32xf32, #tpu.memory_space<vmem>>) attributes {dimension_semantics = [#tpu.dimension_semantics<parallel>], iteration_bounds = array<i64: 2>, scalar_prefetch = 0 : i64, scratch_operands = 0 : i64, tpu.core_type = #tpu.core_type<tc>, window_params = [{transform_indices = @transform_0, window_bounds = array<i64: 256, 64>}, {pipeline_mode = #tpu.pipeline_mode<synchronous>, transform_indices = @transform_1, window_bounds = array<i64: 64, 32>}, {transform_indices = @transform_2, window_bounds = array<i64: 256, 32>}, {transform_indices = @transform_3, window_bounds = array<i64: 1, 1, 32>}, {transform_indices = @transform_4, window_bounds = array<i64: 1, 1, 32>}]} {
    %c0 = arith.constant 0 : index
    %c0_0 = arith.constant 0 : index
    %0 = vector.load %arg1[%c0, %c0_0] : memref<256x64xf32, #tpu.memory_space<vmem>>, vector<256x64xf32>
    %1 = arith.truncf %0 : vector<256x64xf32> to vector<256x64xbf16>
    %c0_1 = arith.constant 0 : index
    %c0_2 = arith.constant 0 : index
    %2 = vector.load %arg2[%c0_1, %c0_2] : memref<64x32xbf16, #tpu.memory_space<vmem>>, vector<64x32xbf16>
    %cst = arith.constant dense<0.000000e+00> : vector<256x32xf32>
    %3 = tpu.matmul %1, %2, %cst {dimension_numbers = #tpu.dot_dimension_numbers<[1], [0], [0], [1], [0, 0, 1, 1], [], []>} : vector<256x64xbf16>, vector<64x32xbf16>, vector<256x32xf32> -> vector<256x32xf32>
    %c0_3 = arith.constant 0 : index
    %c0_4 = arith.constant 0 : index
    %4 = vector.load %arg3[%c0_3, %c0_4] : memref<256x32xf32, #tpu.memory_space<vmem>>, vector<256x32xf32>
    tpu.vector_store %arg3[%c0_3, %c0_4], %3 {strides = array<i32>} : memref<256x32xf32, #tpu.memory_space<vmem>>, vector<256x32xf32>,
    %cst_5 = arith.constant dense<0.000000e+00> : vector<32xf32>
    %5 = vector.multi_reduction <add>, %3, %cst_5 [0] : vector<256x32xf32> to vector<32xf32>
    %6 = vector.shape_cast %5 : vector<32xf32> to vector<1x32xf32>
    %c0_6 = arith.constant 0 : index
    %c0_7 = arith.constant 0 : index
    %c0_8 = arith.constant 0 : index
    %7 = vector.load %arg4[%c0_6, %c0_7, %c0_8] : memref<1x1x32xf32, #tpu.memory_space<vmem>>, vector<1x1x32xf32>
    %8 = vector.shape_cast %7 : vector<1x1x32xf32> to vector<1x32xf32>
    %9 = vector.shape_cast %6 : vector<1x32xf32> to vector<1x1x32xf32>
    tpu.vector_store %arg4[%c0_6, %c0_7, %c0_8], %9 {strides = array<i32>} : memref<1x1x32xf32, #tpu.memory_space<vmem>>, vector<1x1x32xf32>,
    %10 = arith.mulf %3, %3 : vector<256x32xf32>
    %cst_9 = arith.constant dense<0.000000e+00> : vector<32xf32>
    %11 = vector.multi_reduction <add>, %10, %cst_9 [0] : vector<256x32xf32> to vector<32xf32>
    %12 = vector.shape_cast %11 : vector<32xf32> to vector<1x32xf32>
    %c0_10 = arith.constant 0 : index
    %c0_11 = arith.constant 0 : index
    %c0_12 = arith.constant 0 : index
    %13 = vector.load %arg5[%c0_10, %c0_11, %c0_12] : memref<1x1x32xf32, #tpu.memory_space<vmem>>, vector<1x1x32xf32>
    %14 = vector.shape_cast %13 : vector<1x1x32xf32> to vector<1x32xf32>
    %15 = vector.shape_cast %12 : vector<1x32xf32> to vector<1x1x32xf32>
    tpu.vector_store %arg5[%c0_10, %c0_11, %c0_12], %15 {strides = array<i32>} : memref<1x1x32xf32, #tpu.memory_space<vmem>>, vector<1x1x32xf32>,
    return
  }
  func.func @transform_0(%arg0: i32) -> (i32, i32) {
    %c0_i32 = arith.constant 0 : i32
    %c0_i32_0 = arith.constant 0 : i32
    return %arg0, %c0_i32 : i32, i32
  }
  func.func @transform_1(%arg0: i32) -> (i32, i32) {
    %c0_i32 = arith.constant 0 : i32
    %c0_i32_0 = arith.constant 0 : i32
    %c0_i32_1 = arith.constant 0 : i32
    return %c0_i32, %c0_i32_0 : i32, i32
  }
  func.func @transform_2(%arg0: i32) -> (i32, i32) {
    %c0_i32 = arith.constant 0 : i32
    %c0_i32_0 = arith.constant 0 : i32
    return %arg0, %c0_i32 : i32, i32
  }
  func.func @transform_3(%arg0: i32) -> (i32, i32, i32) {
    %c0_i32 = arith.constant 0 : i32
    %c0_i32_0 = arith.constant 0 : i32
    %c0_i32_1 = arith.constant 0 : i32
    return %arg0, %c0_i32, %c0_i32_0 : i32, i32, i32
  }
  func.func @transform_4(%arg0: i32) -> (i32, i32, i32) {
    %c0_i32 = arith.constant 0 : i32
    %c0_i32_0 = arith.constant 0 : i32
    %c0_i32_1 = arith.constant 0 : i32
    return %arg0, %c0_i32, %c0_i32_0 : i32, i32, i32
  }
}

module attributes {stable_mosaic.version = 11 : i64} {
  func.func @_bn_act_residual_kernel(%arg0: i32, %arg1: memref<256x64xf32, #tpu.memory_space<vmem>>, %arg2: memref<256x64xf32, #tpu.memory_space<vmem>>, %arg3: memref<1x64xf32, #tpu.memory_space<vmem>>, %arg4: memref<1x64xf32, #tpu.memory_space<vmem>>, %arg5: memref<256x64xf32, #tpu.memory_space<vmem>>) attributes {dimension_semantics = [#tpu.dimension_semantics<parallel>], iteration_bounds = array<i64: 2>, scalar_prefetch = 0 : i64, scratch_operands = 0 : i64, tpu.core_type = #tpu.core_type<tc>, window_params = [{transform_indices = @transform_0, window_bounds = array<i64: 256, 64>}, {transform_indices = @transform_1, window_bounds = array<i64: 256, 64>}, {pipeline_mode = #tpu.pipeline_mode<synchronous>, transform_indices = @transform_2, window_bounds = array<i64: 1, 64>}, {pipeline_mode = #tpu.pipeline_mode<synchronous>, transform_indices = @transform_3, window_bounds = array<i64: 1, 64>}, {transform_indices = @transform_4, window_bounds = array<i64: 256, 64>}]} {
    %c0 = arith.constant 0 : index
    %c0_0 = arith.constant 0 : index
    %0 = vector.load %arg2[%c0, %c0_0] : memref<256x64xf32, #tpu.memory_space<vmem>>, vector<256x64xf32>
    %c0_1 = arith.constant 0 : index
    %c0_2 = arith.constant 0 : index
    %1 = vector.load %arg3[%c0_1, %c0_2] : memref<1x64xf32, #tpu.memory_space<vmem>>, vector<1x64xf32>
    %2 = vector.broadcast %1 : vector<1x64xf32> to vector<256x64xf32>
    %3 = arith.mulf %0, %2 : vector<256x64xf32>
    %c0_3 = arith.constant 0 : index
    %c0_4 = arith.constant 0 : index
    %4 = vector.load %arg4[%c0_3, %c0_4] : memref<1x64xf32, #tpu.memory_space<vmem>>, vector<1x64xf32>
    %5 = vector.broadcast %4 : vector<1x64xf32> to vector<256x64xf32>
    %6 = arith.addf %3, %5 : vector<256x64xf32>
    %cst = arith.constant 0.000000e+00 : f32
    %7 = vector.broadcast %cst : f32 to vector<256x64xf32>
    %8 = arith.cmpf ogt, %6, %7 : vector<256x64xf32>
    %cst_5 = arith.constant 1.000000e-01 : f32
    %9 = vector.broadcast %cst_5 : f32 to vector<256x64xf32>
    %10 = arith.mulf %9, %6 : vector<256x64xf32>
    %11 = arith.select %8, %6, %10 : vector<256x64xi1>, vector<256x64xf32>
    %c0_6 = arith.constant 0 : index
    %c0_7 = arith.constant 0 : index
    %12 = vector.load %arg1[%c0_6, %c0_7] : memref<256x64xf32, #tpu.memory_space<vmem>>, vector<256x64xf32>
    %13 = arith.addf %12, %11 : vector<256x64xf32>
    %c0_8 = arith.constant 0 : index
    %c0_9 = arith.constant 0 : index
    %14 = vector.load %arg5[%c0_8, %c0_9] : memref<256x64xf32, #tpu.memory_space<vmem>>, vector<256x64xf32>
    tpu.vector_store %arg5[%c0_8, %c0_9], %13 {strides = array<i32>} : memref<256x64xf32, #tpu.memory_space<vmem>>, vector<256x64xf32>,
    return
  }
  func.func @transform_0(%arg0: i32) -> (i32, i32) {
    %c0_i32 = arith.constant 0 : i32
    %c0_i32_0 = arith.constant 0 : i32
    return %arg0, %c0_i32 : i32, i32
  }
  func.func @transform_1(%arg0: i32) -> (i32, i32) {
    %c0_i32 = arith.constant 0 : i32
    %c0_i32_0 = arith.constant 0 : i32
    return %arg0, %c0_i32 : i32, i32
  }
  func.func @transform_2(%arg0: i32) -> (i32, i32) {
    %c0_i32 = arith.constant 0 : i32
    %c0_i32_0 = arith.constant 0 : i32
    %c0_i32_1 = arith.constant 0 : i32
    return %c0_i32, %c0_i32_0 : i32, i32
  }
  func.func @transform_3(%arg0: i32) -> (i32, i32) {
    %c0_i32 = arith.constant 0 : i32
    %c0_i32_0 = arith.constant 0 : i32
    %c0_i32_1 = arith.constant 0 : i32
    return %c0_i32, %c0_i32_0 : i32, i32
  }
  func.func @transform_4(%arg0: i32) -> (i32, i32) {
    %c0_i32 = arith.constant 0 : i32
    %c0_i32_0 = arith.constant 0 : i32
    return %arg0, %c0_i32 : i32, i32
  }
}

module attributes {stable_mosaic.version = 11 : i64} {
  func.func @kernel(%arg0: i32, %arg1: memref<1x256x32xf32, #tpu.memory_space<vmem>>, %arg2: memref<1x32xf32, #tpu.memory_space<vmem>>, %arg3: memref<1x32xf32, #tpu.memory_space<vmem>>, %arg4: memref<9x32x64xbf16, #tpu.memory_space<vmem>>, %arg5: memref<1x256x64xf32, #tpu.memory_space<vmem>>, %arg6: memref<1x1x64xf32, #tpu.memory_space<vmem>>, %arg7: memref<1x1x64xf32, #tpu.memory_space<vmem>>) attributes {dimension_semantics = [#tpu.dimension_semantics<parallel>], iteration_bounds = array<i64: 2>, scalar_prefetch = 0 : i64, scratch_operands = 0 : i64, tpu.core_type = #tpu.core_type<tc>, window_params = [{transform_indices = @transform_0, window_bounds = array<i64: 1, 256, 32>}, {pipeline_mode = #tpu.pipeline_mode<synchronous>, transform_indices = @transform_1, window_bounds = array<i64: 1, 32>}, {pipeline_mode = #tpu.pipeline_mode<synchronous>, transform_indices = @transform_2, window_bounds = array<i64: 1, 32>}, {pipeline_mode = #tpu.pipeline_mode<synchronous>, transform_indices = @transform_3, window_bounds = array<i64: 9, 32, 64>}, {transform_indices = @transform_4, window_bounds = array<i64: 1, 256, 64>}, {transform_indices = @transform_5, window_bounds = array<i64: 1, 1, 64>}, {transform_indices = @transform_6, window_bounds = array<i64: 1, 1, 64>}]} {
    %c0 = arith.constant 0 : index
    %c0_0 = arith.constant 0 : index
    %c0_1 = arith.constant 0 : index
    %0 = vector.load %arg1[%c0, %c0_0, %c0_1] : memref<1x256x32xf32, #tpu.memory_space<vmem>>, vector<1x256x32xf32>
    %1 = vector.shape_cast %0 : vector<1x256x32xf32> to vector<256x32xf32>
    %c0_2 = arith.constant 0 : index
    %c0_3 = arith.constant 0 : index
    %2 = vector.load %arg2[%c0_2, %c0_3] : memref<1x32xf32, #tpu.memory_space<vmem>>, vector<1x32xf32>
    %3 = vector.broadcast %2 : vector<1x32xf32> to vector<256x32xf32>
    %4 = arith.mulf %1, %3 : vector<256x32xf32>
    %c0_4 = arith.constant 0 : index
    %c0_5 = arith.constant 0 : index
    %5 = vector.load %arg3[%c0_4, %c0_5] : memref<1x32xf32, #tpu.memory_space<vmem>>, vector<1x32xf32>
    %6 = vector.broadcast %5 : vector<1x32xf32> to vector<256x32xf32>
    %7 = arith.addf %4, %6 : vector<256x32xf32>
    %cst = arith.constant 0.000000e+00 : f32
    %8 = vector.broadcast %cst : f32 to vector<256x32xf32>
    %9 = arith.cmpf ogt, %7, %8 : vector<256x32xf32>
    %cst_6 = arith.constant 1.000000e-01 : f32
    %10 = vector.broadcast %cst_6 : f32 to vector<256x32xf32>
    %11 = arith.mulf %10, %7 : vector<256x32xf32>
    %12 = arith.select %9, %7, %11 : vector<256x32xi1>, vector<256x32xf32>
    %13 = arith.truncf %12 : vector<256x32xf32> to vector<256x32xbf16>
    %14 = tpu.iota {dimensions = array<i32: 0>} : vector<256x1xi32>
    %c16_i32 = arith.constant 16 : i32
    %c0_i32 = arith.constant 0 : i32
    %15 = arith.cmpi eq, %c16_i32, %c0_i32 : i32
    %c1_i32 = arith.constant 1 : i32
    %16 = arith.select %15, %c1_i32, %c16_i32 : i32
    %17 = vector.broadcast %16 : i32 to vector<256x1xi32>
    %18 = arith.remsi %14, %17 : vector<256x1xi32>
    %c0_i32_7 = arith.constant 0 : i32
    %19 = vector.broadcast %c0_i32_7 : i32 to vector<256x1xi32>
    %20 = arith.cmpi ne, %18, %19 : vector<256x1xi32>
    %c0_i32_8 = arith.constant 0 : i32
    %21 = vector.broadcast %c0_i32_8 : i32 to vector<256x1xi32>
    %22 = arith.cmpi slt, %18, %21 : vector<256x1xi32>
    %c0_i32_9 = arith.constant 0 : i32
    %23 = arith.cmpi slt, %16, %c0_i32_9 : i32
    %24 = vector.broadcast %23 : i1 to vector<256x1xi1>
    %25 = vector.broadcast %24 : vector<256x1xi1> to vector<256x1xi1>
    %26 = arith.xori %22, %25 : vector<256x1xi1>
    %27 = arith.andi %26, %20 : vector<256x1xi1>
    %28 = vector.broadcast %16 : i32 to vector<256x1xi32>
    %29 = arith.addi %18, %28 : vector<256x1xi32>
    %30 = arith.select %27, %29, %18 : vector<256x1xi1>, vector<256x1xi32>
    %c0_i32_10 = arith.constant 0 : i32
    %31 = vector.broadcast %c0_i32_10 : i32 to vector<256x1xi32>
    %32 = arith.cmpi sgt, %30, %31 : vector<256x1xi32>
    %c15_i32 = arith.constant 15 : i32
    %33 = vector.broadcast %c15_i32 : i32 to vector<256x1xi32>
    %34 = arith.cmpi slt, %30, %33 : vector<256x1xi32>
    %cst_11 = arith.constant 0.000000e+00 : bf16
    %35 = vector.broadcast %cst_11 : bf16 to vector<17x32xbf16>
    %36 = vector.extract_strided_slice %13 {offsets = [0, 0], sizes = [239, 32], strides = [1, 1]} : vector<256x32xbf16> to vector<239x32xbf16>
    %37 = tpu.concatenate %35, %36 in 0 : vector<17x32xbf16>, vector<239x32xbf16> -> vector<256x32xbf16>
    %cst_12 = arith.constant 0.000000e+00 : bf16
    %38 = vector.broadcast %cst_12 : bf16 to vector<256x32xbf16>
    %39 = vector.shape_cast %32 : vector<256x1xi1> to vector<256x1xi1>
    %40 = vector.broadcast %39 : vector<256x1xi1> to vector<256x32xi1>
    %41 = arith.select %40, %37, %38 : vector<256x32xi1>, vector<256x32xbf16>
    %c0_13 = arith.constant 0 : index
    %c0_14 = arith.constant 0 : index
    %c0_15 = arith.constant 0 : index
    %42 = vector.load %arg4[%c0_13, %c0_14, %c0_15] : memref<9x32x64xbf16, #tpu.memory_space<vmem>>, vector<1x32x64xbf16>
    %43 = vector.shape_cast %42 : vector<1x32x64xbf16> to vector<32x64xbf16>
    %cst_16 = arith.constant dense<0.000000e+00> : vector<256x64xf32>
    %44 = tpu.matmul %41, %43, %cst_16 {dimension_numbers = #tpu.dot_dimension_numbers<[1], [0], [0], [1], [0, 0, 1, 1], [], []>} : vector<256x32xbf16>, vector<32x64xbf16>, vector<256x64xf32> -> vector<256x64xf32>
    %cst_17 = arith.constant 0.000000e+00 : bf16
    %45 = vector.broadcast %cst_17 : bf16 to vector<16x32xbf16>
    %46 = vector.extract_strided_slice %13 {offsets = [0, 0], sizes = [240, 32], strides = [1, 1]} : vector<256x32xbf16> to vector<240x32xbf16>
    %47 = tpu.concatenate %45, %46 in 0 : vector<16x32xbf16>, vector<240x32xbf16> -> vector<256x32xbf16>
    %c1 = arith.constant 1 : index
    %c0_18 = arith.constant 0 : index
    %c0_19 = arith.constant 0 : index
    %48 = vector.load %arg4[%c1, %c0_18, %c0_19] : memref<9x32x64xbf16, #tpu.memory_space<vmem>>, vector<1x32x64xbf16>
    %49 = vector.shape_cast %48 : vector<1x32x64xbf16> to vector<32x64xbf16>
    %cst_20 = arith.constant dense<0.000000e+00> : vector<256x64xf32>
    %50 = tpu.matmul %47, %49, %cst_20 {dimension_numbers = #tpu.dot_dimension_numbers<[1], [0], [0], [1], [0, 0, 1, 1], [], []>} : vector<256x32xbf16>, vector<32x64xbf16>, vector<256x64xf32> -> vector<256x64xf32>
    %51 = arith.addf %44, %50 : vector<256x64xf32>
    %cst_21 = arith.constant 0.000000e+00 : bf16
    %52 = vector.broadcast %cst_21 : bf16 to vector<15x32xbf16>
    %53 = vector.extract_strided_slice %13 {offsets = [0, 0], sizes = [241, 32], strides = [1, 1]} : vector<256x32xbf16> to vector<241x32xbf16>
    %54 = tpu.concatenate %52, %53 in 0 : vector<15x32xbf16>, vector<241x32xbf16> -> vector<256x32xbf16>
    %cst_22 = arith.constant 0.000000e+00 : bf16
    %55 = vector.broadcast %cst_22 : bf16 to vector<256x32xbf16>
    %56 = vector.shape_cast %34 : vector<256x1xi1> to vector<256x1xi1>
    %57 = vector.broadcast %56 : vector<256x1xi1> to vector<256x32xi1>
    %58 = arith.select %57, %54, %55 : vector<256x32xi1>, vector<256x32xbf16>
    %c2 = arith.constant 2 : index
    %c0_23 = arith.constant 0 : index
    %c0_24 = arith.constant 0 : index
    %59 = vector.load %arg4[%c2, %c0_23, %c0_24] : memref<9x32x64xbf16, #tpu.memory_space<vmem>>, vector<1x32x64xbf16>
    %60 = vector.shape_cast %59 : vector<1x32x64xbf16> to vector<32x64xbf16>
    %cst_25 = arith.constant dense<0.000000e+00> : vector<256x64xf32>
    %61 = tpu.matmul %58, %60, %cst_25 {dimension_numbers = #tpu.dot_dimension_numbers<[1], [0], [0], [1], [0, 0, 1, 1], [], []>} : vector<256x32xbf16>, vector<32x64xbf16>, vector<256x64xf32> -> vector<256x64xf32>
    %62 = arith.addf %51, %61 : vector<256x64xf32>
    %cst_26 = arith.constant 0.000000e+00 : bf16
    %63 = vector.broadcast %cst_26 : bf16 to vector<1x32xbf16>
    %64 = vector.extract_strided_slice %13 {offsets = [0, 0], sizes = [255, 32], strides = [1, 1]} : vector<256x32xbf16> to vector<255x32xbf16>
    %65 = tpu.concatenate %63, %64 in 0 : vector<1x32xbf16>, vector<255x32xbf16> -> vector<256x32xbf16>
    %cst_27 = arith.constant 0.000000e+00 : bf16
    %66 = vector.broadcast %cst_27 : bf16 to vector<256x32xbf16>
    %67 = vector.shape_cast %32 : vector<256x1xi1> to vector<256x1xi1>
    %68 = vector.broadcast %67 : vector<256x1xi1> to vector<256x32xi1>
    %69 = arith.select %68, %65, %66 : vector<256x32xi1>, vector<256x32xbf16>
    %c3 = arith.constant 3 : index
    %c0_28 = arith.constant 0 : index
    %c0_29 = arith.constant 0 : index
    %70 = vector.load %arg4[%c3, %c0_28, %c0_29] : memref<9x32x64xbf16, #tpu.memory_space<vmem>>, vector<1x32x64xbf16>
    %71 = vector.shape_cast %70 : vector<1x32x64xbf16> to vector<32x64xbf16>
    %cst_30 = arith.constant dense<0.000000e+00> : vector<256x64xf32>
    %72 = tpu.matmul %69, %71, %cst_30 {dimension_numbers = #tpu.dot_dimension_numbers<[1], [0], [0], [1], [0, 0, 1, 1], [], []>} : vector<256x32xbf16>, vector<32x64xbf16>, vector<256x64xf32> -> vector<256x64xf32>
    %73 = arith.addf %62, %72 : vector<256x64xf32>
    %c4 = arith.constant 4 : index
    %c0_31 = arith.constant 0 : index
    %c0_32 = arith.constant 0 : index
    %74 = vector.load %arg4[%c4, %c0_31, %c0_32] : memref<9x32x64xbf16, #tpu.memory_space<vmem>>, vector<1x32x64xbf16>
    %75 = vector.shape_cast %74 : vector<1x32x64xbf16> to vector<32x64xbf16>
    %cst_33 = arith.constant dense<0.000000e+00> : vector<256x64xf32>
    %76 = tpu.matmul %13, %75, %cst_33 {dimension_numbers = #tpu.dot_dimension_numbers<[1], [0], [0], [1], [0, 0, 1, 1], [], []>} : vector<256x32xbf16>, vector<32x64xbf16>, vector<256x64xf32> -> vector<256x64xf32>
    %77 = arith.addf %73, %76 : vector<256x64xf32>
    %cst_34 = arith.constant 0.000000e+00 : bf16
    %78 = vector.broadcast %cst_34 : bf16 to vector<1x32xbf16>
    %79 = vector.extract_strided_slice %13 {offsets = [1, 0], sizes = [255, 32], strides = [1, 1]} : vector<256x32xbf16> to vector<255x32xbf16>
    %80 = tpu.concatenate %79, %78 in 0 : vector<255x32xbf16>, vector<1x32xbf16> -> vector<256x32xbf16>
    %cst_35 = arith.constant 0.000000e+00 : bf16
    %81 = vector.broadcast %cst_35 : bf16 to vector<256x32xbf16>
    %82 = vector.shape_cast %34 : vector<256x1xi1> to vector<256x1xi1>
    %83 = vector.broadcast %82 : vector<256x1xi1> to vector<256x32xi1>
    %84 = arith.select %83, %80, %81 : vector<256x32xi1>, vector<256x32xbf16>
    %c5 = arith.constant 5 : index
    %c0_36 = arith.constant 0 : index
    %c0_37 = arith.constant 0 : index
    %85 = vector.load %arg4[%c5, %c0_36, %c0_37] : memref<9x32x64xbf16, #tpu.memory_space<vmem>>, vector<1x32x64xbf16>
    %86 = vector.shape_cast %85 : vector<1x32x64xbf16> to vector<32x64xbf16>
    %cst_38 = arith.constant dense<0.000000e+00> : vector<256x64xf32>
    %87 = tpu.matmul %84, %86, %cst_38 {dimension_numbers = #tpu.dot_dimension_numbers<[1], [0], [0], [1], [0, 0, 1, 1], [], []>} : vector<256x32xbf16>, vector<32x64xbf16>, vector<256x64xf32> -> vector<256x64xf32>
    %88 = arith.addf %77, %87 : vector<256x64xf32>
    %cst_39 = arith.constant 0.000000e+00 : bf16
    %89 = vector.broadcast %cst_39 : bf16 to vector<15x32xbf16>
    %90 = vector.extract_strided_slice %13 {offsets = [15, 0], sizes = [241, 32], strides = [1, 1]} : vector<256x32xbf16> to vector<241x32xbf16>
    %91 = tpu.concatenate %90, %89 in 0 : vector<241x32xbf16>, vector<15x32xbf16> -> vector<256x32xbf16>
    %cst_40 = arith.constant 0.000000e+00 : bf16
    %92 = vector.broadcast %cst_40 : bf16 to vector<256x32xbf16>
    %93 = vector.shape_cast %32 : vector<256x1xi1> to vector<256x1xi1>
    %94 = vector.broadcast %93 : vector<256x1xi1> to vector<256x32xi1>
    %95 = arith.select %94, %91, %92 : vector<256x32xi1>, vector<256x32xbf16>
    %c6 = arith.constant 6 : index
    %c0_41 = arith.constant 0 : index
    %c0_42 = arith.constant 0 : index
    %96 = vector.load %arg4[%c6, %c0_41, %c0_42] : memref<9x32x64xbf16, #tpu.memory_space<vmem>>, vector<1x32x64xbf16>
    %97 = vector.shape_cast %96 : vector<1x32x64xbf16> to vector<32x64xbf16>
    %cst_43 = arith.constant dense<0.000000e+00> : vector<256x64xf32>
    %98 = tpu.matmul %95, %97, %cst_43 {dimension_numbers = #tpu.dot_dimension_numbers<[1], [0], [0], [1], [0, 0, 1, 1], [], []>} : vector<256x32xbf16>, vector<32x64xbf16>, vector<256x64xf32> -> vector<256x64xf32>
    %99 = arith.addf %88, %98 : vector<256x64xf32>
    %cst_44 = arith.constant 0.000000e+00 : bf16
    %100 = vector.broadcast %cst_44 : bf16 to vector<16x32xbf16>
    %101 = vector.extract_strided_slice %13 {offsets = [16, 0], sizes = [240, 32], strides = [1, 1]} : vector<256x32xbf16> to vector<240x32xbf16>
    %102 = tpu.concatenate %101, %100 in 0 : vector<240x32xbf16>, vector<16x32xbf16> -> vector<256x32xbf16>
    %c7 = arith.constant 7 : index
    %c0_45 = arith.constant 0 : index
    %c0_46 = arith.constant 0 : index
    %103 = vector.load %arg4[%c7, %c0_45, %c0_46] : memref<9x32x64xbf16, #tpu.memory_space<vmem>>, vector<1x32x64xbf16>
    %104 = vector.shape_cast %103 : vector<1x32x64xbf16> to vector<32x64xbf16>
    %cst_47 = arith.constant dense<0.000000e+00> : vector<256x64xf32>
    %105 = tpu.matmul %102, %104, %cst_47 {dimension_numbers = #tpu.dot_dimension_numbers<[1], [0], [0], [1], [0, 0, 1, 1], [], []>} : vector<256x32xbf16>, vector<32x64xbf16>, vector<256x64xf32> -> vector<256x64xf32>
    %106 = arith.addf %99, %105 : vector<256x64xf32>
    %cst_48 = arith.constant 0.000000e+00 : bf16
    %107 = vector.broadcast %cst_48 : bf16 to vector<17x32xbf16>
    %108 = vector.extract_strided_slice %13 {offsets = [17, 0], sizes = [239, 32], strides = [1, 1]} : vector<256x32xbf16> to vector<239x32xbf16>
    %109 = tpu.concatenate %108, %107 in 0 : vector<239x32xbf16>, vector<17x32xbf16> -> vector<256x32xbf16>
    %cst_49 = arith.constant 0.000000e+00 : bf16
    %110 = vector.broadcast %cst_49 : bf16 to vector<256x32xbf16>
    %111 = vector.shape_cast %34 : vector<256x1xi1> to vector<256x1xi1>
    %112 = vector.broadcast %111 : vector<256x1xi1> to vector<256x32xi1>
    %113 = arith.select %112, %109, %110 : vector<256x32xi1>, vector<256x32xbf16>
    %c8 = arith.constant 8 : index
    %c0_50 = arith.constant 0 : index
    %c0_51 = arith.constant 0 : index
    %114 = vector.load %arg4[%c8, %c0_50, %c0_51] : memref<9x32x64xbf16, #tpu.memory_space<vmem>>, vector<1x32x64xbf16>
    %115 = vector.shape_cast %114 : vector<1x32x64xbf16> to vector<32x64xbf16>
    %cst_52 = arith.constant dense<0.000000e+00> : vector<256x64xf32>
    %116 = tpu.matmul %113, %115, %cst_52 {dimension_numbers = #tpu.dot_dimension_numbers<[1], [0], [0], [1], [0, 0, 1, 1], [], []>} : vector<256x32xbf16>, vector<32x64xbf16>, vector<256x64xf32> -> vector<256x64xf32>
    %117 = arith.addf %106, %116 : vector<256x64xf32>
    %c0_53 = arith.constant 0 : index
    %c0_54 = arith.constant 0 : index
    %c0_55 = arith.constant 0 : index
    %118 = vector.load %arg5[%c0_53, %c0_54, %c0_55] : memref<1x256x64xf32, #tpu.memory_space<vmem>>, vector<1x256x64xf32>
    %119 = vector.shape_cast %118 : vector<1x256x64xf32> to vector<256x64xf32>
    %120 = vector.shape_cast %117 : vector<256x64xf32> to vector<1x256x64xf32>
    tpu.vector_store %arg5[%c0_53, %c0_54, %c0_55], %120 {strides = array<i32>} : memref<1x256x64xf32, #tpu.memory_space<vmem>>, vector<1x256x64xf32>,
    %cst_56 = arith.constant dense<0.000000e+00> : vector<64xf32>
    %121 = vector.multi_reduction <add>, %117, %cst_56 [0] : vector<256x64xf32> to vector<64xf32>
    %122 = vector.shape_cast %121 : vector<64xf32> to vector<1x64xf32>
    %c0_57 = arith.constant 0 : index
    %c0_58 = arith.constant 0 : index
    %c0_59 = arith.constant 0 : index
    %123 = vector.load %arg6[%c0_57, %c0_58, %c0_59] : memref<1x1x64xf32, #tpu.memory_space<vmem>>, vector<1x1x64xf32>
    %124 = vector.shape_cast %123 : vector<1x1x64xf32> to vector<1x64xf32>
    %125 = vector.shape_cast %122 : vector<1x64xf32> to vector<1x1x64xf32>
    tpu.vector_store %arg6[%c0_57, %c0_58, %c0_59], %125 {strides = array<i32>} : memref<1x1x64xf32, #tpu.memory_space<vmem>>, vector<1x1x64xf32>,
    %126 = arith.mulf %117, %117 : vector<256x64xf32>
    %cst_60 = arith.constant dense<0.000000e+00> : vector<64xf32>
    %127 = vector.multi_reduction <add>, %126, %cst_60 [0] : vector<256x64xf32> to vector<64xf32>
    %128 = vector.shape_cast %127 : vector<64xf32> to vector<1x64xf32>
    %c0_61 = arith.constant 0 : index
    %c0_62 = arith.constant 0 : index
    %c0_63 = arith.constant 0 : index
    %129 = vector.load %arg7[%c0_61, %c0_62, %c0_63] : memref<1x1x64xf32, #tpu.memory_space<vmem>>, vector<1x1x64xf32>
    %130 = vector.shape_cast %129 : vector<1x1x64xf32> to vector<1x64xf32>
    %131 = vector.shape_cast %128 : vector<1x64xf32> to vector<1x1x64xf32>
    tpu.vector_store %arg7[%c0_61, %c0_62, %c0_63], %131 {strides = array<i32>} : memref<1x1x64xf32, #tpu.memory_space<vmem>>, vector<1x1x64xf32>,
    return
  }
  func.func @transform_0(%arg0: i32) -> (i32, i32, i32) {
    %c0_i32 = arith.constant 0 : i32
    %c0_i32_0 = arith.constant 0 : i32
    %c0_i32_1 = arith.constant 0 : i32
    return %arg0, %c0_i32, %c0_i32_0 : i32, i32, i32
  }
  func.func @transform_1(%arg0: i32) -> (i32, i32) {
    %c0_i32 = arith.constant 0 : i32
    %c0_i32_0 = arith.constant 0 : i32
    %c0_i32_1 = arith.constant 0 : i32
    return %c0_i32, %c0_i32_0 : i32, i32
  }
  func.func @transform_2(%arg0: i32) -> (i32, i32) {
    %c0_i32 = arith.constant 0 : i32
    %c0_i32_0 = arith.constant 0 : i32
    %c0_i32_1 = arith.constant 0 : i32
    return %c0_i32, %c0_i32_0 : i32, i32
  }
  func.func @transform_3(%arg0: i32) -> (i32, i32, i32) {
    %c0_i32 = arith.constant 0 : i32
    %c0_i32_0 = arith.constant 0 : i32
    %c0_i32_1 = arith.constant 0 : i32
    %c0_i32_2 = arith.constant 0 : i32
    return %c0_i32, %c0_i32_0, %c0_i32_1 : i32, i32, i32
  }
  func.func @transform_4(%arg0: i32) -> (i32, i32, i32) {
    %c0_i32 = arith.constant 0 : i32
    %c0_i32_0 = arith.constant 0 : i32
    %c0_i32_1 = arith.constant 0 : i32
    return %arg0, %c0_i32, %c0_i32_0 : i32, i32, i32
  }
  func.func @transform_5(%arg0: i32) -> (i32, i32, i32) {
    %c0_i32 = arith.constant 0 : i32
    %c0_i32_0 = arith.constant 0 : i32
    %c0_i32_1 = arith.constant 0 : i32
    return %arg0, %c0_i32, %c0_i32_0 : i32, i32, i32
  }
  func.func @transform_6(%arg0: i32) -> (i32, i32, i32) {
    %c0_i32 = arith.constant 0 : i32
    %c0_i32_0 = arith.constant 0 : i32
    %c0_i32_1 = arith.constant 0 : i32
    return %arg0, %c0_i32, %c0_i32_0 : i32, i32, i32
  }
}

</mosaic_0001>

<bundles_post_ra>
// kernel: residual_unit_nhwc.3
= control target key start
LH: loop header
LB: loop body
LE: loop exit
PB: predicated region body
PF: predicated region fallthrough
CT: control target
= control target key end

     0   :  { %10 = vsyncpa [#allocation3], 0  ;;  %s1498_s0 = inlined_call_operand.hbm [shape: f32[512,64], index: 0, kind: input, shape index: {}]   ;;  %s1499_s1 = inlined_call_operand.vmem [shape: bf16[64,32], index: 1, kind: input, shape index: {}]   ;;  %s1500_s2 = inlined_call_operand.vmem [shape: f32[512,32], index: 2, kind: output, shape index: {0}]   ;;  %s1501_s3 = inlined_call_operand.vmem [shape: f32[2,1,32], index: 3, kind: output, shape index: {1}]   ;;  %s1502_s4 = inlined_call_operand.vmem [shape: f32[2,1,32], index: 4, kind: output, shape index: {2}]  }
   0x1   :  { %12 = vsyncpa [#allocation3 + $0x1], 0  ;;  %s1092_s15 = smov 0   ;;  %s1094_s16 = smov 0  }
   0x2   :  { %s1096_s17 = smov 0   ;;  %s1098_s18 = smov 0  }
   0x3 LB: > { %s1111_s19 = sadd.s32 4294967295, %s1062_s18   ;;  %s1114_s20 = sadd.s32 1, %s1062_s18   ;;  %s1062_s18 = sphi %s1098_s18, %s1509_s18   ;;  %s1058_s17 = sphi %s1096_s17, %s1508_s17   ;;  %s1054_s16 = sphi %s1094_s16, %s1507_s16   ;;  %s1050_s15 = sphi %s1092_s15, %s1506_s15  }
   0x4   : > { %s22_s21 = ssub.s32 %s1062_s18, %s1114_s20  ;;  %s25_s22 = sadd.s32 1, %s1058_s17 }
   0x5   : > { %p23_p0 = scmp.eq.s32.totalorder %s22_s21, 0  ;;  %p32_p1 = scmp.ne.s32.totalorder %s1058_s17, %s1054_s16 }
   0x6   : > { %p33_p2 = scmp.eq.s32.totalorder %s1062_s18, 0  ;;  %p38_p3 = scmp.ne.s32.totalorder %s1054_s16, %s1050_s15 }
   0x7   : > { %s1124_s23 = scalar_select %p23_p0, %s1058_s17, %s25_s22  }
   0x8   : > { %p34_p4 = por %p33_p2, %p32_p1  ;;  %p39_p5 = scmp.eq.s32.totalorder %s1111_s19, 0 }
   0x9   : > { %p959_p6 = scmp.lt.s32.totalorder %s1062_s18, 2  ;;  %s164_s25 = sand.u32 1, %s1058_s17  }
   0xa   : > { %p1128_p7 = por %p39_p5, %p38_p3  ;;  %s855_s26 = sshll.u32 %s164_s25, 8 }
   0xb   : > { %s884_s27 = sshll.u32 %s1062_s18, 12  ;;  %s168_s5 = scalar_lea.vmem [#allocation2], %s855_s26 }
   0xc   : > { %s1137_s30 = scalar_lea.hbm %s1498_s0, %s884_s27  ;;  %s175_s6 = sshll.u32 %s168_s5, 4  ;;  %s1139_s6 = int_to_ptr.vmem [resolvable:$true] %s175_s6 }
   0xd   : > { %p1141_p8 = pnand %p959_p6, %p34_p4  ;;  %s1146_s8 = scalar_lea.sflag [#allocation3], %s164_s25 }
   0xe   : > { %s998_s9 = scalar_lea.hbm %s1137_s30, 4096  ;;  %s1003_s12 = scalar_lea.hbm %s1498_s0, 8192 }
   0xf   : > { %p999_p10 = scmp.ne.s32.totalorder %s1137_s30, %s998_s9  ;;  %p1000_p11 = pneg %p1141_p8 }
  0x10   : > { %p1004_p0 = scmp.lt.u32.totalorder %s1137_s30, %s1498_s0  ;;  %p1005_p1 = scmp.lt.u32.totalorder %s1003_s12, %s998_s9 }
  0x11   : > { %p1001_p12 = pnand %p1000_p11, %p999_p10  ;;  %p1007_p3 = scmp.lt.u32.totalorder %s998_s9, %s1137_s30 }
  0x12   : > { %p1006_p2 = por %p1005_p1, %p1004_p0 }
  0x13   : > { %p1002_p13 = pneg %p1001_p12 }
  0x14   : > { %p1008_p4 = por %p1007_p3, %p1006_p2 }
  0x16   : > { %p1009_p5 = pnand %p1008_p4, %p1002_p13 }
  0x18   : > { %1012 = shalt.err (!%p1009_p5)
}
  0x19   : > { %s1013_s15 = scalar_lea.vmem %s1139_s6, 4096  ;;  %s1064_s21 = smov [#allocation2]  }
  0x1a   : > { %p1014_p6 = scmp.ne.s32.totalorder %s1139_s6, %s1013_s15  ;;  %s1018_s22 = sshll.u32 %s1064_s21, 4  ;;  %s1019_s22 = int_to_ptr.vmem [resolvable:$false] %s1018_s22 }
  0x1b   : > { %s1020_s25 = scalar_lea.vmem %s1019_s22, 8192  ;;  %p1021_p9 = scmp.lt.s32.totalorder %s1139_s6, %s1019_s22 }
  0x1c   : > { %p1016_p10 = pnand %p1014_p6, %p1000_p11  ;;  %p1022_p0 = scmp.lt.s32.totalorder %s1020_s25, %s1013_s15 }
  0x1e   : > { %p1017_p12 = pneg %p1016_p10  ;;  %p1023_p1 = por %p1022_p0, %p1021_p9 }
  0x20   : > { %p1024_p2 = pnand %p1023_p1, %p1017_p12 }
  0x22   : > { %1027 = shalt.err (!%p1024_p2)
}
  0x23   : > { %s1065_s26 = smov 128   ;;  %s1066_s27 = smov 8  }
  0x24   : > { %958 = dma.hbm_to_vmem [thread:$0]  (!%p1141_p8), %s1137_s30, 4096, %s1139_s6, %s1146_s8, %s1065_s26, %s1065_s26, %s1066_s27  }
  0x25   : > { %p183_p11 = scmp.lt.s32.totalorder %s1062_s18, 3  ;;  %p1505_p13 = scmp.ge.s32.totalorder %s1062_s18, 1 }
  0x27   : > { %p184_p3 = pnand %p1505_p13, %p183_p11 }
  0x28   : > { %s189_s28 = sand.u32 (!%p184_p3), 1, %s1054_s16  }
  0x29   : > { %187 = sbr.rel (%p184_p3) target bundleno = 359 (0x167), region = 28  ;;  %s859_s29 = sshll.u32 (!%p184_p3), %s189_s28, 8 }
  0x2a   : > { %s190_s5 = scalar_lea.sflag (!%p184_p3), [#allocation3], %s189_s28  ;;  %s1178_s9 = scalar_lea.vmem (!%p184_p3), [#allocation2], %s859_s29 }
  0x30   : > { %1045 = dma.done.wait (%p1128_p7), %s190_s5, 4096  }
  0x31   : > { %1047 = vsyncadd (%p1128_p7), %s190_s5, 4294963200  ;;  %v994_v0 = vld [vmem:[%s1499_s1] sm:$0xff]   ;;  %v995_v1 = vld [vmem:[%s1499_s1 + $0x8] sm:$0xff]   ;;  %vm318_vm0 = vcmask 523264   ;;  %s860_s12 = sshll.u32 %s1111_s19, 5  ;;  %vm528_vm1 = vcmask 261120  }
  0x32   : > { %905 = vmatprep.subr.bf16.mxu0 %v994_v0  ;;  %945 = vmatprep.subr.bf16.mxu1 %v994_v0  ;;  %v996_v2 = vld [vmem:[%s1499_s1 + $0x10] sm:$0xff]   ;;  %v238_v3 = vld [vmem:[%s1178_s9] sm:$0xff]  ;;  %v239_v4 = vld [vmem:[%s1178_s9 + $0x8] sm:$0xff]  ;;  %p226_p7 = scmp.lt.s32.totalorder %s860_s12, 63  ;;  %p231_p8 = scmp.lt.s32.totalorder %s1111_s19, 1  ;;  %vm630_vm2 = vcmask 253952  }
  0x33   : > { %906 = vmatpush3.bf16.msra.mxu0 %v994_v0  ;;  %949 = vmatpush3.bf16.msra.mxu1 %v994_v0  ;;  %v270_v5 = vpack.c.bf16 %v239_v4, %v238_v3  ;;  %v997_v6 = vld [vmem:[%s1499_s1 + $0x18] sm:$0xff]   ;;  %v254_v7 = vld [vmem:[%s1178_s9 + $0x80] sm:$0xff]  ;;  %v255_v8 = vld [vmem:[%s1178_s9 + $0x88] sm:$0xff] }
  0x34   : > { %907 = vmatprep.subr.bf16.mxu0 %v995_v1  ;;  %946 = vmatprep.subr.bf16.mxu1 %v995_v1  ;;  %v278_v9 = vpack.c.bf16 %v255_v8, %v254_v7  ;;  %v240_v10 = vld [vmem:[%s1178_s9 + $0x10] sm:$0xff]  ;;  %v241_v11 = vld [vmem:[%s1178_s9 + $0x18] sm:$0xff]  ;;  %v242_v12 = vld [vmem:[%s1178_s9 + $0x20] sm:$0xff]  ;;  %s1511_s12 = smov (!%p226_p7, %s860_s12), 63  ;;  %s1513_s19 = smov (!%p231_p8, %s1111_s19), 1 }
  0x35   : > { %913 = vmatprep.mubr.msk.bf16.mxu0 %vm318_vm0, %v270_v5  ;;  %v243_v13 = vld [vmem:[%s1178_s9 + $0x28] sm:$0xff]  ;;  %v256_v14 = vld [vmem:[%s1178_s9 + $0x90] sm:$0xff]  ;;  %v257_v15 = vld [vmem:[%s1178_s9 + $0x98] sm:$0xff]  ;;  %v271_v18 = vpack.c.bf16 %v241_v11, %v240_v10  ;;  %s861_s13 = sshll.u32 %s1511_s12, 3  ;;  %s233_s26 = scalar_lea.vmem %s1501_s3, %s1513_s19 }
  0x36   : > { %929 = vmatprep.mubr.msk.bf16.mxu1 %vm318_vm0, %v278_v9  ;;  %v258_v16 = vld [vmem:[%s1178_s9 + $0xa0] sm:$0xff]  ;;  %v259_v17 = vld [vmem:[%s1178_s9 + $0xa8] sm:$0xff]  ;;  %v272_v19 = vpack.c.bf16 %v243_v13, %v242_v12  ;;  %v279_v20 = vpack.c.bf16 %v257_v15, %v256_v14  ;;  %v244_v22 = vld [vmem:[%s1178_s9 + $0x30] sm:$0xff]  ;;  %s1248_s21 = scalar_lea.vmem %s1500_s2, %s861_s13  ;;  %s236_s29 = scalar_lea.vmem %s1502_s4, %s1513_s19 }
  0x37   : > { %908 = vmatpush3.bf16.msra.mxu0 %v995_v1  ;;  %950 = vmatpush3.bf16.msra.mxu1 %v995_v1  ;;  %v280_v21 = vpack.c.bf16 %v259_v17, %v258_v16  ;;  %v245_v23 = vld [vmem:[%s1178_s9 + $0x38] sm:$0xff]  ;;  %v246_v24 = vld [vmem:[%s1178_s9 + $0x40] sm:$0xff]  ;;  %v247_v25 = vld [vmem:[%s1178_s9 + $0x48] sm:$0xff] }
  0x38   : > { %909 = vmatprep.subr.bf16.mxu0 %v996_v2  ;;  %947 = vmatprep.subr.bf16.mxu1 %v996_v2  ;;  %v260_v26 = vld [vmem:[%s1178_s9 + $0xb0] sm:$0xff]  ;;  %v261_v27 = vld [vmem:[%s1178_s9 + $0xb8] sm:$0xff]  ;;  %v262_v28 = vld [vmem:[%s1178_s9 + $0xc0] sm:$0xff]  ;;  %v273_v30 = vpack.c.bf16 %v245_v23, %v244_v22  ;;  %v274_v31 = vpack.c.bf16 %v247_v25, %v246_v24 }
  0x39   : > { %v263_v29 = vld [vmem:[%s1178_s9 + $0xc8] sm:$0xff]  ;;  %v281_v32 = vpack.c.bf16 %v261_v27, %v260_v26  ;;  %v248_v34 = vld [vmem:[%s1178_s9 + $0x50] sm:$0xff]  ;;  %v249_v35 = vld [vmem:[%s1178_s9 + $0x58] sm:$0xff] }
  0x3a   : > { %v282_v33 = vpack.c.bf16 %v263_v29, %v262_v28  ;;  %v250_v36 = vld [vmem:[%s1178_s9 + $0x60] sm:$0xff]  ;;  %v251_v37 = vld [vmem:[%s1178_s9 + $0x68] sm:$0xff]  ;;  %v264_v38 = vld [vmem:[%s1178_s9 + $0xd0] sm:$0xff]  ;;  %v275_v42 = vpack.c.bf16 %v249_v35, %v248_v34 }
  0x3b   : > { %910 = vmatpush3.bf16.msra.mxu0 %v996_v2  ;;  %951 = vmatpush3.bf16.msra.mxu1 %v996_v2  ;;  %v265_v39 = vld [vmem:[%s1178_s9 + $0xd8] sm:$0xff]  ;;  %v266_v40 = vld [vmem:[%s1178_s9 + $0xe0] sm:$0xff]  ;;  %v267_v41 = vld [vmem:[%s1178_s9 + $0xe8] sm:$0xff]  ;;  %v276_v43 = vpack.c.bf16 %v251_v37, %v250_v36 }
  0x3c   : > { %911 = vmatprep.subr.bf16.mxu0 %v997_v6  ;;  %948 = vmatprep.subr.bf16.mxu1 %v997_v6  ;;  %v283_v44 = vpack.c.bf16 %v265_v39, %v264_v38  ;;  %v284_v45 = vpack.c.bf16 %v267_v41, %v266_v40  ;;  %v252_v46 = vld [vmem:[%s1178_s9 + $0x70] sm:$0xff]  ;;  %v253_v47 = vld [vmem:[%s1178_s9 + $0x78] sm:$0xff] }
  0x3d   : > { %v268_v48 = vld [vmem:[%s1178_s9 + $0xf0] sm:$0xff]  ;;  %v269_v49 = vld [vmem:[%s1178_s9 + $0xf8] sm:$0xff]  ;;  %v277_v50 = vpack.c.bf16 %v253_v47, %v252_v46 }
  0x3e   : > { %v285_v51 = vpack.c.bf16 %v269_v49, %v268_v48 }
  0x3f   : > { %912 = vmatpush3.bf16.msra.mxu0 %v997_v6  ;;  %952 = vmatpush3.bf16.msra.mxu1 %v997_v6 }
  0x42   : > { %914 = vmatmul.mubr.msk.bf16.vlgmr.msra.gmra.mrb[0].mxu0 %vm318_vm0, %v271_v18  ;;  %930 = vmatmul.mubr.msk.bf16.vlgmr.msra.gmra.mrb[0].mxu1 %vm318_vm0, %v279_v20 }
  0x43   : > { %917 = vmatprep.mubr.msk.bf16.mxu0 %vm318_vm0, %v272_v19  ;;  %933 = vmatprep.mubr.msk.bf16.mxu1 %vm318_vm0, %v280_v21 }
  0x4a   : > { %918 = vmatmul.mubr.msk.bf16.gmra.mrb[4].mxu0 %vm318_vm0, %v273_v30  ;;  %934 = vmatmul.mubr.msk.bf16.gmra.mrb[4].mxu1 %vm318_vm0, %v281_v32 }
  0x4b   : > { %921 = vmatprep.mubr.msk.bf16.mxu0 %vm318_vm0, %v274_v31  ;;  %937 = vmatprep.mubr.msk.bf16.mxu1 %vm318_vm0, %v282_v33 }
  0x52   : > { %922 = vmatmul.mubr.msk.bf16.gmra.mrb[8].mxu0 %vm318_vm0, %v275_v42  ;;  %938 = vmatmul.mubr.msk.bf16.gmra.mrb[8].mxu1 %vm318_vm0, %v283_v44 }
  0x53   : > { %925 = vmatprep.mubr.msk.bf16.mxu0 %vm318_vm0, %v276_v43  ;;  %941 = vmatprep.mubr.msk.bf16.mxu1 %vm318_vm0, %v284_v45 }
  0x5a   : > { %926 = vmatmul.mubr.msk.bf16.gmra.mrb[12].mxu0 %vm318_vm0, %v277_v50  ;;  %942 = vmatmul.mubr.msk.bf16.gmra.mrb[12].mxu1 %vm318_vm0, %v285_v51 }
 0x115   : > { %v915_v52 = vpop.f32.mrb[0].mxu0  ;;  %v1252_v54 = vpop.f32.mrb[0].mxu1 }
 0x116   : > { %531 = vst.msk [vmem:[%s1248_s21 + $0x10] sm:$0xff] %vm528_vm1, %v915_v52  ;;  %v401_v53 = vpop.f32.mrb[1].mxu0  ;;  %547 = vst.msk [vmem:[%s1248_s21 + $0x90] sm:$0xff] %vm528_vm1, %v1252_v54  ;;  %v1259_v57 = vpop.f32.mrb[1].mxu1  ;;  %v634_v60 = vmul.f32 %v915_v52, %v915_v52  ;;  %v564_v2 = vsel %vm528_vm1, %v915_v52, 0.0 }
 0x117   : > { %529 = vst.msk [vmem:[%s1248_s21] sm:$0xff] %vm528_vm1, %v401_v53  ;;  %v632_v55 = vmul.f32 %v401_v53, %v401_v53  ;;  %v916_v56 = vpop.f32.mrb[2].mxu0  ;;  %545 = vst.msk [vmem:[%s1248_s21 + $0x80] sm:$0xff] %vm528_vm1, %v1259_v57  ;;  %v1266_v59 = vpop.f32.mrb[2].mxu1  ;;  %v561_v61 = vsel %vm528_vm1, %v401_v53, 0.0 }
 0x118   : > { %532 = vst.msk [vmem:[%s1248_s21 + $0x18] sm:$0xff] %vm528_vm1, %v916_v56  ;;  %v404_v58 = vpop.f32.mrb[3].mxu0  ;;  %548 = vst.msk [vmem:[%s1248_s21 + $0x98] sm:$0xff] %vm528_vm1, %v1266_v59  ;;  %v1275_v0 = vpop.f32.mrb[3].mxu1  ;;  %v635_v4 = vmul.f32 %v916_v56, %v916_v56  ;;  %v667_v8 = vsel %vm528_vm1, %v634_v60, 0.0  ;;  %v566_v9 = vsel %vm528_vm1, %v916_v56, 0.0 }
 0x119   : > { %530 = vst.msk [vmem:[%s1248_s21 + $0x8] sm:$0xff] %vm528_vm1, %v404_v58  ;;  %v562_v62 = vsel %vm528_vm1, %v404_v58, 0.0  ;;  %v633_v63 = vmul.f32 %v404_v58, %v404_v58  ;;  %546 = vst.msk [vmem:[%s1248_s21 + $0x88] sm:$0xff] %vm528_vm1, %v1275_v0  ;;  %v664_v3 = vsel %vm528_vm1, %v632_v55, 0.0 }
 0x11a   : > { %v563_v1 = vadd.f32 %v562_v62, %v561_v61  ;;  %v669_v15 = vsel %vm528_vm1, %v635_v4, 0.0 }
 0x11b   : > { %v665_v5 = vsel %vm528_vm1, %v633_v63, 0.0 }
 0x11c   : > { %v565_v6 = vadd.f32 %v564_v2, %v563_v1  ;;  %v666_v7 = vadd.f32 %v665_v5, %v664_v3 }
 0x11d   : > { %v919_v10 = vpop.f32.mrb[4].mxu0  ;;  %v1287_v14 = vpop.f32.mrb[4].mxu1 }
 0x11e   : > { %v668_v11 = vadd.f32 %v667_v8, %v666_v7  ;;  %535 = vst.msk [vmem:[%s1248_s21 + $0x30] sm:$0xff] %vm528_vm1, %v919_v10  ;;  %v417_v12 = vpop.f32.mrb[5].mxu0  ;;  %v567_v13 = vadd.f32 %v566_v9, %v565_v6  ;;  %551 = vst.msk [vmem:[%s1248_s21 + $0xb0] sm:$0xff] %vm528_vm1, %v1287_v14  ;;  %v1296_v19 = vpop.f32.mrb[5].mxu1  ;;  %v638_v24 = vmul.f32 %v919_v10, %v919_v10  ;;  %v572_v31 = vsel %vm528_vm1, %v919_v10, 0.0 }
 0x11f   : > { %533 = vst.msk [vmem:[%s1248_s21 + $0x20] sm:$0xff] %vm528_vm1, %v417_v12  ;;  %v568_v16 = vsel %vm528_vm1, %v417_v12, 0.0  ;;  %v636_v17 = vmul.f32 %v417_v12, %v417_v12  ;;  %v920_v18 = vpop.f32.mrb[6].mxu0  ;;  %549 = vst.msk [vmem:[%s1248_s21 + $0xa0] sm:$0xff] %vm528_vm1, %v1296_v19  ;;  %v1303_v23 = vpop.f32.mrb[6].mxu1 }
 0x120   : > { %v569_v20 = vadd.f32 %v568_v16, %v567_v13  ;;  %v670_v21 = vadd.f32 %v669_v15, %v668_v11  ;;  %536 = vst.msk [vmem:[%s1248_s21 + $0x38] sm:$0xff] %vm528_vm1, %v920_v18  ;;  %v420_v22 = vpop.f32.mrb[7].mxu0  ;;  %552 = vst.msk [vmem:[%s1248_s21 + $0xb8] sm:$0xff] %vm528_vm1, %v1303_v23  ;;  %v1312_v28 = vpop.f32.mrb[7].mxu1  ;;  %v639_v32 = vmul.f32 %v920_v18, %v920_v18  ;;  %v675_v36 = vsel %vm528_vm1, %v638_v24, 0.0 }
 0x121   : > { %v671_v25 = vsel %vm528_vm1, %v636_v17, 0.0  ;;  %534 = vst.msk [vmem:[%s1248_s21 + $0x28] sm:$0xff] %vm528_vm1, %v420_v22  ;;  %v570_v26 = vsel %vm528_vm1, %v420_v22, 0.0  ;;  %v637_v27 = vmul.f32 %v420_v22, %v420_v22  ;;  %550 = vst.msk [vmem:[%s1248_s21 + $0xa8] sm:$0xff] %vm528_vm1, %v1312_v28  ;;  %v574_v37 = vsel %vm528_vm1, %v920_v18, 0.0 }
 0x122   : > { %v672_v29 = vadd.f32 %v671_v25, %v670_v21  ;;  %v571_v30 = vadd.f32 %v570_v26, %v569_v20  ;;  %v677_v43 = vsel %vm528_vm1, %v639_v32, 0.0 }
 0x123   : > { %v673_v33 = vsel %vm528_vm1, %v637_v27, 0.0 }
 0x124   : > { %v573_v34 = vadd.f32 %v572_v31, %v571_v30  ;;  %v674_v35 = vadd.f32 %v673_v33, %v672_v29 }
 0x125   : > { %v923_v38 = vpop.f32.mrb[8].mxu0  ;;  %v1323_v42 = vpop.f32.mrb[8].mxu1 }
 0x126   : > { %v676_v39 = vadd.f32 %v675_v36, %v674_v35  ;;  %539 = vst.msk [vmem:[%s1248_s21 + $0x50] sm:$0xff] %vm528_vm1, %v923_v38  ;;  %v433_v40 = vpop.f32.mrb[9].mxu0  ;;  %v575_v41 = vadd.f32 %v574_v37, %v573_v34  ;;  %555 = vst.msk [vmem:[%s1248_s21 + $0xd0] sm:$0xff] %vm528_vm1, %v1323_v42  ;;  %v1332_v47 = vpop.f32.mrb[9].mxu1  ;;  %v642_v52 = vmul.f32 %v923_v38, %v923_v38  ;;  %v580_v62 = vsel %vm528_vm1, %v923_v38, 0.0 }
 0x127   : > { %537 = vst.msk [vmem:[%s1248_s21 + $0x40] sm:$0xff] %vm528_vm1, %v433_v40  ;;  %v576_v44 = vsel %vm528_vm1, %v433_v40, 0.0  ;;  %v640_v45 = vmul.f32 %v433_v40, %v433_v40  ;;  %v924_v46 = vpop.f32.mrb[10].mxu0  ;;  %553 = vst.msk [vmem:[%s1248_s21 + $0xc0] sm:$0xff] %vm528_vm1, %v1332_v47  ;;  %v1339_v51 = vpop.f32.mrb[10].mxu1  ;;  %v648_v34 = vmul.f32 %v1259_v57, %v1259_v57 }
 0x128   : > { %v577_v48 = vadd.f32 %v576_v44, %v575_v41  ;;  %v678_v49 = vadd.f32 %v677_v43, %v676_v39  ;;  %540 = vst.msk [vmem:[%s1248_s21 + $0x58] sm:$0xff] %vm528_vm1, %v924_v46  ;;  %v436_v50 = vpop.f32.mrb[11].mxu0  ;;  %556 = vst.msk [vmem:[%s1248_s21 + $0xd8] sm:$0xff] %vm528_vm1, %v1339_v51  ;;  %v1348_v58 = vpop.f32.mrb[11].mxu1  ;;  %v643_v63 = vmul.f32 %v924_v46, %v924_v46  ;;  %v683_v4 = vsel %vm528_vm1, %v642_v52, 0.0 }
 0x129   : > { %v679_v53 = vsel %vm528_vm1, %v640_v45, 0.0  ;;  %538 = vst.msk [vmem:[%s1248_s21 + $0x48] sm:$0xff] %vm528_vm1, %v436_v50  ;;  %v578_v55 = vsel %vm528_vm1, %v436_v50, 0.0  ;;  %v641_v56 = vmul.f32 %v436_v50, %v436_v50  ;;  %554 = vst.msk [vmem:[%s1248_s21 + $0xc8] sm:$0xff] %vm528_vm1, %v1348_v58  ;;  %v582_v5 = vsel %vm528_vm1, %v924_v46, 0.0 }
 0x12a   : > { %v680_v60 = vadd.f32 %v679_v53, %v678_v49  ;;  %v579_v61 = vadd.f32 %v578_v55, %v577_v48  ;;  %v685_v11 = vsel %vm528_vm1, %v643_v63, 0.0  ;;  %v592_v39 = vsel %vm528_vm1, %v1259_v57, 0.0 }
 0x12b   : > { %v681_v1 = vsel %vm528_vm1, %v641_v56, 0.0  ;;  %v695_v45 = vsel %vm528_vm1, %v648_v34, 0.0  ;;  %v649_v46 = vmul.f32 %v1275_v0, %v1275_v0  ;;  %v650_v57 = vmul.f32 %v1252_v54, %v1252_v54 }
 0x12c   : > { %v581_v2 = vadd.f32 %v580_v62, %v579_v61  ;;  %v682_v3 = vadd.f32 %v681_v1, %v680_v60  ;;  %v594_v52 = vsel %vm528_vm1, %v1275_v0, 0.0  ;;  %v596_v56 = vsel %vm528_vm1, %v1252_v54, 0.0 }
 0x12d   : > { %v927_v6 = vpop.f32.mrb[12].mxu0  ;;  %v1359_v10 = vpop.f32.mrb[12].mxu1  ;;  %v651_v60 = vmul.f32 %v1266_v59, %v1266_v59  ;;  %v697_v61 = vsel %vm528_vm1, %v649_v46, 0.0  ;;  %v652_v62 = vmul.f32 %v1296_v19, %v1296_v19  ;;  %v598_v0 = vsel %vm528_vm1, %v1266_v59, 0.0 }
 0x12e   : > { %v684_v7 = vadd.f32 %v683_v4, %v682_v3  ;;  %543 = vst.msk [vmem:[%s1248_s21 + $0x70] sm:$0xff] %vm528_vm1, %v927_v6  ;;  %v449_v8 = vpop.f32.mrb[13].mxu0  ;;  %v583_v9 = vadd.f32 %v582_v5, %v581_v2  ;;  %559 = vst.msk [vmem:[%s1248_s21 + $0xf0] sm:$0xff] %vm528_vm1, %v1359_v10  ;;  %v1368_v16 = vpop.f32.mrb[13].mxu1  ;;  %v646_v22 = vmul.f32 %v927_v6, %v927_v6  ;;  %v588_v31 = vsel %vm528_vm1, %v927_v6, 0.0 }
 0x12f   : > { %541 = vst.msk [vmem:[%s1248_s21 + $0x60] sm:$0xff] %vm528_vm1, %v449_v8  ;;  %v584_v12 = vsel %vm528_vm1, %v449_v8, 0.0  ;;  %v644_v13 = vmul.f32 %v449_v8, %v449_v8  ;;  %v928_v15 = vpop.f32.mrb[14].mxu0  ;;  %557 = vst.msk [vmem:[%s1248_s21 + $0xe0] sm:$0xff] %vm528_vm1, %v1368_v16  ;;  %v1375_v21 = vpop.f32.mrb[14].mxu1  ;;  %v699_v2 = vsel %vm528_vm1, %v650_v57, 0.0  ;;  %v658_v34 = vmul.f32 %v1323_v42, %v1323_v42 }
 0x130   : > { %v585_v17 = vadd.f32 %v584_v12, %v583_v9  ;;  %v686_v18 = vadd.f32 %v685_v11, %v684_v7  ;;  %544 = vst.msk [vmem:[%s1248_s21 + $0x78] sm:$0xff] %vm528_vm1, %v928_v15  ;;  %v452_v20 = vpop.f32.mrb[15].mxu0  ;;  %560 = vst.msk [vmem:[%s1248_s21 + $0xf8] sm:$0xff] %vm528_vm1, %v1375_v21  ;;  %v1384_v27 = vpop.f32.mrb[15].mxu1  ;;  %v647_v32 = vmul.f32 %v928_v15, %v928_v15  ;;  %v691_v37 = vsel %vm528_vm1, %v646_v22, 0.0 }
 0x131   : > { %v687_v24 = vsel %vm528_vm1, %v644_v13, 0.0  ;;  %542 = vst.msk [vmem:[%s1248_s21 + $0x68] sm:$0xff] %vm528_vm1, %v452_v20  ;;  %v586_v25 = vsel %vm528_vm1, %v452_v20, 0.0  ;;  %v645_v26 = vmul.f32 %v452_v20, %v452_v20  ;;  %558 = vst.msk [vmem:[%s1248_s21 + $0xe8] sm:$0xff] %vm528_vm1, %v1384_v27  ;;  %v590_v38 = vsel %vm528_vm1, %v928_v15, 0.0 }
 0x132   : > { %v688_v29 = vadd.f32 %v687_v24, %v686_v18  ;;  %v587_v30 = vadd.f32 %v586_v25, %v585_v17  ;;  %v663_v40 = vmul.f32 %v1375_v21, %v1375_v21  ;;  %v693_v44 = vsel %vm528_vm1, %v647_v32, 0.0 }
 0x133   : > { %v689_v33 = vsel %vm528_vm1, %v645_v26, 0.0  ;;  %v600_v3 = vsel %vm528_vm1, %v1296_v19, 0.0  ;;  %v701_v5 = vsel %vm528_vm1, %v651_v60, 0.0  ;;  %v703_v6 = vsel %vm528_vm1, %v652_v62, 0.0 }
 0x134   : > { %v589_v35 = vadd.f32 %v588_v31, %v587_v30  ;;  %v690_v36 = vadd.f32 %v689_v33, %v688_v29  ;;  %v1404_v48 = vsel %vm528_vm1, %v663_v40, 0.0  ;;  %v653_v7 = vmul.f32 %v1312_v28, %v1312_v28 }
 0x135   : > { %v654_v11 = vmul.f32 %v1287_v14, %v1287_v14  ;;  %v602_v59 = vsel %vm528_vm1, %v1312_v28, 0.0  ;;  %v604_v19 = vsel %vm528_vm1, %v1287_v14, 0.0  ;;  %v655_v15 = vmul.f32 %v1303_v23, %v1303_v23 }
 0x136   : > { %v692_v41 = vadd.f32 %v691_v37, %v690_v36  ;;  %v591_v43 = vadd.f32 %v590_v38, %v589_v35  ;;  %v705_v17 = vsel %vm528_vm1, %v653_v7, 0.0  ;;  %v656_v18 = vmul.f32 %v1332_v47, %v1332_v47 }
 0x137   : > { %v707_v24 = vsel %vm528_vm1, %v654_v11, 0.0  ;;  %v606_v28 = vsel %vm528_vm1, %v1303_v23, 0.0  ;;  %v608_v25 = vsel %vm528_vm1, %v1332_v47, 0.0  ;;  %v709_v29 = vsel %vm528_vm1, %v655_v15, 0.0 }
 0x138   : > { %v593_v49 = vadd.f32 %v592_v39, %v591_v43  ;;  %v694_v50 = vadd.f32 %v693_v44, %v692_v41  ;;  %v711_v30 = vsel %vm528_vm1, %v656_v18, 0.0  ;;  %v657_v31 = vmul.f32 %v1348_v58, %v1348_v58 }
 0x139   : > { %v610_v23 = vsel %vm528_vm1, %v1348_v58, 0.0  ;;  %v612_v47 = vsel %vm528_vm1, %v1323_v42, 0.0  ;;  %v659_v37 = vmul.f32 %v1339_v51, %v1339_v51  ;;  %v660_v39 = vmul.f32 %v1368_v16, %v1368_v16 }
 0x13a   : > { %v696_v53 = vadd.f32 %v695_v45, %v694_v50  ;;  %v595_v55 = vadd.f32 %v594_v52, %v593_v49  ;;  %v713_v38 = vsel %vm528_vm1, %v657_v31, 0.0  ;;  %v715_v43 = vsel %vm528_vm1, %v658_v34, 0.0 }
 0x13b   : > { %v614_v58 = vsel %vm528_vm1, %v1339_v51, 0.0  ;;  %v616_v44 = vsel %vm528_vm1, %v1368_v16, 0.0  ;;  %v717_v46 = vsel %vm528_vm1, %v659_v37, 0.0  ;;  %v719_v49 = vsel %vm528_vm1, %v660_v39, 0.0 }
 0x13c   : > { %v597_v63 = vadd.f32 %v596_v56, %v595_v55  ;;  %v698_v1 = vadd.f32 %v697_v61, %v696_v53  ;;  %v661_v50 = vmul.f32 %v1384_v27, %v1384_v27  ;;  %v662_v53 = vmul.f32 %v1359_v10, %v1359_v10 }
 0x13d   : > { %v618_v51 = vsel %vm528_vm1, %v1384_v27, 0.0  ;;  %v620_v56 = vsel %vm528_vm1, %v1359_v10, 0.0 }
 0x13e   : > { %v700_v4 = vadd.f32 %v699_v2, %v698_v1  ;;  %v599_v54 = vadd.f32 %v598_v0, %v597_v63  ;;  %v721_v60 = vsel %vm528_vm1, %v661_v50, 0.0  ;;  %v723_v63 = vsel %vm528_vm1, %v662_v53, 0.0 }
 0x13f   : > { %v622_v1 = vsel %vm528_vm1, %v1375_v21, 0.0 }
 0x140   : > { %v601_v8 = vadd.f32 %v600_v3, %v599_v54  ;;  %v702_v9 = vadd.f32 %v701_v5, %v700_v4 }
 0x142   : > { %v704_v12 = vadd.f32 %v703_v6, %v702_v9  ;;  %v603_v13 = vadd.f32 %v602_v59, %v601_v8 }
 0x144   : > { %v605_v20 = vadd.f32 %v604_v19, %v603_v13  ;;  %v706_v22 = vadd.f32 %v705_v17, %v704_v12 }
 0x146   : > { %v708_v26 = vadd.f32 %v707_v24, %v706_v22  ;;  %v607_v14 = vadd.f32 %v606_v28, %v605_v20 }
 0x148   : > { %v609_v32 = vadd.f32 %v608_v25, %v607_v14  ;;  %v710_v33 = vadd.f32 %v709_v29, %v708_v26 }
 0x14a   : > { %v712_v35 = vadd.f32 %v711_v30, %v710_v33  ;;  %v611_v36 = vadd.f32 %v610_v23, %v609_v32 }
 0x14c   : > { %v613_v40 = vadd.f32 %v612_v47, %v611_v36  ;;  %v714_v41 = vadd.f32 %v713_v38, %v712_v35 }
 0x14e   : > { %v716_v45 = vadd.f32 %v715_v43, %v714_v41  ;;  %v615_v42 = vadd.f32 %v614_v58, %v613_v40 }
 0x150   : > { %v617_v57 = vadd.f32 %v616_v44, %v615_v42  ;;  %v718_v52 = vadd.f32 %v717_v46, %v716_v45 }
 0x152   : > { %v720_v55 = vadd.f32 %v719_v49, %v718_v52  ;;  %v619_v16 = vadd.f32 %v618_v51, %v617_v57 }
 0x154   : > { %v621_v61 = vadd.f32 %v620_v56, %v619_v16  ;;  %v722_v62 = vadd.f32 %v721_v60, %v720_v55 }
 0x156   : > { %v623_v2 = vadd.f32 %v622_v1, %v621_v61  ;;  %v724_v0 = vadd.f32 %v723_v63, %v722_v62 }
 0x158   : > { %v624_v3 = vrot.slane %v623_v2, 4  ;;  %v726_v27 = vadd.f32 %v1404_v48, %v724_v0 }
 0x15a   : > { %v625_v4 = vadd.f32 %v624_v3, %v623_v2  ;;  %v727_v54 = vrot.slane %v726_v27, 4 }
 0x15c   : > { %v626_v5 = vrot.slane %v625_v4, 2  ;;  %v728_v6 = vadd.f32 %v727_v54, %v726_v27 }
 0x15e   : > { %v627_v10 = vadd.f32 %v626_v5, %v625_v4  ;;  %v729_v7 = vrot.slane %v728_v6, 2 }
 0x160   : > { %v628_v8 = vrot.slane %v627_v10, 1  ;;  %v730_v9 = vadd.f32 %v729_v7, %v728_v6 }
 0x162   : > { %v629_v21 = vadd.f32 %v628_v8, %v627_v10  ;;  %v731_v11 = vrot.slane %v730_v9, 1 }
 0x164   : > { %631 = vst.msk [vmem:[%s233_s26] sm:$0x1] %vm630_vm2, %v629_v21  ;;  %v732_v48 = vadd.f32 %v731_v11, %v730_v9 }
 0x166   : > { %733 = vst.msk [vmem:[%s236_s29] sm:$0x1] %vm630_vm2, %v732_v48 }
 0x167 PF: > { %p15_p9 = scmp.ge.s32.totalorder %s1114_s20, 4   ;;  %s1506_s15 = smov %s1054_s16 }
 0x168   : > { %s1507_s16 = smov %s1058_s17  ;;  %s1508_s17 = smov %s1124_s23 }
 0x169   : > { %s1509_s18 = smov %s1114_s20  ;;  %17 = sbr.rel (!%p15_p9) target bundleno = 3 (0x3), region = 92 }
 0x170   :  { %780 = vsyncpa [#allocation3], 1 }
 0x171   :  { %782 = vsyncpa [#allocation3 + $0x1], 1 }

// kernel: residual_unit_nhwc.5
= control target key start
LH: loop header
LB: loop body
LE: loop exit
PB: predicated region body
PF: predicated region fallthrough
CT: control target
= control target key end

     0   :  { %9 = vsyncpa [#allocation3], 0  ;;  %s1087_s0 = inlined_call_operand.vmem [shape: f32[512,64], index: 0, kind: input, shape index: {}]   ;;  %s1088_s1 = inlined_call_operand.vmem [shape: f32[512,64], index: 1, kind: input, shape index: {}]   ;;  %s1089_s2 = inlined_call_operand.vmem [shape: f32[1,64], index: 2, kind: input, shape index: {}]   ;;  %s1090_s3 = inlined_call_operand.vmem [shape: f32[1,64], index: 3, kind: input, shape index: {}]   ;;  %s1091_s4 = inlined_call_operand.hbm [shape: f32[512,64], index: 4, kind: output, shape index: {}]  }
   0x1   :  { %11 = vsyncpa [#allocation3 + $0x1], 0  ;;  %s762_s15 = smov 0   ;;  %s764_s16 = smov 0  }
   0x2   :  { %s766_s17 = smov 0   ;;  %s768_s18 = smov 0  }
   0x3 LB: > { %s783_s19 = sadd.s32 4294967295, %s732_s18   ;;  %s612_s20 = sadd.s32 4294967294, %s732_s18   ;;  %s732_s18 = sphi %s768_s18, %s1097_s18   ;;  %s728_s17 = sphi %s766_s17, %s1096_s17   ;;  %s724_s16 = sphi %s764_s16, %s1095_s16   ;;  %s720_s15 = sphi %s762_s15, %s1094_s15  }
   0x4   : > { %s787_s21 = sadd.s32 1, %s732_s18   ;;  %s118_s22 = sadd.s32 1, %s728_s17 }
   0x5   : > { %s115_s23 = ssub.s32 %s732_s18, %s787_s21  ;;  %p128_p0 = scmp.ne.s32.totalorder %s728_s17, %s724_s16 }
   0x6   : > { %p116_p1 = scmp.eq.s32.totalorder %s115_s23, 0  ;;  %p129_p2 = scmp.eq.s32.totalorder %s783_s19, 1 }
   0x7   : > { %p134_p3 = scmp.ne.s32.totalorder %s724_s16, %s720_s15  ;;  %p135_p4 = scmp.eq.s32.totalorder %s612_s20, 1 }
   0x8   : > { %s798_s24 = scalar_select %p116_p1, %s728_s17, %s118_s22  }
   0x9   : > { %p800_p5 = por %p129_p2, %p128_p0  ;;  %p804_p6 = por %p135_p4, %p134_p3 }
   0xa   : > { %p615_p7 = scmp.ge.s32.totalorder %s732_s18, 1  ;;  %p177_p8 = scmp.lt.s32.totalorder %s732_s18, 3 }
   0xc   : > { %p178_p9 = pnand %p615_p7, %p177_p8 }
   0xd   : > { %s617_s27 = sshll.u32 (!%p178_p9), %s783_s19, 5  ;;  %v814_v0 = vld [vmem:[%s1089_s2] ss:$0 sm:$0xff] (!%p178_p9)  ;;  %s205_s10 = sand.u32 (!%p178_p9), 1, %s724_s16   ;;  %vm491_vm0 = vcmask (!%p178_p9), 523264  }
   0xe   : > { %181 = sbr.rel (%p178_p9) target bundleno = 94 (0x5e), region = 36  ;;  %p209_p10 = scmp.lt.s32.totalorder (!%p178_p9), %s617_s27, 63  ;;  %v825_v2 = vld [vmem:[%s1090_s3] ss:$0 sm:$0xff] (!%p178_p9) }
   0xf   : > { %s847_s14 = sshll.u32 (!%p178_p9), %s205_s10, 8  ;;  %s628_s22 = sshll.u32 (!%p178_p9), %s783_s19, 12 }
  0x10   : > { %s865_s20 = scalar_lea.vmem (!%p178_p9), [#allocation2], %s847_s14  ;;  %s1038_s29 = scalar_lea.hbm (!%p178_p9), %s1091_s4, %s628_s22 }
  0x11   : > { %s538_s23 = sshll.u32 (!%p178_p9), %s865_s20, 4  ;;  %s1046_s19 = scalar_lea.sflag (!%p178_p9), [#allocation3], %s205_s10  ;;  %s1040_s23 = int_to_ptr.vmem [resolvable:$true] %s538_s23 }
  0x12   : > { %s670_s30 = scalar_lea.vmem (!%p178_p9), %s1040_s23, 4096  ;;  %s734_s5 = smov (!%p178_p9), [#allocation2]  }
  0x13   : > { %p671_p11 = scmp.ne.s32.totalorder (!%p178_p9), %s1040_s23, %s670_s30  ;;  %s674_s6 = sshll.u32 (!%p178_p9), %s734_s5, 4  ;;  %s675_s6 = int_to_ptr.vmem [resolvable:$false] %s674_s6 }
  0x14   : > { %p677_p0 = scmp.lt.s32.totalorder (!%p178_p9), %s1040_s23, %s675_s6 }
  0x15   : > { %s1099_s27 = smov (!%p209_p10, %s617_s27), 63  ;;  %p672_p12 = pnand %p671_p11, %p800_p5 }
  0x16   : > { %s618_s28 = sshll.u32 %s1099_s27, 3 }
  0x17   : > { %s819_s7 = scalar_lea.vmem %s1088_s1, %s618_s28  ;;  %s832_s13 = scalar_lea.vmem %s1087_s0, %s618_s28 }
  0x18   : > { %v221_v1 = vld [vmem:[%s819_s7] sm:$0xff]  ;;  %v222_v3 = vld [vmem:[%s819_s7 + $0x8] sm:$0xff]  ;;  %v223_v6 = vld [vmem:[%s819_s7 + $0x10] sm:$0xff]  ;;  %p673_p13 = pneg %p672_p12 }
  0x19   : > { %v260_v4 = vmul.f32 %v814_v0, %v221_v1  ;;  %v261_v5 = vmul.f32 %v814_v0, %v222_v3  ;;  %v262_v7 = vmul.f32 %v814_v0, %v223_v6  ;;  %v224_v8 = vld [vmem:[%s819_s7 + $0x18] sm:$0xff]  ;;  %v225_v9 = vld [vmem:[%s819_s7 + $0x20] sm:$0xff]  ;;  %v226_v14 = vld [vmem:[%s819_s7 + $0x28] sm:$0xff] }
  0x1a   : > { %v263_v12 = vmul.f32 %v814_v0, %v224_v8  ;;  %v264_v13 = vmul.f32 %v814_v0, %v225_v9  ;;  %v427_v15 = vld [vmem:[%s832_s13] sm:$0xff]  ;;  %v428_v16 = vld [vmem:[%s832_s13 + $0x8] sm:$0xff]  ;;  %v265_v18 = vmul.f32 %v814_v0, %v226_v14  ;;  %v227_v19 = vld [vmem:[%s819_s7 + $0x30] sm:$0xff] }
  0x1b   : > { %v299_v10 = vadd.f32 %v825_v2, %v260_v4  ;;  %v300_v11 = vadd.f32 %v825_v2, %v261_v5  ;;  %v301_v17 = vadd.f32 %v825_v2, %v262_v7  ;;  %v429_v23 = vld [vmem:[%s832_s13 + $0x10] sm:$0xff]  ;;  %v266_v29 = vmul.f32 %v814_v0, %v227_v19  ;;  %v228_v30 = vld [vmem:[%s819_s7 + $0x38] sm:$0xff]  ;;  %v229_v35 = vld [vmem:[%s819_s7 + $0x40] sm:$0xff] }
  0x1c   : > { %v302_v24 = vadd.f32 %v825_v2, %v263_v12  ;;  %v303_v25 = vadd.f32 %v825_v2, %v264_v13  ;;  %v304_v28 = vadd.f32 %v825_v2, %v265_v18  ;;  %v430_v34 = vld [vmem:[%s832_s13 + $0x18] sm:$0xff]  ;;  %v230_v36 = vld [vmem:[%s819_s7 + $0x48] sm:$0xff]  ;;  %v431_v40 = vld [vmem:[%s832_s13 + $0x20] sm:$0xff]  ;;  %v267_v44 = vmul.f32 %v814_v0, %v228_v30 }
  0x1d   : > { %vm331_vm1 = vcmp.gt.f32.partialorder %v299_v10, 0.0  ;;  %v363_v20 = vmul.f32 0.1, %v299_v10  ;;  %vm332_vm2 = vcmp.gt.f32.partialorder %v300_v11, 0.0  ;;  %v364_v21 = vmul.f32 0.1, %v300_v11 }
  0x1e   : > { %vm333_vm3 = vcmp.gt.f32.partialorder %v301_v17, 0.0  ;;  %v365_v22 = vmul.f32 0.1, %v301_v17  ;;  %vm334_vm4 = vcmp.gt.f32.partialorder %v302_v24, 0.0  ;;  %v366_v38 = vmul.f32 0.1, %v302_v24 }
  0x1f   : > { %v395_v26 = vsel %vm331_vm1, %v299_v10, %v363_v20  ;;  %v396_v27 = vsel %vm332_vm2, %v300_v11, %v364_v21  ;;  %vm335_vm5 = vcmp.gt.f32.partialorder %v303_v25, 0.0  ;;  %v367_v39 = vmul.f32 0.1, %v303_v25  ;;  %v432_v42 = vld [vmem:[%s832_s13 + $0x28] sm:$0xff]  ;;  %v231_v49 = vld [vmem:[%s819_s7 + $0x50] sm:$0xff]  ;;  %v232_v50 = vld [vmem:[%s819_s7 + $0x58] sm:$0xff] }
  0x20   : > { %v459_v31 = vadd.f32 %v427_v15, %v395_v26  ;;  %v460_v32 = vadd.f32 %v428_v16, %v396_v27  ;;  %v397_v33 = vsel %vm333_vm3, %v301_v17, %v365_v22  ;;  %vm336_vm6 = vcmp.gt.f32.partialorder %v304_v28, 0.0  ;;  %v233_v51 = vld [vmem:[%s819_s7 + $0x60] sm:$0xff]  ;;  %v433_v57 = vld [vmem:[%s832_s13 + $0x30] sm:$0xff]  ;;  %v434_v60 = vld [vmem:[%s832_s13 + $0x38] sm:$0xff] }
  0x21   : > { %v461_v37 = vadd.f32 %v429_v23, %v397_v33  ;;  %v368_v41 = vmul.f32 0.1, %v304_v28  ;;  %v305_v43 = vadd.f32 %v825_v2, %v266_v29  ;;  %v398_v45 = vsel %vm334_vm4, %v302_v24, %v366_v38  ;;  %v435_v5 = vld [vmem:[%s832_s13 + $0x40] sm:$0xff]  ;;  %v234_v6 = vld [vmem:[%s819_s7 + $0x68] sm:$0xff]  ;;  %v437_v18 = vld [vmem:[%s832_s13 + $0x50] sm:$0xff] }
  0x22   : > { %492 = vst.msk [vmem:[%s865_s20] sm:$0xff] %vm491_vm0, %v459_v31  ;;  %493 = vst.msk [vmem:[%s865_s20 + $0x8] sm:$0xff] %vm491_vm0, %v460_v32  ;;  %v399_v46 = vsel %vm335_vm5, %v303_v25, %v367_v39  ;;  %v268_v47 = vmul.f32 %v814_v0, %v229_v35  ;;  %v269_v48 = vmul.f32 %v814_v0, %v230_v36  ;;  %v436_v10 = vld [vmem:[%s832_s13 + $0x48] sm:$0xff]  ;;  %v235_v20 = vld [vmem:[%s819_s7 + $0x70] sm:$0xff] }
  0x23   : > { %494 = vst.msk [vmem:[%s865_s20 + $0x10] sm:$0xff] %vm491_vm0, %v461_v37  ;;  %v462_v52 = vadd.f32 %v430_v34, %v398_v45  ;;  %v463_v53 = vadd.f32 %v431_v40, %v399_v46  ;;  %v400_v54 = vsel %vm336_vm6, %v304_v28, %v368_v41  ;;  %vm337_vm7 = vcmp.gt.f32.partialorder %v305_v43, 0.0  ;;  %v236_v21 = vld [vmem:[%s819_s7 + $0x78] sm:$0xff]  ;;  %v439_v26 = vld [vmem:[%s832_s13 + $0x60] sm:$0xff]  ;;  %v238_v34 = vld [vmem:[%s819_s7 + $0x88] sm:$0xff] }
  0x24   : > { %v464_v55 = vadd.f32 %v432_v42, %v400_v54  ;;  %v369_v56 = vmul.f32 0.1, %v305_v43  ;;  %v306_v58 = vadd.f32 %v825_v2, %v267_v44  ;;  %v307_v59 = vadd.f32 %v825_v2, %v268_v47  ;;  %v438_v25 = vld [vmem:[%s832_s13 + $0x58] sm:$0xff]  ;;  %v237_v27 = vld [vmem:[%s819_s7 + $0x80] sm:$0xff]  ;;  %v239_v39 = vld [vmem:[%s819_s7 + $0x90] sm:$0xff] }
  0x25   : > { %495 = vst.msk [vmem:[%s865_s20 + $0x18] sm:$0xff] %vm491_vm0, %v462_v52  ;;  %496 = vst.msk [vmem:[%s865_s20 + $0x20] sm:$0xff] %vm491_vm0, %v463_v53  ;;  %v308_v61 = vadd.f32 %v825_v2, %v269_v48  ;;  %v270_v62 = vmul.f32 %v814_v0, %v231_v49  ;;  %v271_v63 = vmul.f32 %v814_v0, %v232_v50  ;;  %v240_v40 = vld [vmem:[%s819_s7 + $0x98] sm:$0xff]  ;;  %v241_v41 = vld [vmem:[%s819_s7 + $0xa0] sm:$0xff] }
  0x26   : > { %v272_v1 = vmul.f32 %v814_v0, %v233_v51  ;;  %497 = vst.msk [vmem:[%s865_s20 + $0x28] sm:$0xff] %vm491_vm0, %v464_v55  ;;  %v401_v3 = vsel %vm337_vm7, %v305_v43, %v369_v56  ;;  %vm338_vm8 = vcmp.gt.f32.partialorder %v306_v58, 0.0  ;;  %v370_v4 = vmul.f32 0.1, %v306_v58  ;;  %v440_v45 = vld [vmem:[%s832_s13 + $0x68] sm:$0xff]  ;;  %v441_v56 = vld [vmem:[%s832_s13 + $0x70] sm:$0xff] }
  0x27   : > { %vm339_vm9 = vcmp.gt.f32.partialorder %v307_v59, 0.0  ;;  %v465_v7 = vadd.f32 %v433_v57, %v401_v3  ;;  %v371_v8 = vmul.f32 0.1, %v307_v59  ;;  %vm340_vm10 = vcmp.gt.f32.partialorder %v308_v61, 0.0  ;;  %v442_v57 = vld [vmem:[%s832_s13 + $0x78] sm:$0xff] }
  0x28   : > { %v372_v9 = vmul.f32 0.1, %v308_v61  ;;  %v402_v11 = vsel %vm338_vm8, %v306_v58, %v370_v4  ;;  %v309_v12 = vadd.f32 %v825_v2, %v270_v62  ;;  %v310_v13 = vadd.f32 %v825_v2, %v271_v63 }
  0x29   : > { %v311_v14 = vadd.f32 %v825_v2, %v272_v1  ;;  %498 = vst.msk [vmem:[%s865_s20 + $0x30] sm:$0xff] %vm491_vm0, %v465_v7  ;;  %v466_v15 = vadd.f32 %v434_v60, %v402_v11  ;;  %v403_v16 = vsel %vm339_vm9, %v307_v59, %v371_v8  ;;  %v273_v19 = vmul.f32 %v814_v0, %v234_v6  ;;  %v443_v60 = vld [vmem:[%s832_s13 + $0x80] sm:$0xff]  ;;  %v444_v7 = vld [vmem:[%s832_s13 + $0x88] sm:$0xff] }
  0x2a   : > { %v404_v17 = vsel %vm340_vm10, %v308_v61, %v372_v9  ;;  %v467_v22 = vadd.f32 %v435_v5, %v403_v16  ;;  %vm341_vm11 = vcmp.gt.f32.partialorder %v309_v12, 0.0  ;;  %v373_v24 = vmul.f32 0.1, %v309_v12  ;;  %v242_v8 = vld [vmem:[%s819_s7 + $0xa8] sm:$0xff]  ;;  %v243_v9 = vld [vmem:[%s819_s7 + $0xb0] sm:$0xff] }
  0x2b   : > { %v468_v23 = vadd.f32 %v436_v10, %v404_v17  ;;  %499 = vst.msk [vmem:[%s865_s20 + $0x38] sm:$0xff] %vm491_vm0, %v466_v15  ;;  %vm342_vm12 = vcmp.gt.f32.partialorder %v310_v13, 0.0  ;;  %v374_v28 = vmul.f32 0.1, %v310_v13  ;;  %vm343_vm13 = vcmp.gt.f32.partialorder %v311_v14, 0.0  ;;  %v244_v15 = vld [vmem:[%s819_s7 + $0xb8] sm:$0xff] }
  0x2c   : > { %v375_v29 = vmul.f32 0.1, %v311_v14  ;;  %500 = vst.msk [vmem:[%s865_s20 + $0x40] sm:$0xff] %vm491_vm0, %v467_v22  ;;  %v405_v30 = vsel %vm341_vm11, %v309_v12, %v373_v24  ;;  %v312_v31 = vadd.f32 %v825_v2, %v273_v19  ;;  %v274_v32 = vmul.f32 %v814_v0, %v235_v20  ;;  %v447_v20 = vld [vmem:[%s832_s13 + $0xa0] sm:$0xff] }
  0x2d   : > { %501 = vst.msk [vmem:[%s865_s20 + $0x48] sm:$0xff] %vm491_vm0, %v468_v23  ;;  %v275_v33 = vmul.f32 %v814_v0, %v236_v21  ;;  %v469_v35 = vadd.f32 %v437_v18, %v405_v30  ;;  %v406_v36 = vsel %vm342_vm12, %v310_v13, %v374_v28  ;;  %v276_v38 = vmul.f32 %v814_v0, %v237_v27  ;;  %v445_v13 = vld [vmem:[%s832_s13 + $0x90] sm:$0xff]  ;;  %v245_v23 = vld [vmem:[%s819_s7 + $0xc0] sm:$0xff]  ;;  %v246_v28 = vld [vmem:[%s819_s7 + $0xc8] sm:$0xff] }
  0x2e   : > { %v407_v37 = vsel %vm343_vm13, %v311_v14, %v375_v29  ;;  %v470_v42 = vadd.f32 %v438_v25, %v406_v36  ;;  %vm344_vm14 = vcmp.gt.f32.partialorder %v312_v31, 0.0  ;;  %v376_v44 = vmul.f32 0.1, %v312_v31  ;;  %v446_v14 = vld [vmem:[%s832_s13 + $0x98] sm:$0xff]  ;;  %v247_v29 = vld [vmem:[%s819_s7 + $0xd0] sm:$0xff] }
  0x2f   : > { %v471_v43 = vadd.f32 %v439_v26, %v407_v37  ;;  %502 = vst.msk [vmem:[%s865_s20 + $0x50] sm:$0xff] %vm491_vm0, %v469_v35  ;;  %v313_v46 = vadd.f32 %v825_v2, %v274_v32  ;;  %v314_v47 = vadd.f32 %v825_v2, %v275_v33  ;;  %v315_v48 = vadd.f32 %v825_v2, %v276_v38  ;;  %v448_v35 = vld [vmem:[%s832_s13 + $0xa8] sm:$0xff] }
  0x30   : > { %v277_v49 = vmul.f32 %v814_v0, %v238_v34  ;;  %503 = vst.msk [vmem:[%s865_s20 + $0x58] sm:$0xff] %vm491_vm0, %v470_v42  ;;  %v408_v50 = vsel %vm344_vm14, %v312_v31, %v376_v44  ;;  %v278_v51 = vmul.f32 %v814_v0, %v239_v39  ;;  %v279_v52 = vmul.f32 %v814_v0, %v240_v40  ;;  %v449_v40 = vld [vmem:[%s832_s13 + $0xb0] sm:$0xff]  ;;  %v248_v44 = vld [vmem:[%s819_s7 + $0xd8] sm:$0xff] }
  0x31   : > { %504 = vst.msk [vmem:[%s865_s20 + $0x60] sm:$0xff] %vm491_vm0, %v471_v43  ;;  %v280_v53 = vmul.f32 %v814_v0, %v241_v41  ;;  %v472_v54 = vadd.f32 %v440_v45, %v408_v50  ;;  %vm345_vm15 = vcmp.gt.f32.partialorder %v313_v46, 0.0  ;;  %v377_v55 = vmul.f32 0.1, %v313_v46  ;;  %v450_v41 = vld [vmem:[%s832_s13 + $0xb8] sm:$0xff] }
  0x32   : > { %vm346_vm1 = vcmp.gt.f32.partialorder %v314_v47, 0.0  ;;  %v378_v58 = vmul.f32 0.1, %v314_v47  ;;  %vm347_vm2 = vcmp.gt.f32.partialorder %v315_v48, 0.0  ;;  %v379_v59 = vmul.f32 0.1, %v315_v48 }
  0x33   : > { %v316_v61 = vadd.f32 %v825_v2, %v277_v49  ;;  %505 = vst.msk [vmem:[%s865_s20 + $0x68] sm:$0xff] %vm491_vm0, %v472_v54  ;;  %v409_v62 = vsel %vm345_vm15, %v313_v46, %v377_v55  ;;  %v317_v63 = vadd.f32 %v825_v2, %v278_v51  ;;  %v318_v1 = vadd.f32 %v825_v2, %v279_v52  ;;  %v451_v54 = vld [vmem:[%s832_s13 + $0xc0] sm:$0xff] }
  0x34   : > { %v319_v3 = vadd.f32 %v825_v2, %v280_v53  ;;  %v473_v4 = vadd.f32 %v441_v56, %v409_v62  ;;  %v410_v5 = vsel %vm346_vm1, %v314_v47, %v378_v58  ;;  %v411_v6 = vsel %vm347_vm2, %v315_v48, %v379_v59  ;;  %v249_v56 = vld [vmem:[%s819_s7 + $0xe0] sm:$0xff]  ;;  %v453_v62 = vld [vmem:[%s832_s13 + $0xd0] sm:$0xff] }
  0x35   : > { %vm348_vm3 = vcmp.gt.f32.partialorder %v316_v61, 0.0  ;;  %v474_v10 = vadd.f32 %v442_v57, %v410_v5  ;;  %v475_v11 = vadd.f32 %v443_v60, %v411_v6  ;;  %v380_v12 = vmul.f32 0.1, %v316_v61  ;;  %v250_v57 = vld [vmem:[%s819_s7 + $0xe8] sm:$0xff] }
  0x36   : > { %vm349_vm4 = vcmp.gt.f32.partialorder %v317_v63, 0.0  ;;  %506 = vst.msk [vmem:[%s865_s20 + $0x70] sm:$0xff] %vm491_vm0, %v473_v4  ;;  %v381_v16 = vmul.f32 0.1, %v317_v63  ;;  %vm350_vm5 = vcmp.gt.f32.partialorder %v318_v1, 0.0  ;;  %vm351_vm6 = vcmp.gt.f32.partialorder %v319_v3, 0.0 }
  0x37   : > { %v382_v17 = vmul.f32 0.1, %v318_v1  ;;  %507 = vst.msk [vmem:[%s865_s20 + $0x78] sm:$0xff] %vm491_vm0, %v474_v10  ;;  %508 = vst.msk [vmem:[%s865_s20 + $0x80] sm:$0xff] %vm491_vm0, %v475_v11  ;;  %v412_v18 = vsel %vm348_vm3, %v316_v61, %v380_v12  ;;  %v383_v19 = vmul.f32 0.1, %v319_v3  ;;  %v281_v21 = vmul.f32 %v814_v0, %v242_v8 }
  0x38   : > { %v282_v22 = vmul.f32 %v814_v0, %v243_v9  ;;  %v476_v24 = vadd.f32 %v444_v7, %v412_v18  ;;  %v413_v25 = vsel %vm349_vm4, %v317_v63, %v381_v16  ;;  %v283_v27 = vmul.f32 %v814_v0, %v244_v15  ;;  %v452_v61 = vld [vmem:[%s832_s13 + $0xc8] sm:$0xff]  ;;  %v251_v63 = vld [vmem:[%s819_s7 + $0xf0] sm:$0xff]  ;;  %v252_v8 = vld [vmem:[%s819_s7 + $0xf8] sm:$0xff]  ;;  %s676_s7 = scalar_lea.vmem %s675_s6, 8192 }
  0x39   : > { %v414_v26 = vsel %vm350_vm5, %v318_v1, %v382_v17  ;;  %v477_v30 = vadd.f32 %v445_v13, %v413_v25  ;;  %v415_v32 = vsel %vm351_vm6, %v319_v3, %v383_v19  ;;  %v320_v33 = vadd.f32 %v825_v2, %v281_v21  ;;  %v454_v16 = vld [vmem:[%s832_s13 + $0xd8] sm:$0xff]  ;;  %v456_v25 = vld [vmem:[%s832_s13 + $0xe8] sm:$0xff]  ;;  %p678_p1 = scmp.lt.s32.totalorder %s676_s7, %s670_s30 }
  0x3a   : > { %v478_v31 = vadd.f32 %v446_v14, %v414_v26  ;;  %509 = vst.msk [vmem:[%s865_s20 + $0x88] sm:$0xff] %vm491_vm0, %v476_v24  ;;  %v479_v34 = vadd.f32 %v447_v20, %v415_v32  ;;  %v321_v36 = vadd.f32 %v825_v2, %v282_v22  ;;  %v322_v37 = vadd.f32 %v825_v2, %v283_v27  ;;  %v455_v24 = vld [vmem:[%s832_s13 + $0xe0] sm:$0xff] }
  0x3b   : > { %v284_v38 = vmul.f32 %v814_v0, %v245_v23  ;;  %510 = vst.msk [vmem:[%s865_s20 + $0x90] sm:$0xff] %vm491_vm0, %v477_v30  ;;  %vm352_vm7 = vcmp.gt.f32.partialorder %v320_v33, 0.0  ;;  %v384_v39 = vmul.f32 0.1, %v320_v33  ;;  %v285_v42 = vmul.f32 %v814_v0, %v246_v28  ;;  %p679_p2 = por %p678_p1, %p677_p0 }
  0x3c   : > { %511 = vst.msk [vmem:[%s865_s20 + $0x98] sm:$0xff] %vm491_vm0, %v478_v31  ;;  %v286_v43 = vmul.f32 %v814_v0, %v247_v29  ;;  %512 = vst.msk [vmem:[%s865_s20 + $0xa0] sm:$0xff] %vm491_vm0, %v479_v34  ;;  %vm353_vm8 = vcmp.gt.f32.partialorder %v321_v36, 0.0  ;;  %v385_v45 = vmul.f32 0.1, %v321_v36  ;;  %vm354_vm9 = vcmp.gt.f32.partialorder %v322_v37, 0.0 }
  0x3d   : > { %v386_v46 = vmul.f32 0.1, %v322_v37  ;;  %v416_v47 = vsel %vm352_vm7, %v320_v33, %v384_v39  ;;  %v323_v48 = vadd.f32 %v825_v2, %v284_v38  ;;  %v324_v49 = vadd.f32 %v825_v2, %v285_v42  ;;  %p680_p3 = pnand %p679_p2, %p673_p13 }
  0x3e   : > { %v325_v50 = vadd.f32 %v825_v2, %v286_v43  ;;  %v480_v51 = vadd.f32 %v448_v35, %v416_v47  ;;  %v417_v52 = vsel %vm353_vm8, %v321_v36, %v385_v45  ;;  %v287_v55 = vmul.f32 %v814_v0, %v248_v44  ;;  %v458_v36 = vld [vmem:[%s832_s13 + $0xf8] sm:$0xff] }
  0x3f   : > { %v418_v53 = vsel %vm354_vm9, %v322_v37, %v386_v46  ;;  %v481_v58 = vadd.f32 %v449_v40, %v417_v52  ;;  %vm355_vm10 = vcmp.gt.f32.partialorder %v323_v48, 0.0  ;;  %v387_v60 = vmul.f32 0.1, %v323_v48 }
  0x40   : > { %v482_v59 = vadd.f32 %v450_v41, %v418_v53  ;;  %513 = vst.msk [vmem:[%s865_s20 + $0xa8] sm:$0xff] %vm491_vm0, %v480_v51  ;;  %vm356_vm11 = vcmp.gt.f32.partialorder %v324_v49, 0.0  ;;  %v388_v1 = vmul.f32 0.1, %v324_v49  ;;  %vm357_vm12 = vcmp.gt.f32.partialorder %v325_v50, 0.0 }
  0x41   : > { %v389_v3 = vmul.f32 0.1, %v325_v50  ;;  %514 = vst.msk [vmem:[%s865_s20 + $0xb0] sm:$0xff] %vm491_vm0, %v481_v58  ;;  %v419_v4 = vsel %vm355_vm10, %v323_v48, %v387_v60  ;;  %v326_v5 = vadd.f32 %v825_v2, %v287_v55  ;;  %v288_v6 = vmul.f32 %v814_v0, %v249_v56 }
  0x42   : > { %515 = vst.msk [vmem:[%s865_s20 + $0xb8] sm:$0xff] %vm491_vm0, %v482_v59  ;;  %v289_v7 = vmul.f32 %v814_v0, %v250_v57  ;;  %v483_v9 = vadd.f32 %v451_v54, %v419_v4  ;;  %v420_v10 = vsel %vm356_vm11, %v324_v49, %v388_v1  ;;  %v290_v12 = vmul.f32 %v814_v0, %v251_v63 }
  0x43   : > { %v421_v11 = vsel %vm357_vm12, %v325_v50, %v389_v3  ;;  %v484_v13 = vadd.f32 %v452_v61, %v420_v10  ;;  %vm358_vm13 = vcmp.gt.f32.partialorder %v326_v5, 0.0  ;;  %v390_v15 = vmul.f32 0.1, %v326_v5 }
  0x44   : > { %v485_v14 = vadd.f32 %v453_v62, %v421_v11  ;;  %516 = vst.msk [vmem:[%s865_s20 + $0xc0] sm:$0xff] %vm491_vm0, %v483_v9  ;;  %v327_v17 = vadd.f32 %v825_v2, %v288_v6  ;;  %v328_v18 = vadd.f32 %v825_v2, %v289_v7  ;;  %v329_v19 = vadd.f32 %v825_v2, %v290_v12 }
  0x45   : > { %v291_v20 = vmul.f32 %v814_v0, %v252_v8  ;;  %517 = vst.msk [vmem:[%s865_s20 + $0xc8] sm:$0xff] %vm491_vm0, %v484_v13  ;;  %v422_v21 = vsel %vm358_vm13, %v326_v5, %v390_v15  ;;  %v457_v0 = vld [vmem:[%s832_s13 + $0xf0] sm:$0xff] }
  0x46   : > { %518 = vst.msk [vmem:[%s865_s20 + $0xd0] sm:$0xff] %vm491_vm0, %v485_v14  ;;  %v486_v22 = vadd.f32 %v454_v16, %v422_v21  ;;  %vm359_vm14 = vcmp.gt.f32.partialorder %v327_v17, 0.0  ;;  %v391_v23 = vmul.f32 0.1, %v327_v17  ;;  %vm360_vm15 = vcmp.gt.f32.partialorder %v328_v18, 0.0 }
  0x47   : > { %v392_v26 = vmul.f32 0.1, %v328_v18  ;;  %vm361_vm1 = vcmp.gt.f32.partialorder %v329_v19, 0.0  ;;  %v393_v27 = vmul.f32 0.1, %v329_v19  ;;  %v330_v28 = vadd.f32 %v825_v2, %v291_v20 }
  0x48   : > { %519 = vst.msk [vmem:[%s865_s20 + $0xd8] sm:$0xff] %vm491_vm0, %v486_v22  ;;  %v423_v29 = vsel %vm359_vm14, %v327_v17, %v391_v23 }
  0x49   : > { %v487_v30 = vadd.f32 %v455_v24, %v423_v29  ;;  %v424_v31 = vsel %vm360_vm15, %v328_v18, %v392_v26  ;;  %v425_v32 = vsel %vm361_vm1, %v329_v19, %v393_v27  ;;  %vm362_vm2 = vcmp.gt.f32.partialorder %v330_v28, 0.0 }
  0x4a   : > { %v488_v33 = vadd.f32 %v456_v25, %v424_v31  ;;  %v489_v34 = vadd.f32 %v457_v0, %v425_v32  ;;  %v394_v35 = vmul.f32 0.1, %v330_v28 }
  0x4b   : > { %520 = vst.msk [vmem:[%s865_s20 + $0xe0] sm:$0xff] %vm491_vm0, %v487_v30 }
  0x4c   : > { %521 = vst.msk [vmem:[%s865_s20 + $0xe8] sm:$0xff] %vm491_vm0, %v488_v33  ;;  %522 = vst.msk [vmem:[%s865_s20 + $0xf0] sm:$0xff] %vm491_vm0, %v489_v34  ;;  %v426_v2 = vsel %vm362_vm2, %v330_v28, %v394_v35 }
  0x4d   : > { %v490_v37 = vadd.f32 %v458_v36, %v426_v2 }
  0x4f   : > { %523 = vst.msk [vmem:[%s865_s20 + $0xf8] sm:$0xff] %vm491_vm0, %v490_v37 }
  0x50   : > { %683 = shalt.err (!%p680_p3)
}
  0x51   : > { %s684_s8 = scalar_lea.hbm %s1038_s29, 4096  ;;  %s688_s11 = scalar_lea.hbm %s1091_s4, 8192 }
  0x52   : > { %p685_p4 = scmp.ne.s32.totalorder %s1038_s29, %s684_s8  ;;  %p689_p9 = scmp.lt.u32.totalorder %s1038_s29, %s1091_s4 }
  0x53   : > { %p690_p10 = scmp.lt.u32.totalorder %s688_s11, %s684_s8  ;;  %p692_p12 = scmp.lt.u32.totalorder %s684_s8, %s1038_s29 }
  0x54   : > { %p686_p7 = pnand %p685_p4, %p800_p5 }
  0x55   : > { %p691_p11 = por %p690_p10, %p689_p9 }
  0x56   : > { %p687_p8 = pneg %p686_p7 }
  0x57   : > { %p693_p13 = por %p692_p12, %p691_p11 }
  0x59   : > { %p694_p0 = pnand %p693_p13, %p687_p8 }
  0x5b   : > { %697 = shalt.err (!%p694_p0)
}
  0x5c   : > { %s735_s14 = smov 128   ;;  %s736_s20 = smov 8  }
  0x5d   : > { %629 = dma.vmem_to_hbm [thread:$0]  (%p800_p5), %s1040_s23, 4096, %s1038_s29, %s1046_s19, %s735_s14, %s735_s14, %s736_s20  }
  0x5e PF: > { %p635_p1 = scmp.ge.s32.totalorder %s732_s18, 2  ;;  %s553_s22 = sand.u32 1, %s720_s15  }
  0x5f   : > { %s554_s27 = scalar_lea.sflag [#allocation3], %s553_s22 }
  0x60   : > { %p632_p2 = pnand %p635_p1, %p804_p6 }
  0x62   : > { %715 = dma.done.wait (!%p632_p2), %s554_s27, 4096  }
  0x63   : > { %717 = vsyncadd (!%p632_p2), %s554_s27, 4294963200  ;;  %p14_p3 = scmp.ge.s32.totalorder %s787_s21, 4   ;;  %s1094_s15 = smov %s724_s16 }
  0x64   : > { %s1095_s16 = smov %s728_s17  ;;  %s1096_s17 = smov %s798_s24 }
  0x65   : > { %s1097_s18 = smov %s787_s21  ;;  %16 = sbr.rel (!%p14_p3) target bundleno = 3 (0x3), region = 74 }
  0x6c   :  { %559 = vsyncpa [#allocation3], 1 }
  0x6d   :  { %561 = vsyncpa [#allocation3 + $0x1], 1 }

// kernel: residual_unit_nhwc.4
= control target key start
LH: loop header
LB: loop body
LE: loop exit
PB: predicated region body
PF: predicated region fallthrough
CT: control target
= control target key end

     0   :  { %s5185_s21 = smov 0   ;;  %s6714_s0 = inlined_call_operand.vmem [shape: f32[2,256,32], index: 0, kind: input, shape index: {}]   ;;  %s6715_s1 = inlined_call_operand.vmem [shape: f32[1,32], index: 1, kind: input, shape index: {}]   ;;  %s6716_s2 = inlined_call_operand.vmem [shape: f32[1,32], index: 2, kind: input, shape index: {}]   ;;  %s6717_s3 = inlined_call_operand.vmem [shape: bf16[9,32,64], index: 3, kind: input, shape index: {}]   ;;  %s6718_s4 = inlined_call_operand.vmem [shape: f32[2,256,64], index: 4, kind: output, shape index: {0}]   ;;  %s6719_s5 = inlined_call_operand.vmem [shape: f32[2,1,64], index: 5, kind: output, shape index: {1}]   ;;  %s6720_s6 = inlined_call_operand.vmem [shape: f32[2,1,64], index: 6, kind: output, shape index: {2}]  }
   0x1 LB: > { %s4125_s22 = sadd.s32 4294967295, %s5146_s21   ;;  %p4129_p0 = scmp.ge.s32.totalorder %s5146_s21, 1  ;;  %s5146_s21 = sphi %s5185_s21, %s17_s21  }
   0x2   : > { %p217_p1 = scmp.lt.s32.totalorder %s5146_s21, 3 }
   0x4   : > { %p218_p2 = pnand %p4129_p0, %p217_p1 }
   0x6   : > { %221 = sbr.rel (%p218_p2) target bundleno = 587 (0x24b), region = 36 }
   0xd   : > { %v5118_v0 = vld [vmem:[%s6717_s3 + $0x10] sm:$0xff]   ;;  %v5119_v1 = vld [vmem:[%s6717_s3 + $0x40] sm:$0xff]   ;;  %v6741_v2 = vmov 0   ;;  %p253_p3 = scmp.lt.s32.totalorder %s4125_s22, 1  ;;  %v5120_v3 = vld [vmem:[%s6717_s3 + $0x18] sm:$0xff]   ;;  %v494_v4 = vlaneseq  ;;  %vm6743_vm0 = vcmask 261120  }
   0xe   : > { %4528 = vmatprep.mubr.bf16.mxu1 %v6741_v2  ;;  %4524 = vmatprep.subr.bf16.mxu1 %v5118_v0  ;;  %v5121_v5 = vld [vmem:[%s6717_s3 + $0x48] sm:$0xff]   ;;  %v5211_v6 = vld [vmem:[%s6715_s1] ss:$0 sm:$0xff]  ;;  %v5234_v9 = vld [vmem:[%s6717_s3 + $0x50] sm:$0xff]  }
   0xf   : > { %4668 = vmatprep.subr.bf16.mxu0 %v5119_v1  ;;  %4525 = vmatpush3.bf16.msra.mxu1 %v5118_v0  ;;  %s7205_s22 = smov (!%p253_p3, %s4125_s22), 1  ;;  %v5217_v7 = vld [vmem:[%s6716_s2] ss:$0 sm:$0xff]  ;;  %v5236_v10 = vshrl.u32 %v494_v4, 7  ;;  %v5124_v47 = vld [vmem:[%s6717_s3 + $0x58] sm:$0xff]   ;;  %v5125_v58 = vld [vmem:[%s6717_s3 + $0x8] sm:$0xff]  }
  0x10   : > { %4669 = vmatpush3.bf16.msra.mxu0 %v5119_v1  ;;  %4526 = vmatprep.subr.bf16.mxu1 %v5120_v3  ;;  %s4360_s9 = sshll.u32 %s7205_s22, 8  ;;  %v5222_v8 = vld [vmem:[%s6717_s3] sm:$0xff]   ;;  %s265_s13 = scalar_lea.vmem %s6719_s5, %s7205_s22 }
  0x11   : > { %4670 = vmatprep.subr.bf16.mxu0 %v5121_v5  ;;  %s5229_s16 = scalar_lea.vmem %s6714_s0, %s4360_s9  ;;  %v5249_v20 = vadd.s32 8, %v5236_v10  ;;  %v5258_v26 = vadd.s32 24, %v5236_v10  ;;  %s6565_s11 = scalar_lea.vmem %s6718_s4, %s4360_s9 }
  0x12   : > { %v272_v11 = vld [vmem:[%s5229_s16] sm:$0xff]  ;;  %v273_v12 = vld [vmem:[%s5229_s16 + $0x8] sm:$0xff]  ;;  %v274_v13 = vld [vmem:[%s5229_s16 + $0x10] sm:$0xff] }
  0x13   : > { %4527 = vmatpush3.bf16.msra.mxu1 %v5120_v3  ;;  %v311_v14 = vmul.f32 %v5211_v6, %v272_v11  ;;  %v312_v15 = vmul.f32 %v5211_v6, %v273_v12  ;;  %v275_v16 = vld [vmem:[%s5229_s16 + $0x18] sm:$0xff]  ;;  %v313_v17 = vmul.f32 %v5211_v6, %v274_v13  ;;  %v276_v18 = vld [vmem:[%s5229_s16 + $0x20] sm:$0xff]  ;;  %v277_v19 = vld [vmem:[%s5229_s16 + $0x28] sm:$0xff]  ;;  %v538_v59 = vand.u32 15, %v5249_v20 }
  0x14   : > { %4671 = vmatpush3.bf16.msra.mxu0 %v5121_v5  ;;  %4560 = vmatprep.subr.bf16.mxu1 %v5222_v8  ;;  %v314_v21 = vmul.f32 %v5211_v6, %v275_v16  ;;  %v315_v22 = vmul.f32 %v5211_v6, %v276_v18  ;;  %v316_v23 = vmul.f32 %v5211_v6, %v277_v19  ;;  %v278_v24 = vld [vmem:[%s5229_s16 + $0x30] sm:$0xff]  ;;  %v279_v25 = vld [vmem:[%s5229_s16 + $0x38] sm:$0xff]  ;;  %v280_v41 = vld [vmem:[%s5229_s16 + $0x40] sm:$0xff] }
  0x15   : > { %4704 = vmatprep.subr.bf16.mxu0 %v5234_v9  ;;  %v350_v27 = vadd.f32 %v5217_v7, %v311_v14  ;;  %v351_v28 = vadd.f32 %v5217_v7, %v312_v15  ;;  %v352_v29 = vadd.f32 %v5217_v7, %v313_v17  ;;  %v317_v30 = vmul.f32 %v5211_v6, %v278_v24  ;;  %v281_v42 = vld [vmem:[%s5229_s16 + $0x48] sm:$0xff]  ;;  %v282_v48 = vld [vmem:[%s5229_s16 + $0x50] sm:$0xff]  ;;  %v283_v53 = vld [vmem:[%s5229_s16 + $0x58] sm:$0xff] }
  0x16   : > { %v353_v31 = vadd.f32 %v5217_v7, %v314_v21  ;;  %v354_v32 = vadd.f32 %v5217_v7, %v315_v22  ;;  %v355_v33 = vadd.f32 %v5217_v7, %v316_v23  ;;  %v318_v34 = vmul.f32 %v5211_v6, %v279_v25  ;;  %v284_v54 = vld [vmem:[%s5229_s16 + $0x60] sm:$0xff]  ;;  %v286_v11 = vld [vmem:[%s5229_s16 + $0x70] sm:$0xff]  ;;  %v287_v19 = vld [vmem:[%s5229_s16 + $0x78] sm:$0xff] }
  0x17   : > { %vm382_vm1 = vcmp.gt.f32.partialorder %v350_v27, 0.0  ;;  %vm383_vm2 = vcmp.gt.f32.partialorder %v351_v28, 0.0  ;;  %v414_v35 = vmul.f32 0.1, %v350_v27  ;;  %v415_v36 = vmul.f32 0.1, %v351_v28 }
  0x18   : > { %vm384_vm3 = vcmp.gt.f32.partialorder %v352_v29, 0.0  ;;  %vm385_vm4 = vcmp.gt.f32.partialorder %v353_v31, 0.0  ;;  %v416_v37 = vmul.f32 0.1, %v352_v29  ;;  %v417_v38 = vmul.f32 0.1, %v353_v31 }
  0x19   : > { %v446_v39 = vsel %vm382_vm1, %v350_v27, %v414_v35  ;;  %v447_v40 = vsel %vm383_vm2, %v351_v28, %v415_v36  ;;  %vm386_vm5 = vcmp.gt.f32.partialorder %v354_v32, 0.0  ;;  %vm387_vm6 = vcmp.gt.f32.partialorder %v355_v33, 0.0  ;;  %v5312_v12 = vld [vmem:[%s6717_s3 + $0x60] sm:$0xff]  }
  0x1a   : > { %v5270_v43 = vpack.c.bf16 %v447_v40, %v446_v39  ;;  %v448_v44 = vsel %vm384_vm3, %v352_v29, %v416_v37  ;;  %v449_v45 = vsel %vm385_vm4, %v353_v31, %v417_v38  ;;  %v418_v46 = vmul.f32 0.1, %v354_v32  ;;  %v5325_v21 = vld [vmem:[%s6717_s3 + $0x20] sm:$0xff]   ;;  %v289_v37 = vld [vmem:[%s5229_s16 + $0x88] sm:$0xff] }
  0x1b   : > { %v5276_v49 = vpack.c.bf16 %v449_v45, %v448_v44  ;;  %v419_v50 = vmul.f32 0.1, %v355_v33  ;;  %v356_v51 = vadd.f32 %v5217_v7, %v317_v30  ;;  %v357_v52 = vadd.f32 %v5217_v7, %v318_v34  ;;  %v288_v29 = vld [vmem:[%s5229_s16 + $0x80] sm:$0xff] }
  0x1c   : > { %4529 = vmatmul.mubr.msk.bf16.vlgmr.msra.gmra.mrb[0].mxu1 %vm6743_vm0, %v5270_v43  ;;  %4672 = vmatprep.mubr.msk.bf16.mxu0 %vm6743_vm0, %v5270_v43  ;;  %v450_v55 = vsel %vm386_vm5, %v354_v32, %v418_v46  ;;  %v319_v56 = vmul.f32 %v5211_v6, %v280_v41  ;;  %v320_v57 = vmul.f32 %v5211_v6, %v281_v42  ;;  %vm5360_vm3 = vcmp.lt.s32.totalorder %v538_v59, 15 }
  0x1d   : > { %6855 = vst [vmem:[#allocation2_spill] sm:$0xff] %v5276_v49  ;;  %4561 = vmatpush3.bf16.msra.mxu1 %v5222_v8  ;;  %4673 = vmatmul.mubr.msk.bf16.vlgmr.msra.gmra.mrb[0].mxu0 %vm6743_vm0, %v5276_v49  ;;  %v451_v60 = vsel %vm387_vm6, %v355_v33, %v419_v50  ;;  %vm388_vm7 = vcmp.gt.f32.partialorder %v356_v51, 0.0  ;;  %vm389_vm8 = vcmp.gt.f32.partialorder %v357_v52, 0.0  ;;  %v420_v61 = vmul.f32 0.1, %v356_v51  ;;  %v285_v8 = vld [vmem:[%s5229_s16 + $0x68] sm:$0xff] }
  0x1e   : > { %4705 = vmatpush3.bf16.msra.mxu0 %v5234_v9  ;;  %4532 = vmatprep.mubr.msk.bf16.mxu1 %vm6743_vm0, %v5276_v49  ;;  %v5300_v62 = vpack.c.bf16 %v451_v60, %v450_v55  ;;  %v421_v63 = vmul.f32 0.1, %v357_v52  ;;  %v358_v0 = vadd.f32 %v5217_v7, %v319_v56  ;;  %v359_v1 = vadd.f32 %v5217_v7, %v320_v57  ;;  %v294_v57 = vld [vmem:[%s5229_s16 + $0xb0] sm:$0xff] }
  0x1f   : > { %v452_v3 = vsel %vm388_vm7, %v356_v51, %v420_v61  ;;  %4706 = vmatprep.subr.bf16.mxu0 %v5124_v47  ;;  %v321_v4 = vmul.f32 %v5211_v6, %v282_v48  ;;  %v322_v5 = vmul.f32 %v5211_v6, %v283_v53  ;;  %v323_v9 = vmul.f32 %v5211_v6, %v284_v54 }
  0x20   : > { %6856 = vst [vmem:[#allocation3_spill] sm:$0xff] %v5300_v62  ;;  %4676 = vmatprep.mubr.msk.bf16.mxu0 %vm6743_vm0, %v5300_v62  ;;  %v453_v13 = vsel %vm389_vm8, %v357_v52, %v421_v63  ;;  %vm390_vm9 = vcmp.gt.f32.partialorder %v358_v0, 0.0  ;;  %vm391_vm10 = vcmp.gt.f32.partialorder %v359_v1, 0.0  ;;  %v422_v14 = vmul.f32 0.1, %v358_v0  ;;  %4562 = vmatprep.subr.bf16.mxu1 %v5125_v58 }
  0x21   : > { %v5317_v15 = vpack.c.bf16 %v453_v13, %v452_v3  ;;  %v423_v16 = vmul.f32 0.1, %v359_v1  ;;  %v360_v17 = vadd.f32 %v5217_v7, %v321_v4  ;;  %v361_v18 = vadd.f32 %v5217_v7, %v322_v5  ;;  %4563 = vmatpush3.bf16.msra.mxu1 %v5125_v58  ;;  %v291_v4 = vld [vmem:[%s5229_s16 + $0x98] sm:$0xff]  ;;  %v292_v13 = vld [vmem:[%s5229_s16 + $0xa0] sm:$0xff] }
  0x22   : > { %v454_v22 = vsel %vm390_vm9, %v358_v0, %v422_v14  ;;  %4707 = vmatpush3.bf16.msra.mxu0 %v5124_v47  ;;  %v324_v23 = vmul.f32 %v5211_v6, %v285_v8  ;;  %v362_v24 = vadd.f32 %v5217_v7, %v323_v9  ;;  %v325_v25 = vmul.f32 %v5211_v6, %v286_v11  ;;  %vm1880_vm9 = vmpackc.low %vm5360_vm3, %vm5360_vm3 }
  0x23   : > { %6857 = vst [vmem:[#allocation4_spill] sm:$0xff] %v5317_v15  ;;  %v455_v27 = vsel %vm391_vm10, %v359_v1, %v423_v16  ;;  %vm392_vm11 = vcmp.gt.f32.partialorder %v360_v17, 0.0  ;;  %vm393_vm12 = vcmp.gt.f32.partialorder %v361_v18, 0.0  ;;  %v424_v28 = vmul.f32 0.1, %v360_v17  ;;  %4740 = vmatprep.subr.bf16.mxu0 %v5312_v12  ;;  %4596 = vmatprep.subr.bf16.mxu1 %v5325_v21 }
  0x24   : > { %4533 = vmatmul.mubr.msk.bf16.gmra.mrb[4].mxu1 %vm6743_vm0, %v5300_v62  ;;  %v5335_v30 = vpack.c.bf16 %v455_v27, %v454_v22  ;;  %v425_v31 = vmul.f32 0.1, %v361_v18  ;;  %v363_v32 = vadd.f32 %v5217_v7, %v324_v23  ;;  %vm394_vm13 = vcmp.gt.f32.partialorder %v362_v24, 0.0 }
  0x25   : > { %4677 = vmatmul.mubr.msk.bf16.gmra.mrb[4].mxu0 %vm6743_vm0, %v5317_v15  ;;  %4536 = vmatprep.mubr.msk.bf16.mxu1 %vm6743_vm0, %v5317_v15  ;;  %v456_v33 = vsel %vm392_vm11, %v360_v17, %v424_v28  ;;  %v426_v34 = vmul.f32 0.1, %v362_v24  ;;  %v326_v35 = vmul.f32 %v5211_v6, %v287_v19  ;;  %v364_v36 = vadd.f32 %v5217_v7, %v325_v25  ;;  %v293_v25 = vld [vmem:[%s5229_s16 + $0xa8] sm:$0xff] }
  0x26   : > { %6858 = vst [vmem:[#allocation5_spill] sm:$0xff] %v5335_v30  ;;  %4680 = vmatprep.mubr.msk.bf16.mxu0 %vm6743_vm0, %v5335_v30  ;;  %v457_v38 = vsel %vm393_vm12, %v361_v18, %v425_v31  ;;  %vm395_vm14 = vcmp.gt.f32.partialorder %v363_v32, 0.0  ;;  %v427_v39 = vmul.f32 0.1, %v363_v32  ;;  %v327_v40 = vmul.f32 %v5211_v6, %v288_v29 }
  0x27   : > { %v5349_v41 = vpack.c.bf16 %v457_v38, %v456_v33  ;;  %v458_v42 = vsel %vm394_vm13, %v362_v24, %v426_v34  ;;  %v365_v44 = vadd.f32 %v5217_v7, %v326_v35  ;;  %vm396_vm15 = vcmp.gt.f32.partialorder %v364_v36, 0.0 }
  0x28   : > { %v459_v45 = vsel %vm395_vm14, %v363_v32, %v427_v39  ;;  %v428_v46 = vmul.f32 0.1, %v364_v36  ;;  %v328_v47 = vmul.f32 %v5211_v6, %v289_v37  ;;  %v366_v48 = vadd.f32 %v5217_v7, %v327_v40 }
  0x29   : > { %6859 = vst [vmem:[#allocation6_spill] sm:$0xff] %v5349_v41  ;;  %v5354_v50 = vpack.c.bf16 %v459_v45, %v458_v42  ;;  %vm397_vm1 = vcmp.gt.f32.partialorder %v365_v44, 0.0  ;;  %v429_v51 = vmul.f32 0.1, %v365_v44  ;;  %v552_v52 = vand.u32 15, %v5258_v26  ;;  %v290_v26 = vld [vmem:[%s5229_s16 + $0x90] sm:$0xff] }
  0x2a   : > { %v460_v53 = vsel %vm396_vm15, %v364_v36, %v428_v46  ;;  %v367_v54 = vadd.f32 %v5217_v7, %v328_v47  ;;  %vm398_vm2 = vcmp.gt.f32.partialorder %v366_v48, 0.0  ;;  %v430_v55 = vmul.f32 0.1, %v366_v48 }
  0x2b   : > { %6860 = vst [vmem:[#allocation7_spill] sm:$0xff] %v5354_v50  ;;  %v461_v56 = vsel %vm397_vm1, %v365_v44, %v429_v51  ;;  %vm5364_vm4 = vcmp.lt.s32.totalorder %v552_v52, 15  ;;  %vm5149_vm5 = vmmov 1   ;;  %vm6731_vm7 = vsmask.f32 7424 }
  0x2c   : > { %vm5368_vm6 = vmpackc.low %vm5149_vm5, %vm5149_vm5  ;;  %4537 = vmatmul.mubr.msk.bf16.gmra.mrb[8].mxu1 %vm6743_vm0, %v5335_v30  ;;  %vm399_vm8 = vcmp.gt.f32.partialorder %v367_v54, 0.0  ;;  %v431_v20 = vmul.f32 0.1, %v367_v54  ;;  %v462_v59 = vsel %vm398_vm2, %v366_v48, %v430_v55  ;;  %v977_v61 = vshrl.u32 %v5270_v43, 16 }
  0x2d   : > { %4681 = vmatmul.mubr.msk.bf16.gmra.mrb[8].mxu0 %vm6743_vm0, %v5349_v41  ;;  %4540 = vmatprep.mubr.msk.bf16.mxu1 %vm6743_vm0, %v5349_v41  ;;  %v5383_v63 = vpack.c.bf16 %v461_v56, %v460_v53  ;;  %v980_v0 = vshll.u32 %v5270_v43, 16  ;;  %v984_v1 = vshrl.u32 %v5276_v49, 16  ;;  %v987_v3 = vshll.u32 %v5276_v49, 16  ;;  %vm1882_vm10 = vmpackc.low %vm5364_vm4, %vm5364_vm4  ;;  %v5137_v49 = vld [vmem:[%s6716_s2] ss:$0 sm:$0xff] }
  0x2e   : > { %4684 = vmatprep.mubr.msk.bf16.mxu0 %vm6743_vm0, %v5354_v50  ;;  %v463_v5 = vsel %vm399_vm8, %v367_v54, %v431_v20  ;;  %v5397_v8 = vsel %vm5368_vm6, 65537, %v6741_v2  ;;  %v1912_v9 = vsel %vm1880_vm9, 65537, %v6741_v2  ;;  %v1914_v11 = vsel %vm1882_vm10, 65537, %v6741_v2 }
  0x2f   : > { %6867 = vst [vmem:[#allocation8_spill] sm:$0xff] %v5383_v63  ;;  %v5402_v14 = vpack.c.bf16 %v463_v5, %v462_v59  ;;  %v5406_v16 = vrot.slane %v980_v0, 1  ;;  %v1749_v17 = vrot.slane %v987_v3, 1  ;;  %v4189_v18 = vcombine.low %v5397_v8, %v1912_v9 }
  0x30   : > { %v4190_v19 = vcombine.low %v5397_v8, %v1914_v11  ;;  %v995_v22 = vshll.u32 %v5300_v62, 16  ;;  %v329_v23 = vmul.f32 %v5211_v6, %v290_v26  ;;  %v330_v24 = vmul.f32 %v5211_v6, %v291_v4 }
  0x31   : > { %6868 = vst [vmem:[#allocation9_spill] sm:$0xff] %v5402_v14  ;;  %v1748_v27 = vor.u32 %v5406_v16, %v977_v61  ;;  %v1751_v28 = vor.u32 %v1749_v17, %v984_v1  ;;  %vm5421_vm11 = vcmp.ne.s16.totalorder %v4189_v18, 0  ;;  %v6869_v29 = vmov 0  ;;  %v296_v18 = vld [vmem:[%s5229_s16 + $0xc0] sm:$0xff] }
  0x32   : > { %v6870_v29 = vsel %vm5421_vm11, 4294967295, %v6869_v29  ;;  %v331_v31 = vmul.f32 %v5211_v6, %v292_v13  ;;  %vm5426_vm12 = vcmp.ne.s16.totalorder %v4190_v19, 0  ;;  %v6871_v32 = vmov 0  ;;  %v295_v13 = vld [vmem:[%s5229_s16 + $0xb8] sm:$0xff] }
  0x33   : > { %v6872_v32 = vsel %vm5426_vm12, 4294967295, %v6871_v32  ;;  %v1752_v33 = vrot.slane %v995_v22, 1  ;;  %v368_v34 = vadd.f32 %v5217_v7, %v329_v23  ;;  %v369_v35 = vadd.f32 %v5217_v7, %v330_v24 }
  0x34   : > { %v5435_v36 = vsel %vm6731_vm7, %v1748_v27, %v1749_v17  ;;  %v332_v37 = vmul.f32 %v5211_v6, %v293_v25  ;;  %v370_v38 = vadd.f32 %v5217_v7, %v331_v31  ;;  %v500_v39 = vadd.s32 40, %v5236_v10  ;;  %4541 = vmatmul.mubr.msk.bf16.gmra.mrb[12].mxu1 %vm6743_vm0, %v5354_v50  ;;  %v297_v27 = vld [vmem:[%s5229_s16 + $0xc8] sm:$0xff] }
  0x35   : > { %v2784_v42 = vsel %vm5421_vm11, %v5435_v36, 0  ;;  %v5449_v44 = vsel %vm6731_vm7, %v1751_v28, %v1752_v33  ;;  %vm400_vm13 = vcmp.gt.f32.partialorder %v368_v34, 0.0  ;;  %4685 = vmatmul.mubr.msk.bf16.gmra.mrb[12].mxu0 %vm6743_vm0, %v5383_v63  ;;  %4544 = vmatprep.mubr.msk.bf16.mxu1 %vm6743_vm0, %v5383_v63  ;;  %vm401_vm14 = vcmp.gt.f32.partialorder %v369_v35, 0.0  ;;  %v5128_v28 = vld [vmem:[%s6717_s3 + $0x68] sm:$0xff]  }
  0x36   : > { %v2785_v45 = vsel %vm5426_vm12, %v5449_v44, 0  ;;  %v432_v46 = vmul.f32 0.1, %v368_v34  ;;  %v433_v47 = vmul.f32 0.1, %v369_v35  ;;  %4708 = vmatprep.mubr.msk.bf16.mxu0 %vm6743_vm0, %v2784_v42  ;;  %v371_v48 = vadd.f32 %v5217_v7, %v332_v37 }
  0x37   : > { %vm402_vm15 = vcmp.gt.f32.partialorder %v370_v38, 0.0  ;;  %v434_v51 = vmul.f32 0.1, %v370_v38  ;;  %v566_v52 = vand.u32 15, %v500_v39  ;;  %v992_v55 = vshrl.u32 %v5300_v62, 16 }
  0x38   : > { %v464_v53 = vsel %vm400_vm13, %v368_v34, %v432_v46  ;;  %v465_v54 = vsel %vm401_vm14, %v369_v35, %v433_v47  ;;  %v6740_v56 = vshll.u32 %v5317_v15, 16  ;;  %vm403_vm1 = vcmp.gt.f32.partialorder %v371_v48, 0.0 }
  0x39   : > { %v5463_v58 = vpack.c.bf16 %v465_v54, %v464_v53  ;;  %v435_v60 = vmul.f32 0.1, %v371_v48  ;;  %v466_v26 = vsel %vm402_vm15, %v370_v38, %v434_v51  ;;  %vm948_vm2 = vcmp.lt.s32.totalorder %v566_v52, 15  ;;  %v5520_v51 = vld [vmem:[%s6717_s3 + $0x70] sm:$0xff]  }
  0x3a   : > { %v1754_v20 = vor.u32 %v1752_v33, %v992_v55  ;;  %v1755_v59 = vrot.slane %v6740_v56, 1  ;;  %v502_v4 = vadd.s32 56, %v5236_v10  ;;  %vm1884_vm3 = vmpackc.low %vm948_vm2, %vm948_vm2  ;;  %v1000_v9 = vshrl.u32 %v5317_v15, 16 }
  0x3b   : > { %6873 = vst [vmem:[#allocation10_spill] sm:$0xff] %v5463_v58  ;;  %v467_v5 = vsel %vm403_vm1, %v371_v48, %v435_v60  ;;  %v6737_v11 = vshll.u32 %v5335_v30, 16  ;;  %v333_v17 = vmul.f32 %v5211_v6, %v294_v57  ;;  %v5477_v19 = vrot.slane %v977_v61, 7 }
  0x3c   : > { %v5479_v23 = vpack.c.bf16 %v467_v5, %v466_v26  ;;  %v1916_v24 = vsel %vm1884_vm3, 65537, %v6741_v2  ;;  %v580_v25 = vand.u32 15, %v502_v4  ;;  %4545 = vmatmul.mubr.msk.bf16.gmra.mrb[16].mxu1 %vm6743_vm0, %v5402_v14  ;;  %v5489_v31 = vsel %vm6731_vm7, %v1754_v20, %v1755_v59 }
  0x3d   : > { %v4191_v33 = vcombine.low %v5397_v8, %v1916_v24  ;;  %v1757_v61 = vor.u32 %v1755_v59, %v1000_v9  ;;  %v1758_v34 = vrot.slane %v6737_v11, 1  ;;  %4709 = vmatmul.mubr.msk.bf16.vlgmr.msra.gmra.mrb[0].mxu0 %vm6743_vm0, %v2785_v45  ;;  %4548 = vmatprep.mubr.msk.bf16.mxu1 %vm6743_vm0, %v5463_v58  ;;  %v334_v35 = vmul.f32 %v5211_v6, %v295_v13 }
  0x3e   : > { %6874 = vst [vmem:[#allocation11_spill] sm:$0xff] %v5479_v23  ;;  %vm950_vm4 = vcmp.lt.s32.totalorder %v580_v25, 15  ;;  %v372_v37 = vadd.f32 %v5217_v7, %v333_v17  ;;  %v335_v38 = vmul.f32 %v5211_v6, %v296_v18  ;;  %4741 = vmatpush3.bf16.msra.mxu0 %v5312_v12  ;;  %v6875_v39 = vmov 0 }
  0x3f   : > { %vm5503_vm5 = vcmp.ne.s16.totalorder %v4191_v33, 0  ;;  %v5508_v42 = vsel %vm6731_vm7, %v1757_v61, %v1758_v34  ;;  %vm1886_vm6 = vmpackc.low %vm950_vm4, %vm950_vm4  ;;  %v336_v45 = vmul.f32 %v5211_v6, %v297_v27  ;;  %v504_v46 = vadd.s32 72, %v5236_v10  ;;  %4742 = vmatprep.subr.bf16.mxu0 %v5128_v28  ;;  %v298_v33 = vld [vmem:[%s5229_s16 + $0xd0] sm:$0xff]  ;;  %v299_v61 = vld [vmem:[%s5229_s16 + $0xd8] sm:$0xff] }
  0x40   : > { %v6876_v39 = vsel %vm5503_vm5, 4294967295, %v6875_v39  ;;  %v2786_v47 = vsel %vm5503_vm5, %v5489_v31, 0  ;;  %v1918_v48 = vsel %vm1886_vm6, 65537, %v6741_v2  ;;  %v373_v12 = vadd.f32 %v5217_v7, %v334_v35 }
  0x41   : > { %vm404_vm8 = vcmp.gt.f32.partialorder %v372_v37, 0.0  ;;  %4712 = vmatprep.mubr.msk.bf16.mxu0 %vm6743_vm0, %v2786_v47  ;;  %v4192_v52 = vcombine.low %v5397_v8, %v1918_v48  ;;  %v436_v53 = vmul.f32 0.1, %v372_v37  ;;  %v374_v54 = vadd.f32 %v5217_v7, %v335_v38 }
  0x42   : > { %v375_v57 = vadd.f32 %v5217_v7, %v336_v45  ;;  %vm405_vm9 = vcmp.gt.f32.partialorder %v373_v12, 0.0  ;;  %v437_v60 = vmul.f32 0.1, %v373_v12  ;;  %v594_v26 = vand.u32 15, %v504_v46  ;;  %4743 = vmatpush3.bf16.msra.mxu0 %v5128_v28  ;;  %v300_v46 = vld [vmem:[%s5229_s16 + $0xe0] sm:$0xff] }
  0x43   : > { %v1008_v20 = vshrl.u32 %v5335_v30, 16  ;;  %vm5527_vm10 = vcmp.ne.s16.totalorder %v4192_v52, 0  ;;  %v6877_v59 = vmov 0  ;;  %v468_v4 = vsel %vm404_vm8, %v372_v37, %v436_v53  ;;  %4776 = vmatprep.subr.bf16.mxu0 %v5520_v51 }
  0x44   : > { %v6878_v59 = vsel %vm5527_vm10, 4294967295, %v6877_v59  ;;  %vm406_vm13 = vcmp.gt.f32.partialorder %v374_v54, 0.0  ;;  %vm407_vm14 = vcmp.gt.f32.partialorder %v375_v57, 0.0  ;;  %v2787_v5 = vsel %vm5527_vm10, %v5508_v42, 0  ;;  %4549 = vmatmul.mubr.msk.bf16.gmra.mrb[20].mxu1 %vm6743_vm0, %v5479_v23 }
  0x45   : > { %v469_v13 = vsel %vm405_vm9, %v373_v12, %v437_v60  ;;  %v438_v17 = vmul.f32 0.1, %v374_v54  ;;  %v439_v18 = vmul.f32 0.1, %v375_v57  ;;  %vm5539_vm15 = vcmp.lt.s32.totalorder %v594_v26, 15  ;;  %4713 = vmatmul.mubr.msk.bf16.gmra.mrb[4].mxu0 %vm6743_vm0, %v2787_v5  ;;  %v301_v60 = vld [vmem:[%s5229_s16 + $0xe8] sm:$0xff] }
  0x46   : > { %v5537_v24 = vpack.c.bf16 %v469_v13, %v468_v4  ;;  %v6730_v27 = vshll.u32 %v5349_v41, 16  ;;  %v1760_v28 = vor.u32 %v1758_v34, %v1008_v20  ;;  %vm1888_vm1 = vmpackc.low %vm5539_vm15, %vm5539_vm15  ;;  %v506_v38 = vadd.s32 88, %v5236_v10 }
  0x47   : > { %v470_v35 = vsel %vm406_vm13, %v374_v54, %v438_v17  ;;  %v471_v37 = vsel %vm407_vm14, %v375_v57, %v439_v18  ;;  %v6734_v45 = vshrl.u32 %v5349_v41, 16  ;;  %v1920_v48 = vsel %vm1888_vm1, 65537, %v6741_v2 }
  0x48   : > { %6879 = vst [vmem:[#allocation12_spill] sm:$0xff] %v5537_v24  ;;  %4552 = vmatprep.mubr.msk.bf16.mxu1 %vm6743_vm0, %v5537_v24  ;;  %v5559_v34 = vpack.c.bf16 %v471_v37, %v470_v35  ;;  %v1761_v47 = vrot.slane %v6730_v27, 1  ;;  %v6726_v12 = vshll.u32 %v5354_v50, 16  ;;  %v4193_v52 = vcombine.low %v5397_v8, %v1920_v48 }
  0x49   : > { %v608_v53 = vand.u32 15, %v506_v38  ;;  %v337_v54 = vmul.f32 %v5211_v6, %v298_v33  ;;  %v338_v57 = vmul.f32 %v5211_v6, %v299_v61  ;;  %v339_v13 = vmul.f32 %v5211_v6, %v300_v46 }
  0x4a   : > { %6882 = vst [vmem:[#allocation13_spill] sm:$0xff] %v5559_v34  ;;  %v5570_v26 = vsel %vm6731_vm7, %v1760_v28, %v1761_v47  ;;  %v1763_v4 = vor.u32 %v1761_v47, %v6734_v45  ;;  %v1764_v5 = vrot.slane %v6726_v12, 1  ;;  %vm5577_vm2 = vcmp.ne.s16.totalorder %v4193_v52, 0 }
  0x4b   : > { %v6883_v17 = vmov 0  ;;  %vm954_vm3 = vcmp.lt.s32.totalorder %v608_v53, 15  ;;  %v376_v18 = vadd.f32 %v5217_v7, %v337_v54  ;;  %v377_v25 = vadd.f32 %v5217_v7, %v338_v57 }
  0x4c   : > { %v6884_v17 = vsel %vm5577_vm2, 4294967295, %v6883_v17  ;;  %v2788_v28 = vsel %vm5577_vm2, %v5570_v26, 0  ;;  %v5587_v33 = vsel %vm6731_vm7, %v1763_v4, %v1764_v5  ;;  %vm1890_vm4 = vmpackc.low %vm954_vm3, %vm954_vm3  ;;  %v340_v61 = vmul.f32 %v5211_v6, %v301_v60  ;;  %4553 = vmatmul.mubr.msk.bf16.gmra.mrb[24].mxu1 %vm6743_vm0, %v5559_v34 }
  0x4d   : > { %v378_v35 = vadd.f32 %v5217_v7, %v339_v13  ;;  %4716 = vmatprep.mubr.msk.bf16.mxu0 %vm6743_vm0, %v2788_v28  ;;  %v1922_v37 = vsel %vm1890_vm4, 65537, %v6741_v2  ;;  %vm408_vm6 = vcmp.gt.f32.partialorder %v376_v18, 0.0  ;;  %vm409_vm8 = vcmp.gt.f32.partialorder %v377_v25, 0.0 }
  0x4e   : > { %v440_v38 = vmul.f32 0.1, %v376_v18  ;;  %v4194_v46 = vcombine.low %v5397_v8, %v1922_v37  ;;  %v441_v47 = vmul.f32 0.1, %v377_v25  ;;  %v379_v48 = vadd.f32 %v5217_v7, %v340_v61 }
  0x4f   : > { %vm410_vm9 = vcmp.gt.f32.partialorder %v378_v35, 0.0  ;;  %v442_v6 = vmul.f32 0.1, %v378_v35  ;;  %v508_v53 = vadd.s32 104, %v5236_v10  ;;  %v6727_v54 = vshrl.u32 %v5354_v50, 16 }
  0x50   : > { %v472_v52 = vsel %vm408_vm6, %v376_v18, %v440_v38  ;;  %vm5599_vm13 = vcmp.ne.s16.totalorder %v4194_v46, 0  ;;  %v6885_v57 = vmov 0  ;;  %v473_v60 = vsel %vm409_vm8, %v377_v25, %v441_v47 }
  0x51   : > { %v6886_v57 = vsel %vm5599_vm13, 4294967295, %v6885_v57  ;;  %vm411_vm14 = vcmp.gt.f32.partialorder %v379_v48, 0.0  ;;  %v443_v4 = vmul.f32 0.1, %v379_v48  ;;  %v2789_v13 = vsel %vm5599_vm13, %v5587_v33, 0 }
  0x52   : > { %v5606_v28 = vpack.c.bf16 %v473_v60, %v472_v52  ;;  %v474_v7 = vsel %vm410_vm9, %v378_v35, %v442_v6  ;;  %v622_v18 = vand.u32 15, %v508_v53  ;;  %4717 = vmatmul.mubr.msk.bf16.gmra.mrb[8].mxu0 %vm6743_vm0, %v2789_v13  ;;  %v6722_v37 = vshll.u32 %v5383_v63, 16 }
  0x53   : > { %v475_v61 = vsel %vm411_vm14, %v379_v48, %v443_v4  ;;  %v1766_v38 = vor.u32 %v1764_v5, %v6727_v54  ;;  %v510_v25 = vadd.s32 120, %v5236_v10  ;;  %v6723_v47 = vshrl.u32 %v5383_v63, 16 }
  0x54   : > { %4556 = vmatprep.mubr.msk.bf16.mxu1 %vm6743_vm0, %v5606_v28  ;;  %v5615_v46 = vpack.c.bf16 %v475_v61, %v474_v7  ;;  %vm956_vm15 = vcmp.lt.s32.totalorder %v622_v18, 15  ;;  %v6721_v35 = vshll.u32 %v5402_v14, 16  ;;  %v1767_v48 = vrot.slane %v6722_v37, 1 }
  0x55   : > { %vm1892_vm1 = vmpackc.low %vm956_vm15, %vm956_vm15  ;;  %v636_v52 = vand.u32 15, %v510_v25  ;;  %v497_v6 = vadd.s32 16, %v5236_v10  ;;  %vm6732_vm3 = vsmask.f32 256  ;;  %v982_v60 = vor.u32 %v980_v0, %v5477_v19 }
  0x56   : > { %v1924_v5 = vsel %vm1892_vm1, 65537, %v6741_v2  ;;  %v1770_v53 = vrot.slane %v6721_v35, 1  ;;  %vm1110_vm4 = vcmask 1040384   ;;  %4557 = vmatmul.mubr.msk.bf16.gmra.mrb[28].mxu1 %vm6743_vm0, %v5615_v46  ;;  %v5631_v4 = vsel %vm6731_vm7, %v1766_v38, %v1767_v48 }
  0x57   : > { %v4195_v13 = vcombine.low %v5397_v8, %v1924_v5  ;;  %vm958_vm6 = vcmp.lt.s32.totalorder %v636_v52, 15  ;;  %v1769_v7 = vor.u32 %v1767_v48, %v6723_v47  ;;  %vm5637_vm8 = vmand %vm1110_vm4, %vm6732_vm3  ;;  %v6887_v18 = vmov 0  ;;  %4564 = vmatprep.mubr.bf16.mxu1 %v6741_v2 }
  0x58   : > { %v6888_v18 = vsel %vm5637_vm8, 4294967295, %v6887_v18  ;;  %vm1894_vm9 = vmpackc.low %vm958_vm6, %vm958_vm6  ;;  %v545_v43 = vand.u32 15, %v497_v6  ;;  %v5644_v0 = vsel %vm5637_vm8, 0, %v982_v60  ;;  %v512_v61 = vadd.s32 136, %v5236_v10 }
  0x59   : > { %6889 = vst [vmem:[#allocation14_spill] sm:$0xff] %v6888_v18  ;;  %6890 = vst [vmem:[#allocation15_spill] sm:$0xff] %v5644_v0  ;;  %v6725_v38 = vshrl.u32 %v5402_v14, 16  ;;  %vm5648_vm14 = vcmp.ne.s16.totalorder %v4195_v13, 0  ;;  %v6891_v25 = vmov 0  ;;  %v5653_v48 = vsel %vm6731_vm7, %v1769_v7, %v1770_v53 }
  0x5a   : > { %v6892_v25 = vsel %vm5648_vm14, 4294967295, %v6891_v25  ;;  %6893 = vst [vmem:[#allocation16_spill] sm:$0xff] %v5653_v48  ;;  %v1926_v52 = vsel %vm1894_vm9, 65537, %v6741_v2  ;;  %v6724_v5 = vshll.u32 %v5463_v58, 16  ;;  %v2790_v6 = vsel %vm5648_vm14, %v5631_v4, 0 }
  0x5b   : > { %v4196_v60 = vcombine.low %v5397_v8, %v1926_v52  ;;  %vm913_vm15 = vcmp.gt.s32.totalorder %v545_v43, 0  ;;  %v650_v40 = vand.u32 15, %v512_v61  ;;  %4720 = vmatprep.mubr.msk.bf16.mxu0 %vm6743_vm0, %v2790_v6  ;;  %v1772_v13 = vor.u32 %v1770_v53, %v6725_v38 }
  0x5c   : > { %vm1177_vm1 = vmpackc.low %vm913_vm15, %vm913_vm15  ;;  %v1773_v7 = vrot.slane %v6724_v5, 1  ;;  %v514_v35 = vadd.s32 152, %v5236_v10  ;;  %v6729_v37 = vshrl.u32 %v5463_v58, 16  ;;  %v6894_v47 = vmov 0 }
  0x5d   : > { %vm5668_vm4 = vcmp.ne.s16.totalorder %v4196_v60, 0  ;;  %v1207_v43 = vsel %vm1177_vm1, 65537, %v6741_v2  ;;  %vm960_vm6 = vcmp.lt.s32.totalorder %v650_v40, 15  ;;  %v6728_v61 = vshll.u32 %v5479_v23, 16 }
  0x5e   : > { %v6895_v47 = vsel %vm5668_vm4, 4294967295, %v6894_v47  ;;  %v2791_v53 = vsel %vm5668_vm4, %v5653_v48, 0  ;;  %v4136_v52 = vcombine.low %v1207_v43, %v5397_v8  ;;  %v5679_v6 = vsel %vm6731_vm7, %v1772_v13, %v1773_v7  ;;  %vm1896_vm9 = vmpackc.low %vm960_vm6, %vm960_vm6  ;;  %v5129_v43 = vld [vmem:[%s6717_s3 + $0x28] sm:$0xff]  }
  0x5f   : > { %6896 = vst [vmem:[#allocation17_spill] sm:$0xff] %v6895_v47  ;;  %6897 = vst [vmem:[#allocation18_spill] sm:$0xff] %v5679_v6  ;;  %v664_v5 = vand.u32 15, %v514_v35  ;;  %4721 = vmatmul.mubr.msk.bf16.gmra.mrb[12].mxu0 %vm6743_vm0, %v2791_v53  ;;  %v1928_v60 = vsel %vm1896_vm9, 65537, %v6741_v2  ;;  %v1775_v40 = vor.u32 %v1773_v7, %v6729_v37  ;;  %v1776_v38 = vrot.slane %v6728_v61, 1 }
  0x60   : > { %v499_v12 = vadd.s32 32, %v5236_v10  ;;  %vm5688_vm15 = vcmp.ne.s16.totalorder %v4136_v52, 0  ;;  %v6898_v54 = vmov 0  ;;  %v4197_v13 = vcombine.low %v5397_v8, %v1928_v60 }
  0x61   : > { %v6899_v54 = vsel %vm5688_vm15, 4294967295, %v6898_v54  ;;  %vm962_vm1 = vcmp.lt.s32.totalorder %v664_v5, 15  ;;  %v986_v35 = vrot.slane %v984_v1, 7  ;;  %v1297_v7 = vsel %vm5688_vm15, %v5644_v0, 0 }
  0x62   : > { %6900 = vst [vmem:[#allocation19_spill] sm:$0xff] %v6899_v54  ;;  %v5702_v53 = vsel %vm6731_vm7, %v1775_v40, %v1776_v38  ;;  %vm1898_vm6 = vmpackc.low %vm962_vm1, %vm962_vm1  ;;  %v559_v52 = vand.u32 15, %v499_v12  ;;  %v501_v61 = vadd.s32 48, %v5236_v10  ;;  %4565 = vmatmul.mubr.msk.bf16.vlgmr.msra.gmra.mrb[0].mxu1 %vm6743_vm0, %v1297_v7  ;;  %vm5706_vm9 = vcmp.ne.s16.totalorder %v4197_v13, 0 }
  0x63   : > { %6901 = vst [vmem:[#allocation20_spill] sm:$0xff] %v5702_v53  ;;  %v6902_v5 = vmov 0  ;;  %v1930_v1 = vsel %vm1898_vm6, 65537, %v6741_v2  ;;  %v989_v60 = vor.u32 %v987_v3, %v986_v35  ;;  %v5715_v37 = vrot.slane %v992_v55, 7  ;;  %4597 = vmatpush3.bf16.msra.mxu1 %v5325_v21  ;;  %v5735_v21 = vld [vmem:[%s6717_s3 + $0x30] sm:$0xff]  }
  0x64   : > { %v6903_v5 = vsel %vm5706_vm9, 4294967295, %v6902_v5  ;;  %v2792_v12 = vsel %vm5706_vm9, %v5679_v6, 0  ;;  %v4198_v40 = vcombine.low %v5397_v8, %v1930_v1  ;;  %vm915_vm1 = vcmp.gt.s32.totalorder %v559_v52, 0  ;;  %4598 = vmatprep.subr.bf16.mxu1 %v5129_v43 }
  0x65   : > { %6904 = vst [vmem:[#allocation21_spill] sm:$0xff] %v6903_v5  ;;  %v573_v13 = vand.u32 15, %v501_v61  ;;  %4724 = vmatprep.mubr.msk.bf16.mxu0 %vm6743_vm0, %v2792_v12  ;;  %v5725_v7 = vsel %vm6732_vm3, %v5477_v19, %v989_v60  ;;  %vm1179_vm6 = vmpackc.low %vm915_vm1, %vm915_vm1  ;;  %v997_v3 = vor.u32 %v995_v22, %v5715_v37  ;;  %v516_v55 = vadd.s32 168, %v5236_v10 }
  0x66   : > { %6905 = vst [vmem:[#allocation22_spill] sm:$0xff] %v5725_v7  ;;  %v6736_v27 = vshrl.u32 %v5479_v23, 16  ;;  %vm5737_vm7 = vcmp.ne.s16.totalorder %v4198_v40, 0  ;;  %v6906_v61 = vmov 0  ;;  %v1209_v19 = vsel %vm1179_vm6, 65537, %v6741_v2 }
  0x67   : > { %v6907_v61 = vsel %vm5737_vm7, 4294967295, %v6906_v61  ;;  %vm917_vm1 = vcmp.gt.s32.totalorder %v573_v13, 0  ;;  %v2793_v52 = vsel %vm5737_vm7, %v5702_v53, 0  ;;  %v4137_v1 = vcombine.low %v1209_v19, %v5397_v8  ;;  %4599 = vmatpush3.bf16.msra.mxu1 %v5129_v43 }
  0x68   : > { %6908 = vst [vmem:[#allocation23_spill] sm:$0xff] %v6907_v61  ;;  %vm1181_vm3 = vmpackc.low %vm917_vm1, %vm917_vm1  ;;  %v678_v60 = vand.u32 15, %v516_v55  ;;  %4725 = vmatmul.mubr.msk.bf16.gmra.mrb[16].mxu0 %vm6743_vm0, %v2793_v52  ;;  %vm6909_vm8 = vsmask.f32 256  ;;  %v6735_v45 = vshll.u32 %v5537_v24, 16  ;;  %v1778_v13 = vor.u32 %v1776_v38, %v6736_v27  ;;  %4632 = vmatprep.subr.bf16.mxu1 %v5735_v21 }
  0x69   : > { %v5751_v12 = vsel %vm6909_vm8, %v986_v35, %v997_v3  ;;  %v1211_v40 = vsel %vm1181_vm3, 65537, %v6741_v2  ;;  %vm5757_vm6 = vcmp.ne.s16.totalorder %v4137_v1, 0  ;;  %v518_v55 = vadd.s32 184, %v5236_v10 }
  0x6a   : > { %v4138_v19 = vcombine.low %v1211_v40, %v5397_v8  ;;  %vm964_vm1 = vcmp.lt.s32.totalorder %v678_v60, 15  ;;  %v1298_v35 = vsel %vm5757_vm6, %v5725_v7, 0  ;;  %v1779_v3 = vrot.slane %v6735_v45, 1 }
  0x6b   : > { %vm1900_vm3 = vmpackc.low %vm964_vm1, %vm964_vm1  ;;  %v6749_v38 = vshrl.u32 %v5537_v24, 16  ;;  %v6748_v43 = vshll.u32 %v5559_v34, 16  ;;  %4568 = vmatprep.mubr.msk.bf16.mxu1 %vm6743_vm0, %v1298_v35  ;;  %v692_v60 = vand.u32 15, %v518_v55  ;;  %v503_v40 = vadd.s32 64, %v5236_v10 }
  0x6c   : > { %vm5772_vm8 = vcmp.ne.s16.totalorder %v4138_v19, 0  ;;  %v1932_v1 = vsel %vm1900_vm3, 65537, %v6741_v2  ;;  %vm6914_vm1 = vsmask.f32 7424  ;;  %v1002_v56 = vrot.slane %v1000_v9, 7 }
  0x6d   : > { %v1299_v45 = vsel %vm5772_vm8, %v5751_v12, 0  ;;  %v5782_v27 = vsel %vm6914_vm1, %v1778_v13, %v1779_v3  ;;  %v4199_v11 = vcombine.low %v5397_v8, %v1932_v1  ;;  %v1781_v19 = vor.u32 %v1779_v3, %v6749_v38 }
  0x6e   : > { %6915 = vst [vmem:[#allocation24_spill] sm:$0xff] %v5782_v27  ;;  %4569 = vmatmul.mubr.msk.bf16.gmra.mrb[4].mxu1 %vm6743_vm0, %v1299_v45  ;;  %vm966_vm7 = vcmp.lt.s32.totalorder %v692_v60, 15  ;;  %v1782_v55 = vrot.slane %v6748_v43, 1  ;;  %v587_v35 = vand.u32 15, %v503_v40  ;;  %v6916_v2 = vmov 0 }
  0x6f   : > { %vm5792_vm3 = vcmp.ne.s16.totalorder %v4199_v11, 0  ;;  %vm1902_vm1 = vmpackc.low %vm966_vm7, %vm966_vm7  ;;  %v505_v13 = vadd.s32 80, %v5236_v10  ;;  %v5799_v3 = vrot.slane %v1008_v20, 7  ;;  %v520_v45 = vadd.s32 200, %v5236_v10 }
  0x70   : > { %v6917_v2 = vsel %vm5792_vm3, 4294967295, %v6916_v2  ;;  %v2794_v1 = vsel %vm5792_vm3, %v5782_v27, 0  ;;  %vm6919_vm0 = vsmask.f32 7424  ;;  %v6921_v9 = vmov 0  }
  0x71   : > { %6918 = vst [vmem:[#allocation25_spill] sm:$0xff] %v6917_v2  ;;  %v5806_v60 = vsel %vm6919_vm0, %v1781_v19, %v1782_v55  ;;  %v1934_v11 = vsel %vm1902_vm1, 65537, %v6921_v9  ;;  %vm919_vm9 = vcmp.gt.s32.totalorder %v587_v35, 0  ;;  %vm6922_vm4 = vcmask 261120  }
  0x72   : > { %6920 = vst [vmem:[#allocation26_spill] sm:$0xff] %v5806_v60  ;;  %4728 = vmatprep.mubr.msk.bf16.mxu0 %vm6922_vm4, %v2794_v1  ;;  %v4200_v40 = vcombine.low %v5397_v8, %v1934_v11  ;;  %v6923_v43 = vshll.u32 %v5317_v15, 16  ;;  %vm1183_vm7 = vmpackc.low %vm919_vm9, %vm919_vm9  ;;  %v601_v38 = vand.u32 15, %v505_v13  ;;  %v6924_v0 = vshll.u32 %v5335_v30, 16 }
  0x73   : > { %v1213_v27 = vsel %vm1183_vm7, 65537, %v6921_v9  ;;  %v706_v19 = vand.u32 15, %v520_v45  ;;  %v6763_v2 = vshrl.u32 %v5559_v34, 16  ;;  %v6762_v35 = vshll.u32 %v5606_v28, 16 }
  0x74   : > { %v1005_v20 = vor.u32 %v6923_v43, %v1002_v56  ;;  %v1013_v62 = vor.u32 %v6924_v0, %v5799_v3  ;;  %vm5819_vm0 = vcmp.ne.s16.totalorder %v4200_v40, 0  ;;  %v6925_v1 = vmov 0 }
  0x75   : > { %v6926_v1 = vsel %vm5819_vm0, 4294967295, %v6925_v1  ;;  %vm6928_vm4 = vsmask.f32 256  ;;  %v4139_v13 = vcombine.low %v1213_v27, %v5397_v8  ;;  %vm921_vm9 = vcmp.gt.s32.totalorder %v601_v38, 0 }
  0x76   : > { %6927 = vst [vmem:[#allocation27_spill] sm:$0xff] %v6926_v1  ;;  %v5825_v43 = vsel %vm6928_vm4, %v5715_v37, %v1005_v20  ;;  %v2795_v0 = vsel %vm5819_vm0, %v5806_v60, 0  ;;  %vm6929_vm1 = vmmov %vm6928_vm4  ;;  %vm968_vm3 = vcmp.lt.s32.totalorder %v706_v19, 15  ;;  %v1784_v11 = vor.u32 %v1782_v55, %v6763_v2  ;;  %v303_v1 = vld [vmem:[%s5229_s16 + $0xf8] sm:$0xff] }
  0x77   : > { %v5832_v45 = vsel %vm6929_vm1, %v1002_v56, %v1013_v62  ;;  %vm1185_vm7 = vmpackc.low %vm921_vm9, %vm921_vm9  ;;  %vm6930_vm14 = vcmask 261120   ;;  %vm5837_vm13 = vcmp.ne.s16.totalorder %v4139_v13, 0  ;;  %v6931_v37 = vmov 0 }
  0x78   : > { %4729 = vmatmul.mubr.msk.bf16.gmra.mrb[20].mxu0 %vm6930_vm14, %v2795_v0  ;;  %v6932_v37 = vsel %vm5837_vm13, 4294967295, %v6931_v37  ;;  %v1215_v27 = vsel %vm1185_vm7, 65537, %v6921_v9  ;;  %v1785_v38 = vrot.slane %v6762_v35, 1  ;;  %vm1904_vm4 = vmpackc.low %vm968_vm3, %vm968_vm3  ;;  %v522_v62 = vadd.s32 216, %v5236_v10 }
  0x79   : > { %v1300_v56 = vsel %vm5837_vm13, %v5825_v43, 0  ;;  %v4140_v55 = vcombine.low %v1215_v27, %v5397_v8  ;;  %v1936_v40 = vsel %vm1904_vm4, 65537, %v6921_v9  ;;  %v6767_v20 = vshrl.u32 %v5606_v28, 16  ;;  %vm6941_vm4 = vmmov %vm6930_vm14 }
  0x7a   : > { %4572 = vmatprep.mubr.msk.bf16.mxu1 %vm6930_vm14, %v1300_v56  ;;  %vm6933_vm9 = vsmask.f32 7424  ;;  %v4201_v13 = vcombine.low %v5397_v8, %v1936_v40  ;;  %v720_v0 = vand.u32 15, %v522_v62  ;;  %v6773_v35 = vshll.u32 %v5615_v46, 16 }
  0x7b   : > { %v5853_v19 = vsel %vm6933_vm9, %v1784_v11, %v1785_v38  ;;  %vm5857_vm3 = vcmp.ne.s16.totalorder %v4140_v55, 0  ;;  %v6935_v2 = vmov 0  ;;  %v1787_v27 = vor.u32 %v1785_v38, %v6767_v20  ;;  %v302_v11 = vld [vmem:[%s5229_s16 + $0xf0] sm:$0xff]  ;;  %vm6943_vm9 = vmmov %vm6941_vm4  ;;  %s268_s16 = scalar_lea.vmem %s6720_s6, %s7205_s22 }
  0x7c   : > { %6934 = vst [vmem:[#allocation28_spill] sm:$0xff] %v5853_v19  ;;  %v6936_v2 = vsel %vm5857_vm3, 4294967295, %v6935_v2  ;;  %v507_v30 = vadd.s32 96, %v5236_v10  ;;  %v6937_v56 = vshrl.u32 %v5349_v41, 16  ;;  %v1301_v62 = vsel %vm5857_vm3, %v5832_v45, 0 }
  0x7d   : > { %vm5870_vm1 = vcmp.ne.s16.totalorder %v4201_v13, 0  ;;  %v6938_v40 = vmov 0  ;;  %vm970_vm7 = vcmp.lt.s32.totalorder %v720_v0, 15  ;;  %v1788_v55 = vrot.slane %v6773_v35, 1  ;;  %4573 = vmatmul.mubr.msk.bf16.gmra.mrb[8].mxu1 %vm6941_vm4, %v1301_v62 }
  0x7e   : > { %v1018_v60 = vrot.slane %v6937_v56, 7  ;;  %v6939_v40 = vsel %vm5870_vm1, 4294967295, %v6938_v40  ;;  %v2796_v38 = vsel %vm5870_vm1, %v5853_v19, 0  ;;  %vm1906_vm14 = vmpackc.low %vm970_vm7, %vm970_vm7  ;;  %v615_v56 = vand.u32 15, %v507_v30  ;;  %v5136_v30 = vld [vmem:[%s6715_s1] ss:$0 sm:$0xff] }
  0x7f   : > { %6940 = vst [vmem:[#allocation29_spill] sm:$0xff] %v6939_v40  ;;  %v6942_v20 = vshll.u32 %v5349_v41, 16  ;;  %v509_v13 = vadd.s32 112, %v5236_v10  ;;  %4732 = vmatprep.mubr.msk.bf16.mxu0 %vm6943_vm9, %v2796_v38  ;;  %vm6944_vm0 = vsmask.f32 7424  ;;  %v1938_v35 = vsel %vm1906_vm14, 65537, %v6921_v9 }
  0x80   : > { %v5886_v0 = vsel %vm6944_vm0, %v1787_v27, %v1788_v55  ;;  %v6946_v62 = vshrl.u32 %v5354_v50, 16  ;;  %v341_v41 = vmul.f32 %v5136_v30, %v302_v11  ;;  %vm923_vm7 = vcmp.gt.s32.totalorder %v615_v56, 0 }
  0x81   : > { %v1021_v15 = vor.u32 %v6942_v20, %v1018_v60  ;;  %6945 = vst [vmem:[#allocation30_spill] sm:$0xff] %v5886_v0  ;;  %v4202_v20 = vcombine.low %v5397_v8, %v1938_v35  ;;  %vm6947_vm4 = vsmask.f32 256  ;;  %v629_v27 = vand.u32 15, %v509_v13  ;;  %vm1187_vm0 = vmpackc.low %vm923_vm7, %vm923_vm7 }
  0x82   : > { %v5891_v53 = vrot.slane %v6946_v62, 7  ;;  %v6948_v19 = vshll.u32 %v5354_v50, 16  ;;  %v342_v62 = vmul.f32 %v5136_v30, %v303_v1  ;;  %v380_v61 = vadd.f32 %v5137_v49, %v341_v41  ;;  %vm6952_vm7 = vmmov %vm6947_vm4 }
  0x83   : > { %v5899_v38 = vsel %vm6947_vm4, %v5799_v3, %v1021_v15  ;;  %v524_v11 = vadd.s32 232, %v5236_v10  ;;  %vm5908_vm14 = vcmp.ne.s16.totalorder %v4202_v20, 0  ;;  %v6949_v35 = vmov 0 }
  0x84   : > { %v1029_v40 = vor.u32 %v6948_v19, %v5891_v53  ;;  %v6950_v35 = vsel %vm5908_vm14, 4294967295, %v6949_v35  ;;  %v1217_v15 = vsel %vm1187_vm0, 65537, %v6921_v9  ;;  %vm925_vm9 = vcmp.gt.s32.totalorder %v629_v27, 0 }
  0x85   : > { %6951 = vst [vmem:[#allocation31_spill] sm:$0xff] %v6950_v35  ;;  %v2797_v1 = vsel %vm5908_vm14, %v5886_v0, 0  ;;  %v4141_v19 = vcombine.low %v1217_v15, %v5397_v8  ;;  %vm1189_vm4 = vmpackc.low %vm925_vm9, %vm925_vm9  ;;  %v381_v41 = vadd.f32 %v5137_v49, %v342_v62  ;;  %vm6953_vm1 = vcmask 261120  }
  0x86   : > { %v5919_v56 = vsel %vm6952_vm7, %v1018_v60, %v1029_v40  ;;  %4733 = vmatmul.mubr.msk.bf16.gmra.mrb[24].mxu0 %vm6953_vm1, %v2797_v1  ;;  %v1219_v13 = vsel %vm1189_vm4, 65537, %v6921_v9  ;;  %vm412_vm2 = vcmp.gt.f32.partialorder %v380_v61, 0.0  ;;  %v444_v30 = vmul.f32 0.1, %v380_v61 }
  0x87   : > { %v734_v20 = vand.u32 15, %v524_v11  ;;  %vm5923_vm0 = vcmp.ne.s16.totalorder %v4141_v19, 0  ;;  %v6954_v27 = vmov 0  ;;  %v4142_v3 = vcombine.low %v1219_v13, %v5397_v8 }
  0x88   : > { %v6955_v27 = vsel %vm5923_vm0, 4294967295, %v6954_v27  ;;  %vm413_vm14 = vcmp.gt.f32.partialorder %v381_v41, 0.0  ;;  %v445_v15 = vmul.f32 0.1, %v381_v41  ;;  %v1302_v60 = vsel %vm5923_vm0, %v5899_v38, 0 }
  0x89   : > { %v476_v49 = vsel %vm412_vm2, %v380_v61, %v444_v30  ;;  %vm972_vm9 = vcmp.lt.s32.totalorder %v734_v20, 15  ;;  %v6956_v40 = vshrl.u32 %v5615_v46, 16  ;;  %4576 = vmatprep.mubr.msk.bf16.mxu1 %vm6953_vm1, %v1302_v60  ;;  %vm5934_vm7 = vcmp.ne.s16.totalorder %v4142_v3, 0  ;;  %vm6959_vm2 = vmmov %vm6953_vm1 }
  0x8a   : > { %v6957_v11 = vmov 0  ;;  %v477_v1 = vsel %vm413_vm14, %v381_v41, %v445_v15  ;;  %vm1908_vm4 = vmpackc.low %vm972_vm9, %vm972_vm9  ;;  %v526_v19 = vadd.s32 248, %v5236_v10  ;;  %vm1812_vm10 = vcmask 1047552  }
  0x8b   : > { %v1790_v62 = vor.u32 %v1788_v55, %v6956_v40  ;;  %v6958_v11 = vsel %vm5934_vm7, 4294967295, %v6957_v11  ;;  %v1303_v13 = vsel %vm5934_vm7, %v5919_v56, 0  ;;  %v5942_v61 = vpack.c.bf16 %v477_v1, %v476_v49 }
  0x8c   : > { %v1940_v30 = vsel %vm1908_vm4, 65537, %v6921_v9  ;;  %v511_v55 = vadd.s32 128, %v5236_v10  ;;  %4577 = vmatmul.mubr.msk.bf16.gmra.mrb[12].mxu1 %vm6959_vm2, %v1303_v13  ;;  %v748_v20 = vand.u32 15, %v526_v19  ;;  %v6960_v41 = vshrl.u32 %v5383_v63, 16 }
  0x8d   : > { %v4203_v3 = vcombine.low %v5397_v8, %v1940_v30  ;;  %v513_v60 = vadd.s32 144, %v5236_v10  ;;  %v6804_v40 = vshll.u32 %v5942_v61, 16  ;;  %v6961_v1 = vshrl.u32 %v5402_v14, 16 }
  0x8e   : > { %v1034_v15 = vrot.slane %v6960_v41, 7  ;;  %v643_v49 = vand.u32 15, %v511_v55  ;;  %vm974_vm14 = vcmp.lt.s32.totalorder %v748_v20, 15  ;;  %vm6962_vm9 = vsmask.f32 7424 }
  0x8f   : > { %v5955_v0 = vrot.slane %v6961_v1, 7  ;;  %vm5959_vm1 = vmand %vm1812_vm10, %vm6962_vm9  ;;  %v6965_v19 = vshll.u32 %v5383_v63, 16  ;;  %v657_v41 = vand.u32 15, %v513_v60  ;;  %v1794_v35 = vrot.slane %v6804_v40, 1 }
  0x90   : > { %vm5967_vm4 = vcmp.ne.s16.totalorder %v4203_v3, 0  ;;  %v6966_v55 = vmov 0  ;;  %vm1910_vm2 = vmpackc.low %vm974_vm14, %vm974_vm14  ;;  %vm927_vm12 = vcmp.gt.s32.totalorder %v643_v49, 0  ;;  %v6969_v20 = vshll.u32 %v5402_v14, 16 }
  0x91   : > { %v1037_v30 = vor.u32 %v6965_v19, %v1034_v15  ;;  %v6967_v55 = vsel %vm5967_vm4, 4294967295, %v6966_v55  ;;  %v1942_v50 = vsel %vm1910_vm2, 65537, %v6921_v9  ;;  %vm6970_vm10 = vsmask.f32 256  ;;  %vm1191_vm9 = vmpackc.low %vm927_vm12, %vm927_vm12 }
  0x92   : > { %6968 = vst [vmem:[#allocation32_spill] sm:$0xff] %v6967_v55  ;;  %v1045_v1 = vor.u32 %v6969_v20, %v5955_v0  ;;  %vm929_vm5 = vcmp.gt.s32.totalorder %v657_v41, 0  ;;  %v531_v60 = vand.u32 15, %v5236_v10  ;;  %vm6971_vm7 = vsmask.f32 7424  ;;  %vm6973_vm12 = vmmov %vm6970_vm10 }
  0x93   : > { %v5977_v63 = vsel %vm6970_vm10, %v5891_v53, %v1037_v30  ;;  %v5981_v3 = vsel %vm6971_vm7, %v1790_v62, %v1794_v35  ;;  %v4204_v19 = vcombine.low %v5397_v8, %v1942_v50  ;;  %v6972_v49 = vshrl.u32 %v5942_v61, 16  ;;  %vm1193_vm14 = vmpackc.low %vm929_vm5, %vm929_vm5 }
  0x94   : > { %v1221_v20 = vsel %vm1191_vm9, 65537, %v6921_v9  ;;  %v2798_v53 = vsel %vm5967_vm4, %v5981_v3, 0  ;;  %v5992_v41 = vsel %vm6973_vm12, %v1034_v15, %v1045_v1  ;;  %v1223_v62 = vsel %vm1193_vm14, 65537, %v6921_v9 }
  0x95   : > { %v2781_v40 = vor.u32 %v6972_v49, %v1794_v35  ;;  %v4143_v30 = vcombine.low %v1221_v20, %v5397_v8  ;;  %vm6974_vm7 = vcmask 261120   ;;  %vm5996_vm2 = vcmp.ne.s16.totalorder %v4204_v19, 0 }
  0x96   : > { %4736 = vmatprep.mubr.msk.bf16.mxu0 %vm6974_vm7, %v2798_v53  ;;  %v4144_v49 = vcombine.low %v1223_v62, %v5397_v8  ;;  %vm911_vm5 = vcmp.gt.s32.totalorder %v531_v60, 0  ;;  %v6978_v1 = vmov 0  ;;  %v515_v19 = vadd.s32 160, %v5236_v10  ;;  %vm6981_vm14 = vmmov %vm6974_vm7 }
  0x97   : > { %v6002_v35 = vsel %vm5959_vm1, %v2781_v40, 0  ;;  %vm6008_vm10 = vcmp.ne.s16.totalorder %v4143_v30, 0  ;;  %vm2287_vm9 = vmpackc.low %vm911_vm5, %vm911_vm5  ;;  %v6980_v20 = vshrl.u32 %v5463_v58, 16  ;;  %v6982_v60 = vmov 0 }
  0x98   : > { %6977 = vst [vmem:[#allocation33_spill] sm:$0xff] %v6002_v35  ;;  %v2799_v15 = vsel %vm5996_vm2, %v6002_v35, 0  ;;  %v6979_v1 = vsel %vm6008_vm10, 4294967295, %v6978_v1  ;;  %v1304_v40 = vsel %vm6008_vm10, %v5977_v63, 0  ;;  %vm6019_vm12 = vcmp.ne.s16.totalorder %v4144_v49, 0  ;;  %vm6984_vm5 = vmmov %vm6974_vm7 }
  0x99   : > { %v1050_v53 = vrot.slane %v6980_v20, 7  ;;  %4737 = vmatmul.mubr.msk.bf16.gmra.mrb[28].mxu0 %vm6981_vm14, %v2799_v15  ;;  %v6983_v60 = vsel %vm6019_vm12, 4294967295, %v6982_v60  ;;  %v2289_v30 = vsel %vm2287_vm9, 65537, %v6921_v9  ;;  %v517_v62 = vadd.s32 176, %v5236_v10  ;;  %4580 = vmatprep.mubr.msk.bf16.mxu1 %vm6974_vm7, %v1304_v40 }
  0x9a   : > { %v1305_v20 = vsel %vm6019_vm12, %v5992_v41, 0  ;;  %v4227_v15 = vcombine.low %v2289_v30, %v5397_v8  ;;  %v671_v14 = vand.u32 15, %v515_v19  ;;  %v3061_v49 = vsel %vm5688_vm15, %v5751_v12, 0 }
  0x9b   : > { %4581 = vmatmul.mubr.msk.bf16.gmra.mrb[16].mxu1 %vm6984_vm5, %v1305_v20  ;;  %v6985_v6 = vshll.u32 %v5463_v58, 16  ;;  %v685_v35 = vand.u32 15, %v517_v62  ;;  %v6986_v18 = vshrl.u32 %v5479_v23, 16  ;;  %v6987_v5 = vmov 0 }
  0x9c   : > { %vm6038_vm9 = vcmp.ne.s16.totalorder %v4227_v15, 0  ;;  %vm931_vm14 = vcmp.gt.s32.totalorder %v671_v14, 0  ;;  %v3062_v19 = vsel %vm5757_vm6, %v5825_v43, 0  ;;  %v519_v30 = vadd.s32 192, %v5236_v10 }
  0x9d   : > { %v1053_v55 = vor.u32 %v6985_v6, %v1050_v53  ;;  %v1058_v40 = vrot.slane %v6986_v18, 7  ;;  %v6988_v5 = vsel %vm6038_vm9, 4294967295, %v6987_v5  ;;  %v3060_v20 = vsel %vm6038_vm9, %v5725_v7, 0  ;;  %vm1195_vm7 = vmpackc.low %vm931_vm14, %vm931_vm14 }
  0x9e   : > { %6989 = vst [vmem:[#allocation34_spill] sm:$0xff] %v6988_v5  ;;  %vm933_vm5 = vcmp.gt.s32.totalorder %v685_v35, 0  ;;  %v6990_v6 = vshll.u32 %v5479_v23, 16  ;;  %v6991_v62 = vshrl.u32 %v5537_v24, 16  ;;  %vm6992_vm15 = vcmask 261120  }
  0x9f   : > { %4744 = vmatprep.mubr.msk.bf16.mxu0 %vm6992_vm15, %v3060_v20  ;;  %v1225_v14 = vsel %vm1195_vm7, 65537, %v6921_v9  ;;  %vm1197_vm4 = vmpackc.low %vm933_vm5, %vm933_vm5  ;;  %v699_v54 = vand.u32 15, %v519_v30  ;;  %v521_v58 = vadd.s32 208, %v5236_v10  ;;  %v6993_v48 = vshrl.u32 %v5559_v34, 16  ;;  %v5132_v30 = vld [vmem:[%s6717_s3 + $0x78] sm:$0xff]  }
  0xa0   : > { %v1061_v18 = vor.u32 %v6990_v6, %v1058_v40  ;;  %v1066_v15 = vrot.slane %v6991_v62, 7  ;;  %vm6994_vm14 = vsmask.f32 256  ;;  %v4145_v6 = vcombine.low %v1225_v14, %v5397_v8 }
  0xa1   : > { %v1074_v5 = vrot.slane %v6993_v48, 7  ;;  %v6060_v35 = vsel %vm6994_vm14, %v5955_v0, %v1053_v55  ;;  %v1227_v23 = vsel %vm1197_vm4, 65537, %v6921_v9  ;;  %v6995_v62 = vshll.u32 %v5537_v24, 16  ;;  %vm6996_vm15 = vmmov %vm6994_vm14 }
  0xa2   : > { %v6070_v7 = vsel %vm6996_vm15, %v1050_v53, %v1061_v18  ;;  %v4146_v48 = vcombine.low %v1227_v23, %v5397_v8  ;;  %vm935_vm7 = vcmp.gt.s32.totalorder %v699_v54, 0  ;;  %v713_v47 = vand.u32 15, %v521_v58 }
  0xa3   : > { %v1069_v20 = vor.u32 %v6995_v62, %v1066_v15  ;;  %vm6997_vm5 = vcmask 261120   ;;  %vm6074_vm14 = vcmp.ne.s16.totalorder %v4145_v6, 0  ;;  %v6998_v0 = vmov 0  ;;  %vm1199_vm4 = vmpackc.low %vm935_vm7, %vm935_vm7 }
  0xa4   : > { %4745 = vmatmul.mubr.msk.bf16.vlgmr.msra.gmra.mrb[0].mxu0 %vm6997_vm5, %v3061_v49  ;;  %v6999_v0 = vsel %vm6074_vm14, 4294967295, %v6998_v0  ;;  %v7000_v55 = vshll.u32 %v5559_v34, 16  ;;  %v1306_v53 = vsel %vm6074_vm14, %v6060_v35, 0  ;;  %vm6084_vm15 = vcmp.ne.s16.totalorder %v4146_v48, 0  ;;  %vm7003_vm9 = vmmov %vm6997_vm5 }
  0xa5   : > { %4777 = vmatpush3.bf16.msra.mxu0 %v5520_v51  ;;  %v7001_v23 = vmov 0  ;;  %4748 = vmatprep.mubr.msk.bf16.mxu0 %vm7003_vm9, %v3062_v19  ;;  %v1229_v58 = vsel %vm1199_vm4, 65537, %v6921_v9  ;;  %vm937_vm5 = vcmp.gt.s32.totalorder %v713_v47, 0  ;;  %vm7004_vm12 = vmmov %vm7003_vm9  ;;  %v1307_v54 = vsel %vm6084_vm15, %v6070_v7, 0  ;;  %v6102_v19 = vld [vmem:[%s6717_s3 + $0x80] sm:$0xff]  }
  0xa6   : > { %v1077_v14 = vor.u32 %v7000_v55, %v1074_v5  ;;  %v7002_v23 = vsel %vm6084_vm15, 4294967295, %v7001_v23  ;;  %4584 = vmatprep.mubr.msk.bf16.mxu1 %vm7004_vm12, %v1306_v53  ;;  %vm7005_vm7 = vsmask.f32 256  ;;  %v4147_v49 = vcombine.low %v1229_v58, %v5397_v8  ;;  %vm1201_vm14 = vmpackc.low %vm937_vm5, %vm937_vm5  ;;  %4778 = vmatprep.subr.bf16.mxu0 %v5132_v30 }
  0xa7   : > { %v6095_v51 = vsel %vm7005_vm7, %v1058_v40, %v1069_v20  ;;  %v523_v18 = vadd.s32 224, %v5236_v10  ;;  %4585 = vmatmul.mubr.msk.bf16.gmra.mrb[20].mxu1 %vm7003_vm9, %v1307_v54  ;;  %v3063_v47 = vsel %vm5772_vm8, %v5832_v45, 0  ;;  %v1231_v40 = vsel %vm1201_vm14, 65537, %v6921_v9  ;;  %vm7009_vm4 = vmmov %vm7005_vm7 }
  0xa8   : > { %v7006_v6 = vshrl.u32 %v5606_v28, 16  ;;  %v525_v20 = vadd.s32 240, %v5236_v10  ;;  %vm6112_vm12 = vcmp.ne.s16.totalorder %v4147_v49, 0  ;;  %v7007_v48 = vmov 0  ;;  %vm7012_vm14 = vmmov %vm7003_vm9 }
  0xa9   : > { %v7008_v48 = vsel %vm6112_vm12, 4294967295, %v7007_v48  ;;  %v6117_v55 = vsel %vm7009_vm4, %v1066_v15, %v1077_v14  ;;  %v4148_v53 = vcombine.low %v1231_v40, %v5397_v8  ;;  %v727_v58 = vand.u32 15, %v523_v18  ;;  %4779 = vmatpush3.bf16.msra.mxu0 %v5132_v30 }
  0xaa   : > { %v1082_v62 = vrot.slane %v7006_v6, 7  ;;  %v1308_v54 = vsel %vm6112_vm12, %v6095_v51, 0  ;;  %v7010_v34 = vshll.u32 %v5606_v28, 16  ;;  %v741_v6 = vand.u32 15, %v525_v20  ;;  %4812 = vmatprep.subr.bf16.mxu0 %v6102_v19  ;;  %vm7015_vm12 = vmmov %vm7012_vm14 }
  0xab   : > { %v7011_v10 = vshrl.u32 %v5615_v46, 16  ;;  %4588 = vmatprep.mubr.msk.bf16.mxu1 %vm7012_vm14, %v1308_v54  ;;  %vm6128_vm5 = vcmp.ne.s16.totalorder %v4148_v53, 0  ;;  %v7013_v15 = vmov 0  ;;  %v3064_v14 = vsel %vm5837_vm13, %v5899_v38, 0  ;;  %vm7016_vm15 = vmmov %vm7015_vm12 }
  0xac   : > { %v1085_v24 = vor.u32 %v7010_v34, %v1082_v62  ;;  %v7014_v15 = vsel %vm6128_vm5, 4294967295, %v7013_v15  ;;  %vm939_vm7 = vcmp.gt.s32.totalorder %v727_v58, 0  ;;  %vm941_vm4 = vcmp.gt.s32.totalorder %v741_v6, 0  ;;  %4749 = vmatmul.mubr.msk.bf16.gmra.mrb[4].mxu0 %vm7015_vm12, %v3063_v47 }
  0xad   : > { %v1090_v49 = vrot.slane %v7011_v10, 7  ;;  %vm1203_vm9 = vmpackc.low %vm939_vm7, %vm939_vm7  ;;  %v1309_v34 = vsel %vm6128_vm5, %v6117_v55, 0  ;;  %4752 = vmatprep.mubr.msk.bf16.mxu0 %vm7016_vm15, %v3064_v14  ;;  %vm7017_vm10 = vsmask.f32 256  ;;  %v7018_v20 = vshll.u32 %v5615_v46, 16 }
  0xae   : > { %v1233_v30 = vsel %vm1203_vm9, 65537, %v6921_v9  ;;  %vm1205_vm14 = vmpackc.low %vm941_vm4, %vm941_vm4  ;;  %v6143_v18 = vsel %vm7017_vm10, %v1074_v5, %v1085_v24  ;;  %v7019_v54 = vmov 0  ;;  %v7021_v6 = vshrl.u32 %v5942_v61, 16 }
  0xaf   : > { %v4149_v40 = vcombine.low %v1233_v30, %v5397_v8  ;;  %v1093_v53 = vor.u32 %v7018_v20, %v1090_v49  ;;  %v1235_v58 = vsel %vm1205_vm14, 65537, %v6921_v9  ;;  %4589 = vmatmul.mubr.msk.bf16.gmra.mrb[24].mxu1 %vm7015_vm12, %v1309_v34  ;;  %v1814_v5 = vsel %vm5959_vm1, 0, %v5406_v16  ;;  %vm7022_vm10 = vmmov %vm7015_vm12 }
  0xb0   : > { %v4150_v47 = vcombine.low %v1235_v58, %v5397_v8  ;;  %v6157_v10 = vrot.slane %v7021_v6, 7  ;;  %v3065_v8 = vsel %vm5857_vm3, %v5919_v56, 0  ;;  %vm7023_vm15 = vsmask.f32 256  ;;  %vm7026_vm1 = vmmov %vm7022_vm10 }
  0xb1   : > { %vm6151_vm7 = vcmp.ne.s16.totalorder %v4149_v40, 0  ;;  %v6170_v14 = vsel %vm7023_vm15, %v1082_v62, %v1093_v53  ;;  %v3066_v30 = vsel %vm5923_vm0, %v5977_v63, 0  ;;  %v2007_v16 = vsel %vm5421_vm11, %v1814_v5, 0  ;;  %vm7028_vm4 = vmmov %vm7026_vm1  ;;  %v7070_v53 = vld [vmem:[#allocation23_spill] sm:$0xff] }
  0xb2   : > { %v7020_v54 = vsel %vm6151_vm7, 4294967295, %v7019_v54  ;;  %v1310_v24 = vsel %vm6151_vm7, %v6143_v18, 0  ;;  %vm6172_vm9 = vcmp.ne.s16.totalorder %v4150_v47, 0  ;;  %v7027_v62 = vshll.u32 %v5942_v61, 16  ;;  %vm7032_vm15 = vmmov %vm7026_vm1  ;;  %v7066_v47 = vld [vmem:[#allocation32_spill] sm:$0xff] }
  0xb3   : > { %4592 = vmatprep.mubr.msk.bf16.mxu1 %vm7022_vm10, %v1310_v24  ;;  %v1311_v13 = vsel %vm6172_vm9, %v6170_v14, 0  ;;  %vm7029_vm14 = vnez %v6958_v11  ;;  %vm7030_vm12 = vnez %v6979_v1  ;;  %vm7031_vm10 = vnez %v6983_v60  ;;  %vm7035_vm11 = vmmov %vm7032_vm15  ;;  %v5133_v24 = vld [vmem:[%s6717_s3 + $0x38] sm:$0xff]   ;;  %v7189_v60 = vld [vmem:[#allocation27_spill] sm:$0xff] }
  0xb4   : > { %4753 = vmatmul.mubr.msk.bf16.gmra.mrb[8].mxu0 %vm7026_vm1, %v3065_v8  ;;  %v2284_v40 = vor.u32 %v6157_v10, %v7027_v62  ;;  %vm7033_vm1 = vnez %v6999_v0  ;;  %vm7036_vm0 = vsmask.f32 256  ;;  %vm7037_vm3 = vnez %v7008_v48  ;;  %v7062_v8 = vld [vmem:[#allocation14_spill] sm:$0xff] }
  0xb5   : > { %4756 = vmatprep.mubr.msk.bf16.mxu0 %vm7028_vm4, %v3066_v30  ;;  %vm7034_vm4 = vnez %v7002_v23  ;;  %v3067_v62 = vsel %vm7029_vm14, %v5992_v41, 0  ;;  %vm7040_vm14 = vnez %v6872_v32  ;;  %v7117_v50 = vsel %vm5757_vm6, %v5751_v12, 0 }
  0xb6   : > { %v6225_v5 = vsel %vm7036_vm0, %v1090_v49, %v2284_v40  ;;  %vm7038_vm0 = vmmov %vm7035_vm11  ;;  %v7041_v49 = vsel %vm7040_vm14, %v5435_v36, 0  ;;  %v7123_v22 = vsel %vm5772_vm8, %v5825_v43, 0  ;;  %vm7125_vm6 = vnez %v6932_v37 }
  0xb7   : > { %4593 = vmatmul.mubr.msk.bf16.gmra.mrb[28].mxu1 %vm7032_vm15, %v1311_v13  ;;  %vm7039_vm15 = vnez %v6876_v39  ;;  %vm7042_vm13 = vmmov %vm7038_vm0  ;;  %v7059_v13 = vld [vmem:[#allocation16_spill] sm:$0xff]  ;;  %v7126_v12 = vsel %vm7125_vm6, %v5832_v45, 0  ;;  %vm7133_vm8 = vnez %v6955_v27  ;;  %vm7138_vm6 = vnez %v6958_v11  ;;  %v7181_v27 = vld [vmem:[#allocation23_spill] sm:$0xff] }
  0xb8   : > { %4600 = vmatprep.mubr.msk.bf16.mxu1 %vm7035_vm11, %v2007_v16  ;;  %v3068_v16 = vsel %vm7030_vm12, %v6060_v35, 0  ;;  %v2009_v40 = vsel %vm7039_vm15, %v5449_v44, 0  ;;  %vm7043_vm12 = vmmov %vm7038_vm0  ;;  %v7134_v43 = vsel %vm7133_vm8, %v5919_v56, 0  ;;  %v7153_v56 = vsel %vm7034_vm4, %v6095_v51, 0 }
  0xbc   : > { %4757 = vmatmul.mubr.msk.bf16.gmra.mrb[12].mxu0 %vm7035_vm11, %v3067_v62  ;;  %v3069_v62 = vsel %vm7031_vm10, %v6070_v7, 0  ;;  %vm7044_vm11 = vmmov %vm7038_vm0 }
  0xbd   : > { %4760 = vmatprep.mubr.msk.bf16.mxu0 %vm7038_vm0, %v3068_v16  ;;  %v3070_v16 = vsel %vm7033_vm1, %v6095_v51, 0  ;;  %vm7045_vm0 = vnez %v6878_v59  ;;  %vm7048_vm15 = vmmov %vm7044_vm11  ;;  %v7195_v51 = vld [vmem:[#allocation31_spill] sm:$0xff] }
  0xbe   : > { %v2010_v36 = vsel %vm7045_vm0, %v5489_v31, 0  ;;  %vm7049_vm14 = vmmov %vm7044_vm11 }
  0xbf   : > { %4601 = vmatmul.mubr.msk.bf16.vlgmr.msra.gmra.mrb[0].mxu1 %vm7042_vm13, %v7041_v49  ;;  %vm7046_vm13 = vmmov %vm7044_vm11  ;;  %v5138_v49 = vld [vmem:[%s6717_s3 + $0x40] sm:$0xff]  }
  0xc0   : > { %4633 = vmatpush3.bf16.msra.mxu1 %v5735_v21  ;;  %4604 = vmatprep.mubr.msk.bf16.mxu1 %vm7043_vm12, %v2009_v40  ;;  %vm7047_vm12 = vnez %v6884_v17  ;;  %v3071_v40 = vsel %vm7034_vm4, %v6117_v55, 0  ;;  %vm7054_vm0 = vmmov %vm7044_vm11  ;;  %vm7161_vm4 = vnez %v7014_v15  ;;  %v7200_v15 = vld [vmem:[#allocation33_spill] sm:$0xff] }
  0xc1   : > { %4634 = vmatprep.subr.bf16.mxu1 %v5133_v24  ;;  %v2011_v21 = vsel %vm7047_vm12, %v5508_v42, 0  ;;  %vm7051_vm12 = vmmov %vm7044_vm11 }
  0xc4   : > { %4761 = vmatmul.mubr.msk.bf16.gmra.mrb[16].mxu0 %vm7044_vm11, %v3069_v62  ;;  %4635 = vmatpush3.bf16.msra.mxu1 %v5133_v24  ;;  %v3072_v24 = vsel %vm7037_vm3, %v6143_v18, 0 }
  0xc5   : > { %4764 = vmatprep.mubr.msk.bf16.mxu0 %vm7046_vm13, %v3070_v16  ;;  %4848 = vmatprep.subr.bf16.mxu1 %v5138_v49  ;;  %vm7050_vm13 = vnez %v6886_v57 }
  0xc6   : > { %v2012_v62 = vsel %vm7050_vm13, %v5570_v26, 0  ;;  %vm7058_vm13 = vmmov %vm7054_vm0 }
  0xc7   : > { %4605 = vmatmul.mubr.msk.bf16.gmra.mrb[4].mxu1 %vm7048_vm15, %v2010_v36  ;;  %vm7052_vm15 = vnez %v6892_v25  ;;  %v3073_v36 = vsel %vm6128_vm5, %v6170_v14, 0 }
  0xc8   : > { %4608 = vmatprep.mubr.msk.bf16.mxu1 %vm7049_vm14, %v2011_v21  ;;  %v2013_v16 = vsel %vm7052_vm15, %v5587_v33, 0  ;;  %vm7053_vm14 = vmmov %vm7044_vm11  ;;  %v3074_v21 = vsel %vm6151_vm7, %v6225_v5, 0  ;;  %vm7067_vm7 = vnez %v7066_v47 }
  0xcc   : > { %4765 = vmatmul.mubr.msk.bf16.gmra.mrb[20].mxu0 %vm7044_vm11, %v3071_v40  ;;  %vm7055_vm11 = vmmov %vm7054_vm0  ;;  %v7056_v40 = vld [vmem:[#allocation17_spill] sm:$0xff] }
  0xcd   : > { %4768 = vmatprep.mubr.msk.bf16.mxu0 %vm7051_vm12, %v3072_v24  ;;  %vm7057_vm12 = vnez %v7056_v40  ;;  %vm7064_vm15 = vmmov %vm7055_vm11 }
  0xce   : > { %v2014_v24 = vsel %vm7057_vm12, %v5631_v4, 0  ;;  %vm7073_vm12 = vmmov %vm7055_vm11 }
  0xcf   : > { %4609 = vmatmul.mubr.msk.bf16.gmra.mrb[8].mxu1 %vm7053_vm14, %v2012_v62  ;;  %v7060_v62 = vld [vmem:[#allocation21_spill] sm:$0xff] }
  0xd0   : > { %4612 = vmatprep.mubr.msk.bf16.mxu1 %vm7054_vm0, %v2013_v16  ;;  %vm7061_vm14 = vnez %v7060_v62  ;;  %vm7063_vm0 = vnez %v7062_v8  ;;  %v7072_v62 = vld [vmem:[#allocation2_spill] sm:$0xff]  ;;  %v7075_v8 = vld [vmem:[#allocation25_spill] sm:$0xff] }
  0xd1   : > { %v2015_v16 = vsel %vm7061_vm14, %v7059_v13, 0  ;;  %v3059_v30 = vsel %vm7063_vm0, %v6157_v10, 0  ;;  %vm7071_vm14 = vnez %v7070_v53  ;;  %v7074_v10 = vld [vmem:[#allocation20_spill] sm:$0xff]  ;;  %vm7077_vm0 = vmmov %vm7055_vm11  ;;  %v7093_v53 = vld [vmem:[#allocation31_spill] sm:$0xff] }
  0xd2   : > { %v3075_v58 = vsel %vm6172_vm9, %v3059_v30, 0  ;;  %vm7078_vm5 = vmmov %vm7077_vm0  ;;  %v5135_v30 = vld [vmem:[%s6717_s3 + $0x88] sm:$0xff]  }
  0xd4   : > { %4769 = vmatmul.mubr.msk.bf16.gmra.mrb[24].mxu0 %vm7055_vm11, %v3073_v36  ;;  %v7082_v36 = vld [vmem:[#allocation27_spill] sm:$0xff] }
  0xd5   : > { %4772 = vmatprep.mubr.msk.bf16.mxu0 %vm7058_vm13, %v3074_v21  ;;  %vm7068_vm13 = vmmov %vm7055_vm11  ;;  %v7069_v21 = vld [vmem:[#allocation18_spill] sm:$0xff] }
  0xd6   : > { %v2016_v20 = vsel %vm7071_vm14, %v7069_v21, 0  ;;  %vm7096_vm14 = vmmov %vm7078_vm5 }
  0xd7   : > { %4613 = vmatmul.mubr.msk.bf16.gmra.mrb[12].mxu1 %vm7064_vm15, %v2014_v24  ;;  %vm7076_vm15 = vnez %v7075_v8  ;;  %v7086_v8 = vld [vmem:[#allocation26_spill] sm:$0xff] }
  0xd8   : > { %4616 = vmatprep.mubr.msk.bf16.mxu1 %vm7055_vm11, %v2015_v16  ;;  %v2017_v24 = vsel %vm7076_vm15, %v7074_v10, 0  ;;  %vm7080_vm11 = vmmov %vm7077_vm0  ;;  %v7081_v16 = vld [vmem:[#allocation24_spill] sm:$0xff] }
  0xd9   : > { %vm7089_vm15 = vmmov %vm7078_vm5 }
  0xdc   : > { %4773 = vmatmul.mubr.msk.bf16.gmra.mrb[28].mxu0 %vm7068_vm13, %v3075_v58  ;;  %v7079_v58 = vld [vmem:[#allocation3_spill] sm:$0xff]  ;;  %vm7083_vm13 = vnez %v7082_v36  ;;  %v7092_v36 = vld [vmem:[#allocation28_spill] sm:$0xff] }
  0xdd   : > { %4780 = vmatprep.mubr.msk.bf16.mxu0 %vm7073_vm12, %v7072_v62  ;;  %v2018_v6 = vsel %vm7083_vm13, %v7081_v16, 0  ;;  %v7084_v62 = vld [vmem:[#allocation4_spill] sm:$0xff]  ;;  %vm7085_vm12 = vmmov %vm7077_vm0  ;;  %vm7094_vm13 = vnez %v7093_v53  ;;  %v7095_v16 = vld [vmem:[#allocation6_spill] sm:$0xff] }
  0xdf   : > { %4617 = vmatmul.mubr.msk.bf16.gmra.mrb[16].mxu1 %vm7077_vm0, %v2016_v20  ;;  %v7087_v20 = vld [vmem:[#allocation29_spill] sm:$0xff] }
  0xe0   : > { %4620 = vmatprep.mubr.msk.bf16.mxu1 %vm7078_vm5, %v2017_v24  ;;  %vm7088_vm0 = vnez %v7087_v20 }
  0xe1   : > { %v2019_v24 = vsel %vm7088_vm0, %v7086_v8, 0 }
  0xe4   : > { %4781 = vmatmul.mubr.msk.bf16.vlgmr.msra.gmra.mrb[0].mxu0 %vm7080_vm11, %v7079_v58  ;;  %v7090_v58 = vld [vmem:[#allocation5_spill] sm:$0xff]  ;;  %vm7091_vm11 = vmmov %vm7078_vm5 }
  0xe5   : > { %4813 = vmatpush3.bf16.msra.mxu0 %v6102_v19  ;;  %4784 = vmatprep.mubr.msk.bf16.mxu0 %vm7085_vm12, %v7084_v62  ;;  %v2020_v19 = vsel %vm7094_vm13, %v7092_v36, 0  ;;  %v7097_v62 = vld [vmem:[#allocation30_spill] sm:$0xff]  ;;  %vm7098_vm12 = vmmov %vm7078_vm5 }
  0xe6   : > { %4814 = vmatprep.subr.bf16.mxu0 %v5135_v30  ;;  %v2021_v20 = vsel %vm7067_vm7, %v7097_v62, 0  ;;  %vm7108_vm7 = vmmov %vm7078_vm5  ;;  %v3556_v23 = vsel %vm7088_vm0, %v7097_v62, 0 }
  0xe7   : > { %4621 = vmatmul.mubr.msk.bf16.gmra.mrb[20].mxu1 %vm7078_vm5, %v2018_v6  ;;  %v7099_v6 = vld [vmem:[#allocation7_spill] sm:$0xff] }
  0xe8   : > { %4624 = vmatprep.mubr.msk.bf16.mxu1 %vm7089_vm15, %v2019_v24  ;;  %vm7100_vm15 = vmmov %vm7078_vm5  ;;  %v7103_v24 = vld [vmem:[#allocation15_spill] sm:$0xff] }
  0xe9   : > { %4815 = vmatpush3.bf16.msra.mxu0 %v5135_v30  ;;  %v7101_v30 = vld [vmem:[#allocation8_spill] sm:$0xff] }
  0xec   : > { %4785 = vmatmul.mubr.msk.bf16.gmra.mrb[4].mxu0 %vm7091_vm11, %v7090_v58  ;;  %vm7102_vm11 = vmmov %vm7078_vm5  ;;  %v7104_v58 = vld [vmem:[#allocation34_spill] sm:$0xff] }
  0xed   : > { %4788 = vmatprep.mubr.msk.bf16.mxu0 %vm7096_vm14, %v7095_v16  ;;  %vm7105_vm13 = vnez %v7104_v58  ;;  %v7106_v16 = vsel %vm5996_vm2, %v5981_v3, 0  ;;  %vm7107_vm14 = vmmov %vm7078_vm5  ;;  %v7121_v58 = vld [vmem:[#allocation12_spill] sm:$0xff] }
  0xee   : > { %v2295_v53 = vsel %vm7105_vm13, %v7103_v24, 0  ;;  %vm7118_vm2 = vmmov %vm7078_vm5  ;;  %v7119_v24 = vld [vmem:[#allocation11_spill] sm:$0xff] }
  0xef   : > { %4625 = vmatmul.mubr.msk.bf16.gmra.mrb[24].mxu1 %vm7098_vm12, %v2020_v19  ;;  %v7109_v19 = vld [vmem:[#allocation9_spill] sm:$0xff]  ;;  %vm7110_vm12 = vmmov %vm7078_vm5 }
  0xf0   : > { %4628 = vmatprep.mubr.msk.bf16.mxu1 %vm7078_vm5, %v2021_v20  ;;  %v7111_v20 = vld [vmem:[#allocation10_spill] sm:$0xff]  ;;  %vm7122_vm13 = vmmov %vm7118_vm2 }
  0xf1   : > { %vm7146_vm8 = vmmov %vm7118_vm2 }
  0xf4   : > { %4789 = vmatmul.mubr.msk.bf16.gmra.mrb[8].mxu0 %vm7100_vm15, %v7099_v6  ;;  %v7112_v6 = vld [vmem:[#allocation19_spill] sm:$0xff] }
  0xf5   : > { %4792 = vmatprep.mubr.msk.bf16.mxu0 %vm7102_vm11, %v7101_v30  ;;  %vm7113_vm15 = vnez %v7112_v6  ;;  %v7114_v30 = vld [vmem:[#allocation22_spill] sm:$0xff]  ;;  %vm7116_vm11 = vmmov %vm7078_vm5 }
  0xf6   : > { %v7115_v47 = vsel %vm7113_vm15, %v7114_v30, 0  ;;  %vm7130_vm15 = vmmov %vm7118_vm2 }
  0xf7   : > { %4629 = vmatmul.mubr.msk.bf16.gmra.mrb[28].mxu1 %vm7107_vm14, %v7106_v16  ;;  %vm7124_vm14 = vmmov %vm7118_vm2 }
  0xf8   : > { %4636 = vmatprep.mubr.msk.bf16.mxu1 %vm7108_vm7, %v2295_v53  ;;  %v5139_v53 = vld [vmem:[%s6717_s3 + $0x48] sm:$0xff]   ;;  %vm7120_vm7 = vmmov %vm7118_vm2 }
  0xfc   : > { %4793 = vmatmul.mubr.msk.bf16.gmra.mrb[12].mxu0 %vm7110_vm12, %v7109_v19  ;;  %vm7127_vm12 = vmmov %vm7118_vm2 }
  0xfd   : > { %4796 = vmatprep.mubr.msk.bf16.mxu0 %vm7078_vm5, %v7111_v20  ;;  %vm7129_vm5 = vmmov %vm7118_vm2 }
  0xff   : > { %4637 = vmatmul.mubr.msk.bf16.vlgmr.msra.gmra.mrb[0].mxu1 %vm7116_vm11, %v7115_v47  ;;  %v7128_v47 = vld [vmem:[#allocation13_spill] sm:$0xff]  ;;  %vm7131_vm11 = vnez %v6936_v2  ;;  %v7139_v2 = vsel %vm7138_vm6, %v5977_v63, 0  ;;  %v7145_v63 = vsel %vm7031_vm10, %v6060_v35, 0  ;;  %vm7151_vm6 = vmmov %vm7118_vm2 }
 0x100   : > { %4850 = vmatpush3.bf16.msra.mxu1 %v5138_v49  ;;  %4640 = vmatprep.mubr.msk.bf16.mxu1 %vm7118_vm2, %v7117_v50  ;;  %v7132_v52 = vsel %vm7131_vm11, %v5899_v38, 0  ;;  %vm7144_vm11 = vnez %v6870_v29  ;;  %v7147_v38 = vsel %vm7033_vm1, %v6070_v7, 0  ;;  %vm7154_vm10 = vmmov %vm7118_vm2  ;;  %v7155_v7 = vsel %vm7037_vm3, %v6117_v55, 0  ;;  %v7198_v55 = vld [vmem:[#allocation32_spill] sm:$0xff] }
 0x101   : > { %4849 = vmatprep.subr.bf16.mxu1 %v5139_v53  ;;  %v3544_v37 = vsel %vm7144_vm11, %v5449_v44, 0  ;;  %vm7156_vm1 = vmmov %vm7118_vm2  ;;  %vm7164_vm3 = vnez %v7020_v54 }
 0x102   : > { %vm7159_vm11 = vmmov %vm7156_vm1 }
 0x103   : > { %vm7202_vm0 = vmmov %vm7156_vm1 }
 0x104   : > { %4797 = vmatmul.mubr.msk.bf16.gmra.mrb[16].mxu0 %vm7120_vm7, %v7119_v24  ;;  %4851 = vmatpush3.bf16.msra.mxu1 %v5139_v53  ;;  %vm7135_vm7 = vmmov %vm7118_vm2 }
 0x105   : > { %4800 = vmatprep.mubr.msk.bf16.mxu0 %vm7122_vm13, %v7121_v58  ;;  %vm7136_vm13 = vmmov %vm7118_vm2 }
 0x107   : > { %4641 = vmatmul.mubr.msk.bf16.gmra.mrb[4].mxu1 %vm7124_vm14, %v7123_v22  ;;  %vm7137_vm14 = vmmov %vm7118_vm2 }
 0x108   : > { %4644 = vmatprep.mubr.msk.bf16.mxu1 %vm7127_vm12, %v7126_v12  ;;  %vm7140_vm12 = vmmov %vm7118_vm2 }
 0x10c   : > { %4801 = vmatmul.mubr.msk.bf16.gmra.mrb[20].mxu0 %vm7129_vm5, %v7128_v47  ;;  %vm7141_vm5 = vnez %v6979_v1 }
 0x10d   : > { %4804 = vmatprep.mubr.msk.bf16.mxu0 %vm7130_vm15, %v5606_v28  ;;  %v7142_v45 = vsel %vm7141_vm5, %v5992_v41, 0  ;;  %vm7143_vm15 = vmmov %vm7118_vm2  ;;  %vm7157_vm5 = vnez %v6878_v59  ;;  %v7183_v41 = vld [vmem:[#allocation25_spill] sm:$0xff] }
 0x10f   : > { %4645 = vmatmul.mubr.msk.bf16.gmra.mrb[8].mxu1 %vm7118_vm2, %v7132_v52 }
 0x110   : > { %4648 = vmatprep.mubr.msk.bf16.mxu1 %vm7135_vm7, %v7134_v43  ;;  %vm7148_vm7 = vmmov %vm7118_vm2 }
 0x114   : > { %4805 = vmatmul.mubr.msk.bf16.gmra.mrb[24].mxu0 %vm7136_vm13, %v5615_v46  ;;  %vm7149_vm13 = vnez %v6872_v32  ;;  %v3547_v32 = vsel %vm7157_vm5, %v5570_v26, 0  ;;  %vm7173_vm5 = vnez %v7056_v40 }
 0x115   : > { %4808 = vmatprep.mubr.msk.bf16.mxu0 %vm7137_vm14, %v5942_v61  ;;  %v3545_v29 = vsel %vm7149_vm13, %v5489_v31, 0  ;;  %vm7150_vm14 = vnez %v6876_v39  ;;  %v7162_v39 = vsel %vm7161_vm4, %v6143_v18, 0  ;;  %vm7167_vm13 = vnez %v6886_v57  ;;  %v7174_v57 = vld [vmem:[#allocation21_spill] sm:$0xff]  ;;  %vm7178_vm4 = vmmov %vm7156_vm1 }
 0x116   : > { %v3546_v44 = vsel %vm7150_vm14, %v5508_v42, 0  ;;  %v7165_v42 = vsel %vm7164_vm3, %v6170_v14, 0  ;;  %v3549_v59 = vsel %vm7167_vm13, %v5631_v4, 0  ;;  %vm7168_vm14 = vnez %v6892_v25  ;;  %v7180_v25 = vld [vmem:[#allocation24_spill] sm:$0xff]  ;;  %vm7186_vm13 = vmmov %vm7156_vm1 }
 0x117   : > { %4649 = vmatmul.mubr.msk.bf16.gmra.mrb[12].mxu1 %vm7140_vm12, %v7139_v2  ;;  %vm7152_vm12 = vmmov %vm7118_vm2  ;;  %v3550_v26 = vsel %vm7168_vm14, %v7059_v13, 0  ;;  %vm7184_vm3 = vnez %v7183_v41 }
 0x118   : > { %4652 = vmatprep.mubr.msk.bf16.mxu1 %vm7143_vm15, %v7142_v45  ;;  %vm7158_vm15 = vnez %v6884_v17  ;;  %v7171_v17 = vsel %vm6172_vm9, %v6225_v5, 0  ;;  %vm7179_vm9 = vmmov %vm7156_vm1  ;;  %v3554_v1 = vsel %vm7184_vm3, %v7086_v8, 0  ;;  %vm3916_vm3 = vcmask 516096  }
 0x119   : > { %v3548_v31 = vsel %vm7158_vm15, %v5587_v33, 0  ;;  %v3551_v33 = vsel %vm7173_vm5, %v7069_v21, 0  ;;  %vm7175_vm15 = vnez %v7174_v57  ;;  %vm7187_vm14 = vmmov %vm7156_vm1 }
 0x11a   : > { %v3552_v4 = vsel %vm7175_vm15, %v7074_v10, 0  ;;  %vm7193_vm5 = vmmov %vm7156_vm1 }
 0x11b   : > { %vm7194_vm15 = vmmov %vm7156_vm1 }
 0x11c   : > { %4809 = vmatmul.mubr.bf16.gmra.mrb[28].mxu0 %v6921_v9 }
 0x11d   : > { %4816 = vmatprep.mubr.msk.bf16.mxu0 %vm7118_vm2, %v3544_v37  ;;  %vm7160_vm2 = vmmov %vm7156_vm1 }
 0x11f   : > { %4653 = vmatmul.mubr.msk.bf16.gmra.mrb[16].mxu1 %vm7146_vm8, %v7145_v63  ;;  %vm7163_vm8 = vmmov %vm7156_vm1 }
 0x120   : > { %4656 = vmatprep.mubr.msk.bf16.mxu1 %vm7148_vm7, %v7147_v38  ;;  %vm7166_vm7 = vmmov %vm7156_vm1 }
 0x124   : > { %4817 = vmatmul.mubr.msk.bf16.vlgmr.msra.gmra.mrb[0].mxu0 %vm7151_vm6, %v3545_v29  ;;  %vm7169_vm6 = vmmov %vm7156_vm1 }
 0x125   : > { %4820 = vmatprep.mubr.msk.bf16.mxu0 %vm7152_vm12, %v3546_v44  ;;  %vm7170_vm12 = vmmov %vm7156_vm1 }
 0x127   : > { %4657 = vmatmul.mubr.msk.bf16.gmra.mrb[20].mxu1 %vm7154_vm10, %v7153_v56  ;;  %vm7172_vm10 = vmmov %vm7156_vm1 }
 0x128   : > { %4660 = vmatprep.mubr.msk.bf16.mxu1 %vm7156_vm1, %v7155_v7 }
 0x12c   : > { %4821 = vmatmul.mubr.msk.bf16.gmra.mrb[4].mxu0 %vm7159_vm11, %v3547_v32  ;;  %vm7176_vm11 = vmmov %vm7156_vm1 }
 0x12d   : > { %4824 = vmatprep.mubr.msk.bf16.mxu0 %vm7160_vm2, %v3548_v31  ;;  %vm7177_vm2 = vmmov %vm7156_vm1 }
 0x12f   : > { %4661 = vmatmul.mubr.msk.bf16.gmra.mrb[24].mxu1 %vm7163_vm8, %v7162_v39  ;;  %vm7182_vm8 = vnez %v7181_v27 }
 0x130   : > { %4664 = vmatprep.mubr.msk.bf16.mxu1 %vm7166_vm7, %v7165_v42  ;;  %v3553_v11 = vsel %vm7182_vm8, %v7180_v25, 0  ;;  %vm7185_vm7 = vmmov %vm7156_vm1  ;;  %vm3814_vm8 = vcmask 523264  }
 0x134   : > { %4825 = vmatmul.mubr.msk.bf16.gmra.mrb[8].mxu0 %vm7169_vm6, %v3549_v59  ;;  %vm7188_vm6 = vmmov %vm7156_vm1 }
 0x135   : > { %4828 = vmatprep.mubr.msk.bf16.mxu0 %vm7170_vm12, %v3550_v26  ;;  %vm7190_vm12 = vnez %v7189_v60 }
 0x136   : > { %v3555_v35 = vsel %vm7190_vm12, %v7092_v36, 0 }
 0x137   : > { %4665 = vmatmul.mubr.msk.bf16.gmra.mrb[28].mxu1 %vm7172_vm10, %v7171_v17  ;;  %vm7192_vm10 = vmmov %vm7156_vm1 }
 0x138   : > { %4688 = vmatprep.mubr.msk.bf16.mxu1 %vm7156_vm1, %v7109_v19 }
 0x13c   : > { %4829 = vmatmul.mubr.msk.bf16.gmra.mrb[12].mxu0 %vm7176_vm11, %v3551_v33  ;;  %vm7196_vm11 = vnez %v7195_v51 }
 0x13d   : > { %4832 = vmatprep.mubr.msk.bf16.mxu0 %vm7177_vm2, %v3552_v4  ;;  %v3557_v48 = vsel %vm7196_vm11, %v5981_v3, 0  ;;  %vm7197_vm2 = vmmov %vm7156_vm1 }
 0x13f   : > { %4689 = vmatmul.mubr.msk.bf16.vlgmr.msra.gmra.mrb[16].mxu1 %vm7178_vm4, %v7111_v20  ;;  %vm7199_vm4 = vnez %v7198_v55 }
 0x140   : > { %4692 = vmatprep.mubr.msk.bf16.mxu1 %vm7179_vm9, %v7119_v24  ;;  %v7201_v18 = vsel %vm7199_vm4, %v7200_v15, 0  ;;  %vm7203_vm9 = vmmov %vm7202_vm0 }
 0x144   : > { %4833 = vmatmul.mubr.msk.bf16.gmra.mrb[16].mxu0 %vm7185_vm7, %v3553_v11 }
 0x145   : > { %4836 = vmatprep.mubr.msk.bf16.mxu0 %vm7186_vm13, %v3554_v1 }
 0x147   : > { %4693 = vmatmul.mubr.msk.bf16.gmra.mrb[20].mxu1 %vm7187_vm14, %v7121_v58 }
 0x148   : > { %4696 = vmatprep.mubr.msk.bf16.mxu1 %vm7188_vm6, %v7128_v47 }
 0x14c   : > { %4837 = vmatmul.mubr.msk.bf16.gmra.mrb[20].mxu0 %vm7192_vm10, %v3555_v35 }
 0x14d   : > { %4840 = vmatprep.mubr.msk.bf16.mxu0 %vm7156_vm1, %v3556_v23 }
 0x14f   : > { %4697 = vmatmul.mubr.msk.bf16.gmra.mrb[24].mxu1 %vm7193_vm5, %v5606_v28 }
 0x150   : > { %4700 = vmatprep.mubr.msk.bf16.mxu1 %vm7194_vm15, %v5615_v46 }
 0x154   : > { %4841 = vmatmul.mubr.msk.bf16.gmra.mrb[24].mxu0 %vm7197_vm2, %v3557_v48 }
 0x155   : > { %4844 = vmatprep.mubr.msk.bf16.mxu0 %vm7202_vm0, %v7201_v18 }
 0x157   : > { %4701 = vmatmul.mubr.msk.bf16.gmra.mrb[28].mxu1 %vm7203_vm9, %v5942_v61 }
 0x15c   : > { %4845 = vmatmul.mubr.bf16.gmra.mrb[28].mxu0 %v6921_v9 }
 0x1d2   : > { %v4638_v28 = vpop.f32.mrb[0].mxu1 }
 0x1d3   : > { %v2410_v46 = vpop.f32.mrb[1].mxu1 }
 0x1d4   : > { %v4639_v54 = vpop.f32.mrb[2].mxu1 }
 0x1d5   : > { %v2413_v14 = vpop.f32.mrb[3].mxu1 }
 0x1da   : > { %v4642_v34 = vpop.f32.mrb[4].mxu1 }
 0x1db   : > { %v2426_v3 = vpop.f32.mrb[5].mxu1 }
 0x1dc   : > { %v4643_v5 = vpop.f32.mrb[6].mxu1 }
 0x1dd   : > { %v2429_v13 = vpop.f32.mrb[7].mxu1 }
 0x1e2   : > { %v6544_v49 = vpop.f32.mrb[8].mxu1 }
 0x1e3   : > { %v6546_v40 = vpop.f32.mrb[9].mxu1 }
 0x1e4   : > { %v6548_v36 = vpop.f32.mrb[10].mxu1 }
 0x1e5   : > { %v6550_v21 = vpop.f32.mrb[11].mxu1 }
 0x1ea   : > { %v6552_v61 = vpop.f32.mrb[12].mxu1 }
 0x1eb   : > { %v6554_v9 = vpop.f32.mrb[13].mxu1 }
 0x1ec   : > { %v6556_v10 = vpop.f32.mrb[14].mxu1 }
 0x1ed   : > { %v6558_v8 = vpop.f32.mrb[15].mxu1 }
 0x1f7   : > { %v4818_v62 = vpop.f32.mrb[0].mxu0 }
 0x1f8   : > { %v4852_v16 = vadd.f32 %v4818_v62, %v4638_v28  ;;  %v3655_v19 = vpop.f32.mrb[1].mxu0 }
 0x1f9   : > { %v4853_v20 = vadd.f32 %v3655_v19, %v2410_v46  ;;  %v4819_v6 = vpop.f32.mrb[2].mxu0 }
 0x1fa   : > { %3817 = vst.msk [vmem:[%s6565_s11 + $0x10] sm:$0xff] %vm3814_vm8, %v4852_v16  ;;  %v4854_v30 = vadd.f32 %v4819_v6, %v4639_v54  ;;  %v3658_v50 = vpop.f32.mrb[3].mxu0  ;;  %v3920_v58 = vmul.f32 %v4852_v16, %v4852_v16  ;;  %v3850_v2 = vsel %vm3814_vm8, %v4852_v16, 0.0 }
 0x1fb   : > { %3815 = vst.msk [vmem:[%s6565_s11] sm:$0xff] %vm3814_vm8, %v4853_v20  ;;  %v3918_v53 = vmul.f32 %v4853_v20, %v4853_v20  ;;  %v4855_v24 = vadd.f32 %v3658_v50, %v2413_v14  ;;  %v3847_v22 = vsel %vm3814_vm8, %v4853_v20, 0.0 }
 0x1fc   : > { %3818 = vst.msk [vmem:[%s6565_s11 + $0x18] sm:$0xff] %vm3814_vm8, %v4854_v30  ;;  %v3921_v52 = vmul.f32 %v4854_v30, %v4854_v30  ;;  %v3953_v7 = vsel %vm3814_vm8, %v3920_v58, 0.0  ;;  %v3852_v32 = vsel %vm3814_vm8, %v4854_v30, 0.0 }
 0x1fd   : > { %3816 = vst.msk [vmem:[%s6565_s11 + $0x8] sm:$0xff] %vm3814_vm8, %v4855_v24  ;;  %v3848_v12 = vsel %vm3814_vm8, %v4855_v24, 0.0  ;;  %v3919_v47 = vmul.f32 %v4855_v24, %v4855_v24  ;;  %v3950_v45 = vsel %vm3814_vm8, %v3918_v53, 0.0 }
 0x1fe   : > { %v3849_v43 = vadd.f32 %v3848_v12, %v3847_v22  ;;  %v3955_v42 = vsel %vm3814_vm8, %v3921_v52, 0.0 }
 0x1ff   : > { %v3951_v37 = vsel %vm3814_vm8, %v3919_v47, 0.0  ;;  %v4822_v63 = vpop.f32.mrb[4].mxu0 }
 0x200   : > { %v3851_v38 = vadd.f32 %v3850_v2, %v3849_v43  ;;  %v3952_v29 = vadd.f32 %v3951_v37, %v3950_v45  ;;  %v4856_v44 = vadd.f32 %v4822_v63, %v4642_v34  ;;  %v3671_v56 = vpop.f32.mrb[5].mxu0 }
 0x201   : > { %v4857_v31 = vadd.f32 %v3671_v56, %v2426_v3  ;;  %v4823_v39 = vpop.f32.mrb[6].mxu0 }
 0x202   : > { %v3954_v59 = vadd.f32 %v3953_v7, %v3952_v29  ;;  %3821 = vst.msk [vmem:[%s6565_s11 + $0x30] sm:$0xff] %vm3814_vm8, %v4856_v44  ;;  %v3853_v26 = vadd.f32 %v3852_v32, %v3851_v38  ;;  %v3674_v17 = vpop.f32.mrb[7].mxu0  ;;  %v4858_v4 = vadd.f32 %v4823_v39, %v4643_v5  ;;  %v3924_v60 = vmul.f32 %v4856_v44, %v4856_v44 }
 0x203   : > { %3819 = vst.msk [vmem:[%s6565_s11 + $0x20] sm:$0xff] %vm3814_vm8, %v4857_v31  ;;  %v3854_v33 = vsel %vm3814_vm8, %v4857_v31, 0.0  ;;  %v3922_v57 = vmul.f32 %v4857_v31, %v4857_v31  ;;  %v4859_v25 = vadd.f32 %v3674_v17, %v2429_v13  ;;  %v3858_v51 = vsel %vm3814_vm8, %v4856_v44, 0.0 }
 0x204   : > { %v3855_v27 = vadd.f32 %v3854_v33, %v3853_v26  ;;  %v3956_v11 = vadd.f32 %v3955_v42, %v3954_v59  ;;  %3822 = vst.msk [vmem:[%s6565_s11 + $0x38] sm:$0xff] %vm3814_vm8, %v4858_v4  ;;  %v3925_v55 = vmul.f32 %v4858_v4, %v4858_v4  ;;  %v3860_v54 = vsel %vm3814_vm8, %v4858_v4, 0.0 }
 0x205   : > { %v3957_v41 = vsel %vm3814_vm8, %v3922_v57, 0.0  ;;  %3820 = vst.msk [vmem:[%s6565_s11 + $0x28] sm:$0xff] %vm3814_vm8, %v4859_v25  ;;  %v3856_v1 = vsel %vm3814_vm8, %v4859_v25, 0.0  ;;  %v3923_v23 = vmul.f32 %v4859_v25, %v4859_v25  ;;  %v3961_v5 = vsel %vm3814_vm8, %v3924_v60, 0.0 }
 0x206   : > { %v3958_v35 = vadd.f32 %v3957_v41, %v3956_v11  ;;  %v3857_v0 = vadd.f32 %v3856_v1, %v3855_v27 }
 0x207   : > { %v4826_v48 = vpop.f32.mrb[8].mxu0  ;;  %v3959_v18 = vsel %vm3814_vm8, %v3923_v23, 0.0 }
 0x208   : > { %v3859_v15 = vadd.f32 %v3858_v51, %v3857_v0  ;;  %v4860_v28 = vadd.f32 %v4826_v48, %v6544_v49  ;;  %v3687_v46 = vpop.f32.mrb[9].mxu0  ;;  %v3960_v14 = vadd.f32 %v3959_v18, %v3958_v35 }
 0x209   : > { %v4861_v34 = vadd.f32 %v3687_v46, %v6546_v40  ;;  %v4827_v3 = vpop.f32.mrb[10].mxu0  ;;  %v3963_v40 = vsel %vm3814_vm8, %v3925_v55, 0.0 }
 0x20a   : > { %3825 = vst.msk [vmem:[%s6565_s11 + $0x50] sm:$0xff] %vm3814_vm8, %v4860_v28  ;;  %v3861_v13 = vadd.f32 %v3860_v54, %v3859_v15  ;;  %v4862_v62 = vadd.f32 %v4827_v3, %v6548_v36  ;;  %v3690_v16 = vpop.f32.mrb[11].mxu0  ;;  %v3962_v19 = vadd.f32 %v3961_v5, %v3960_v14  ;;  %v3928_v58 = vmul.f32 %v4860_v28, %v4860_v28 }
 0x20b   : > { %3823 = vst.msk [vmem:[%s6565_s11 + $0x40] sm:$0xff] %vm3814_vm8, %v4861_v34  ;;  %v3862_v49 = vsel %vm3814_vm8, %v4861_v34, 0.0  ;;  %v3926_v20 = vmul.f32 %v4861_v34, %v4861_v34  ;;  %v4863_v6 = vadd.f32 %v3690_v16, %v6550_v21  ;;  %v3866_v12 = vsel %vm3814_vm8, %v4860_v28, 0.0 }
 0x20c   : > { %v3863_v30 = vadd.f32 %v3862_v49, %v3861_v13  ;;  %3826 = vst.msk [vmem:[%s6565_s11 + $0x58] sm:$0xff] %vm3814_vm8, %v4862_v62  ;;  %v3964_v50 = vadd.f32 %v3963_v40, %v3962_v19  ;;  %v3929_v43 = vmul.f32 %v4862_v62, %v4862_v62  ;;  %v3868_v63 = vsel %vm3814_vm8, %v4862_v62, 0.0 }
 0x20d   : > { %v3965_v53 = vsel %vm3814_vm8, %v3926_v20, 0.0  ;;  %3824 = vst.msk [vmem:[%s6565_s11 + $0x48] sm:$0xff] %vm3814_vm8, %v4863_v6  ;;  %v3864_v36 = vsel %vm3814_vm8, %v4863_v6, 0.0  ;;  %v3927_v24 = vmul.f32 %v4863_v6, %v4863_v6  ;;  %v3969_v56 = vsel %vm3814_vm8, %v3928_v58, 0.0 }
 0x20e   : > { %v3865_v22 = vadd.f32 %v3864_v36, %v3863_v30  ;;  %v3966_v47 = vadd.f32 %v3965_v53, %v3964_v50  ;;  %v3971_v17 = vsel %vm3814_vm8, %v3929_v43, 0.0 }
 0x20f   : > { %v3967_v21 = vsel %vm3814_vm8, %v3927_v24, 0.0  ;;  %v4830_v52 = vpop.f32.mrb[12].mxu0 }
 0x210   : > { %v3867_v2 = vadd.f32 %v3866_v12, %v3865_v22  ;;  %v4864_v45 = vadd.f32 %v4830_v52, %v6552_v61  ;;  %v3703_v37 = vpop.f32.mrb[13].mxu0  ;;  %v3968_v38 = vadd.f32 %v3967_v21, %v3966_v47 }
 0x211   : > { %v4865_v29 = vadd.f32 %v3703_v37, %v6554_v9  ;;  %v4831_v44 = vpop.f32.mrb[14].mxu0 }
 0x212   : > { %3829 = vst.msk [vmem:[%s6565_s11 + $0x70] sm:$0xff] %vm3814_vm8, %v4864_v45  ;;  %v3869_v7 = vadd.f32 %v3868_v63, %v3867_v2  ;;  %v4866_v32 = vadd.f32 %v4831_v44, %v6556_v10  ;;  %v3706_v31 = vpop.f32.mrb[15].mxu0  ;;  %v4690_v39 = vpop.f32.mrb[16].mxu1  ;;  %v3970_v42 = vadd.f32 %v3969_v56, %v3968_v38  ;;  %v3932_v41 = vmul.f32 %v4864_v45, %v4864_v45 }
 0x213   : > { %3827 = vst.msk [vmem:[%s6565_s11 + $0x60] sm:$0xff] %vm3814_vm8, %v4865_v29  ;;  %v3870_v61 = vsel %vm3814_vm8, %v4865_v29, 0.0  ;;  %v3930_v59 = vmul.f32 %v4865_v29, %v4865_v29  ;;  %v4867_v9 = vadd.f32 %v3706_v31, %v6558_v8  ;;  %v2686_v26 = vpop.f32.mrb[17].mxu1  ;;  %v3874_v8 = vsel %vm3814_vm8, %v4864_v45, 0.0 }
 0x214   : > { %v3871_v33 = vadd.f32 %v3870_v61, %v3869_v7  ;;  %3830 = vst.msk [vmem:[%s6565_s11 + $0x78] sm:$0xff] %vm3814_vm8, %v4866_v32  ;;  %v4691_v57 = vpop.f32.mrb[18].mxu1  ;;  %v3972_v4 = vadd.f32 %v3971_v17, %v3970_v42  ;;  %v3933_v23 = vmul.f32 %v4866_v32, %v4866_v32  ;;  %v3876_v15 = vsel %vm3814_vm8, %v4866_v32, 0.0 }
 0x215   : > { %v3973_v10 = vsel %vm3814_vm8, %v3930_v59, 0.0  ;;  %3828 = vst.msk [vmem:[%s6565_s11 + $0x68] sm:$0xff] %vm3814_vm8, %v4867_v9  ;;  %v3872_v25 = vsel %vm3814_vm8, %v4867_v9, 0.0  ;;  %v3931_v27 = vmul.f32 %v4867_v9, %v4867_v9  ;;  %v2689_v11 = vpop.f32.mrb[19].mxu1  ;;  %v3977_v54 = vsel %vm3814_vm8, %v3932_v41, 0.0 }
 0x216   : > { %v3873_v1 = vadd.f32 %v3872_v25, %v3871_v33  ;;  %v3974_v60 = vadd.f32 %v3973_v10, %v3972_v4  ;;  %v3979_v20 = vsel %vm3814_vm8, %v3933_v23, 0.0 }
 0x217   : > { %v3975_v35 = vsel %vm3814_vm8, %v3931_v27, 0.0  ;;  %v4834_v0 = vpop.f32.mrb[16].mxu0 }
 0x218   : > { %v3875_v51 = vadd.f32 %v3874_v8, %v3873_v1  ;;  %v4868_v48 = vadd.f32 %v4834_v0, %v4690_v39  ;;  %v3719_v55 = vpop.f32.mrb[17].mxu0  ;;  %v3976_v18 = vadd.f32 %v3975_v35, %v3974_v60 }
 0x219   : > { %v4869_v28 = vadd.f32 %v3719_v55, %v2686_v26  ;;  %v4835_v46 = vpop.f32.mrb[18].mxu0 }
 0x21a   : > { %3833 = vst.msk [vmem:[%s6565_s11 + $0x90] sm:$0xff] %vm3814_vm8, %v4868_v48  ;;  %v3877_v14 = vadd.f32 %v3876_v15, %v3875_v51  ;;  %v4870_v34 = vadd.f32 %v4835_v46, %v4691_v57  ;;  %v3722_v3 = vpop.f32.mrb[19].mxu0  ;;  %v4694_v5 = vpop.f32.mrb[20].mxu1  ;;  %v3978_v13 = vadd.f32 %v3977_v54, %v3976_v18  ;;  %v3936_v58 = vmul.f32 %v4868_v48, %v4868_v48 }
 0x21b   : > { %3831 = vst.msk [vmem:[%s6565_s11 + $0x80] sm:$0xff] %vm3814_vm8, %v4869_v28  ;;  %v3878_v62 = vsel %vm3814_vm8, %v4869_v28, 0.0  ;;  %v3934_v16 = vmul.f32 %v4869_v28, %v4869_v28  ;;  %v4871_v19 = vadd.f32 %v3722_v3, %v2689_v11  ;;  %v2702_v49 = vpop.f32.mrb[21].mxu1  ;;  %v3882_v12 = vsel %vm3814_vm8, %v4868_v48, 0.0 }
 0x21c   : > { %v3879_v6 = vadd.f32 %v3878_v62, %v3877_v14  ;;  %3834 = vst.msk [vmem:[%s6565_s11 + $0x98] sm:$0xff] %vm3814_vm8, %v4870_v34  ;;  %v4695_v40 = vpop.f32.mrb[22].mxu1  ;;  %v3980_v30 = vadd.f32 %v3979_v20, %v3978_v13  ;;  %v3937_v43 = vmul.f32 %v4870_v34, %v4870_v34  ;;  %v3884_v63 = vsel %vm3814_vm8, %v4870_v34, 0.0 }
 0x21d   : > { %v3981_v50 = vsel %vm3814_vm8, %v3934_v16, 0.0  ;;  %3832 = vst.msk [vmem:[%s6565_s11 + $0x88] sm:$0xff] %vm3814_vm8, %v4871_v19  ;;  %v3880_v53 = vsel %vm3814_vm8, %v4871_v19, 0.0  ;;  %v3935_v36 = vmul.f32 %v4871_v19, %v4871_v19  ;;  %v2705_v24 = vpop.f32.mrb[23].mxu1  ;;  %v3985_v56 = vsel %vm3814_vm8, %v3936_v58, 0.0 }
 0x21e   : > { %v3881_v22 = vadd.f32 %v3880_v53, %v3879_v6  ;;  %v3982_v47 = vadd.f32 %v3981_v50, %v3980_v30  ;;  %v3987_v17 = vsel %vm3814_vm8, %v3937_v43, 0.0 }
 0x21f   : > { %v3983_v21 = vsel %vm3814_vm8, %v3935_v36, 0.0  ;;  %v4838_v52 = vpop.f32.mrb[20].mxu0 }
 0x220   : > { %v3883_v2 = vadd.f32 %v3882_v12, %v3881_v22  ;;  %v4872_v45 = vadd.f32 %v4838_v52, %v4694_v5  ;;  %v3735_v37 = vpop.f32.mrb[21].mxu0  ;;  %v3984_v38 = vadd.f32 %v3983_v21, %v3982_v47 }
 0x221   : > { %v4873_v29 = vadd.f32 %v3735_v37, %v2702_v49  ;;  %v4839_v44 = vpop.f32.mrb[22].mxu0 }
 0x222   : > { %3837 = vst.msk [vmem:[%s6565_s11 + $0xb0] sm:$0xff] %vm3814_vm8, %v4872_v45  ;;  %v3885_v7 = vadd.f32 %v3884_v63, %v3883_v2  ;;  %v4874_v32 = vadd.f32 %v4839_v44, %v4695_v40  ;;  %v3738_v31 = vpop.f32.mrb[23].mxu0  ;;  %v4698_v39 = vpop.f32.mrb[24].mxu1  ;;  %v3986_v42 = vadd.f32 %v3985_v56, %v3984_v38  ;;  %v3940_v41 = vmul.f32 %v4872_v45, %v4872_v45 }
 0x223   : > { %3835 = vst.msk [vmem:[%s6565_s11 + $0xa0] sm:$0xff] %vm3814_vm8, %v4873_v29  ;;  %v3886_v61 = vsel %vm3814_vm8, %v4873_v29, 0.0  ;;  %v3938_v59 = vmul.f32 %v4873_v29, %v4873_v29  ;;  %v4875_v9 = vadd.f32 %v3738_v31, %v2705_v24  ;;  %v2718_v26 = vpop.f32.mrb[25].mxu1  ;;  %v3890_v8 = vsel %vm3814_vm8, %v4872_v45, 0.0 }
 0x224   : > { %v3887_v33 = vadd.f32 %v3886_v61, %v3885_v7  ;;  %3838 = vst.msk [vmem:[%s6565_s11 + $0xb8] sm:$0xff] %vm3814_vm8, %v4874_v32  ;;  %v4699_v57 = vpop.f32.mrb[26].mxu1  ;;  %v3988_v4 = vadd.f32 %v3987_v17, %v3986_v42  ;;  %v3941_v23 = vmul.f32 %v4874_v32, %v4874_v32  ;;  %v3892_v15 = vsel %vm3814_vm8, %v4874_v32, 0.0 }
 0x225   : > { %v3989_v10 = vsel %vm3814_vm8, %v3938_v59, 0.0  ;;  %3836 = vst.msk [vmem:[%s6565_s11 + $0xa8] sm:$0xff] %vm3814_vm8, %v4875_v9  ;;  %v3888_v25 = vsel %vm3814_vm8, %v4875_v9, 0.0  ;;  %v3939_v27 = vmul.f32 %v4875_v9, %v4875_v9  ;;  %v2721_v11 = vpop.f32.mrb[27].mxu1  ;;  %v3993_v54 = vsel %vm3814_vm8, %v3940_v41, 0.0 }
 0x226   : > { %v3889_v1 = vadd.f32 %v3888_v25, %v3887_v33  ;;  %v3990_v60 = vadd.f32 %v3989_v10, %v3988_v4  ;;  %v3995_v20 = vsel %vm3814_vm8, %v3941_v23, 0.0 }
 0x227   : > { %v3991_v35 = vsel %vm3814_vm8, %v3939_v27, 0.0  ;;  %v4842_v0 = vpop.f32.mrb[24].mxu0 }
 0x228   : > { %v3891_v51 = vadd.f32 %v3890_v8, %v3889_v1  ;;  %v4876_v48 = vadd.f32 %v4842_v0, %v4698_v39  ;;  %v3751_v55 = vpop.f32.mrb[25].mxu0  ;;  %v3992_v18 = vadd.f32 %v3991_v35, %v3990_v60 }
 0x229   : > { %v4877_v28 = vadd.f32 %v3751_v55, %v2718_v26  ;;  %v4843_v46 = vpop.f32.mrb[26].mxu0 }
 0x22a   : > { %3841 = vst.msk [vmem:[%s6565_s11 + $0xd0] sm:$0xff] %vm3814_vm8, %v4876_v48  ;;  %v3893_v14 = vadd.f32 %v3892_v15, %v3891_v51  ;;  %v4878_v34 = vadd.f32 %v4843_v46, %v4699_v57  ;;  %v3754_v3 = vpop.f32.mrb[27].mxu0  ;;  %v4702_v5 = vpop.f32.mrb[28].mxu1  ;;  %v3994_v13 = vadd.f32 %v3993_v54, %v3992_v18  ;;  %v3944_v58 = vmul.f32 %v4876_v48, %v4876_v48 }
 0x22b   : > { %3839 = vst.msk [vmem:[%s6565_s11 + $0xc0] sm:$0xff] %vm3814_vm8, %v4877_v28  ;;  %v3894_v62 = vsel %vm3814_vm8, %v4877_v28, 0.0  ;;  %v3942_v16 = vmul.f32 %v4877_v28, %v4877_v28  ;;  %v4879_v19 = vadd.f32 %v3754_v3, %v2721_v11  ;;  %v2734_v49 = vpop.f32.mrb[29].mxu1  ;;  %v3898_v12 = vsel %vm3814_vm8, %v4876_v48, 0.0 }
 0x22c   : > { %v3895_v6 = vadd.f32 %v3894_v62, %v3893_v14  ;;  %3842 = vst.msk [vmem:[%s6565_s11 + $0xd8] sm:$0xff] %vm3814_vm8, %v4878_v34  ;;  %v4703_v40 = vpop.f32.mrb[30].mxu1  ;;  %v3996_v30 = vadd.f32 %v3995_v20, %v3994_v13  ;;  %v3945_v43 = vmul.f32 %v4878_v34, %v4878_v34  ;;  %v3900_v63 = vsel %vm3814_vm8, %v4878_v34, 0.0 }
 0x22d   : > { %v3997_v50 = vsel %vm3814_vm8, %v3942_v16, 0.0  ;;  %3840 = vst.msk [vmem:[%s6565_s11 + $0xc8] sm:$0xff] %vm3814_vm8, %v4879_v19  ;;  %v3896_v53 = vsel %vm3814_vm8, %v4879_v19, 0.0  ;;  %v3943_v36 = vmul.f32 %v4879_v19, %v4879_v19  ;;  %v2737_v24 = vpop.f32.mrb[31].mxu1  ;;  %v4001_v56 = vsel %vm3814_vm8, %v3944_v58, 0.0 }
 0x22e   : > { %v3897_v22 = vadd.f32 %v3896_v53, %v3895_v6  ;;  %v3998_v47 = vadd.f32 %v3997_v50, %v3996_v30  ;;  %v4003_v26 = vsel %vm3814_vm8, %v3945_v43, 0.0 }
 0x22f   : > { %v3999_v21 = vsel %vm3814_vm8, %v3943_v36, 0.0  ;;  %v4846_v52 = vpop.f32.mrb[28].mxu0 }
 0x230   : > { %v3899_v2 = vadd.f32 %v3898_v12, %v3897_v22  ;;  %v4880_v45 = vadd.f32 %v4846_v52, %v4702_v5  ;;  %v3767_v37 = vpop.f32.mrb[29].mxu0  ;;  %v4000_v38 = vadd.f32 %v3999_v21, %v3998_v47 }
 0x231   : > { %v4881_v29 = vadd.f32 %v3767_v37, %v2734_v49  ;;  %v4847_v44 = vpop.f32.mrb[30].mxu0 }
 0x232   : > { %3845 = vst.msk [vmem:[%s6565_s11 + $0xf0] sm:$0xff] %vm3814_vm8, %v4880_v45  ;;  %v3948_v7 = vmul.f32 %v4880_v45, %v4880_v45  ;;  %v3901_v32 = vadd.f32 %v3900_v63, %v3899_v2  ;;  %v4882_v31 = vadd.f32 %v4847_v44, %v4703_v40  ;;  %v3770_v39 = vpop.f32.mrb[31].mxu0  ;;  %v4002_v42 = vadd.f32 %v4001_v56, %v4000_v38 }
 0x233   : > { %3843 = vst.msk [vmem:[%s6565_s11 + $0xe0] sm:$0xff] %vm3814_vm8, %v4881_v29  ;;  %v3902_v61 = vsel %vm3814_vm8, %v4881_v29, 0.0  ;;  %v3946_v59 = vmul.f32 %v4881_v29, %v4881_v29  ;;  %v4883_v9 = vadd.f32 %v3770_v39, %v2737_v24  ;;  %v3906_v1 = vsel %vm3814_vm8, %v4880_v45, 0.0 }
 0x234   : > { %v4009_v17 = vsel %vm3814_vm8, %v3948_v7, 0.0  ;;  %v3903_v33 = vadd.f32 %v3902_v61, %v3901_v32  ;;  %3846 = vst.msk [vmem:[%s6565_s11 + $0xf8] sm:$0xff] %vm3814_vm8, %v4882_v31  ;;  %v3949_v57 = vmul.f32 %v4882_v31, %v4882_v31  ;;  %v4004_v4 = vadd.f32 %v4003_v26, %v4002_v42 }
 0x235   : > { %v4005_v10 = vsel %vm3814_vm8, %v3946_v59, 0.0  ;;  %3844 = vst.msk [vmem:[%s6565_s11 + $0xe8] sm:$0xff] %vm3814_vm8, %v4883_v9  ;;  %v3904_v25 = vsel %vm3814_vm8, %v4883_v9, 0.0  ;;  %v3947_v27 = vmul.f32 %v4883_v9, %v4883_v9  ;;  %v3908_v0 = vsel %vm3814_vm8, %v4882_v31, 0.0 }
 0x236   : > { %v4011_v11 = vsel %vm3814_vm8, %v3949_v57, 0.0  ;;  %v3905_v41 = vadd.f32 %v3904_v25, %v3903_v33  ;;  %v4006_v8 = vadd.f32 %v4005_v10, %v4004_v4 }
 0x237   : > { %v4007_v60 = vsel %vm3814_vm8, %v3947_v27, 0.0 }
 0x238   : > { %v3907_v35 = vadd.f32 %v3906_v1, %v3905_v41  ;;  %v4008_v23 = vadd.f32 %v4007_v60, %v4006_v8 }
 0x23a   : > { %v3909_v51 = vadd.f32 %v3908_v0, %v3907_v35  ;;  %v4010_v48 = vadd.f32 %v4009_v17, %v4008_v23 }
 0x23c   : > { %v3910_v55 = vrot.slane %v3909_v51, 4  ;;  %v4012_v15 = vadd.f32 %v4011_v11, %v4010_v48 }
 0x23e   : > { %v3911_v18 = vadd.f32 %v3910_v55, %v3909_v51  ;;  %v4013_v28 = vrot.slane %v4012_v15, 4 }
 0x240   : > { %v3912_v46 = vrot.slane %v3911_v18, 2  ;;  %v4014_v54 = vadd.f32 %v4013_v28, %v4012_v15 }
 0x242   : > { %v3913_v14 = vadd.f32 %v3912_v46, %v3911_v18  ;;  %v4015_v34 = vrot.slane %v4014_v54, 2 }
 0x244   : > { %v3914_v3 = vrot.slane %v3913_v14, 1  ;;  %v4016_v5 = vadd.f32 %v4015_v34, %v4014_v54 }
 0x246   : > { %v3915_v13 = vadd.f32 %v3914_v3, %v3913_v14  ;;  %v4017_v62 = vrot.slane %v4016_v5, 1 }
 0x248   : > { %3917 = vst.msk [vmem:[%s265_s13] sm:$0x1] %vm3916_vm3, %v3915_v13  ;;  %v4018_v16 = vadd.f32 %v4017_v62, %v4016_v5 }
 0x24a   : > { %4019 = vst.msk [vmem:[%s268_s16] sm:$0x1] %vm3916_vm3, %v4018_v16 }
 0x24b PF: > { %s17_s21 = sadd.s32 1, %s5146_s21  }
 0x24c   : > { %p14_p4 = scmp.ge.s32.totalorder %s17_s21, 4  }
 0x24e   :  { %16 = sbr.rel (!%p14_p4) target bundleno = 1 (0x1), region = 98 }

</bundles_post_ra>
